<compile_context>
chip_gen: v7x
topology: tpu7x:2x2x1
jax: 0.10.0
libtpu: 0.0.40
codegen_flags: <defaults>
</compile_context>

<pallas_src>
import functools

import jax
import jax.numpy as jnp
from jax import lax
from jax.experimental import pallas as pl
from jax.experimental.pallas import tpu as pltpu


# ----------------------------------------------------------------------------
# Fused kernel (transposed layout, batch on lanes):
#   tensor fusion over the sequence + L2 norm + 3-layer MLP, one batch tile.
# ----------------------------------------------------------------------------
def _t2fn_fused_kernel(x_ref, w1p_ref, b1_ref, w2t_ref, b2_ref, w3t_ref, b3_ref,
                       out_ref, *, a1, v1, t1, out_range, out_shift, apply_sigmoid):
    S = x_ref.shape[0]          # sequence length
    Bb = x_ref.shape[2]         # batch tile (lanes), multiple of 128
    P = w2t_ref.shape[0]        # post-fusion hidden dim
    VT = v1 * t1

    # modality slices of the combined (S, A1+V1+T1, Bb) block (sublane slices)
    v = x_ref[:, a1:a1 + v1, :]                 # (S, V1, Bb)
    t = x_ref[:, a1 + v1:a1 + v1 + t1, :]       # (S, T1, Bb)

    acc = jnp.zeros((P, Bb), jnp.float32)       # layer-1 pre-activation accumulator
    norm2 = jnp.zeros((1, Bb), jnp.float32)     # running sum of fusion**2

    # fusion[(i*V1+j)*T1+c, b] = sum_s a[s,i,b]*v[s,j,b]*t[s,c,b]
    # built one audio-slice (64, Bb) piece at a time and consumed immediately.
    for i in range(a1):
        av = x_ref[:, i:i + 1, :] * v           # (S, V1, Bb)
        piece = av[0][:, None, :] * t[0][None, :, :]          # (V1, T1, Bb)
        for s in range(1, S):
            piece = piece + av[s][:, None, :] * t[s][None, :, :]
        piece = piece.reshape(VT, Bb)           # (V1*T1, Bb), row = j*T1 + c
        norm2 = norm2 + jnp.sum(piece * piece, axis=0, keepdims=True)
        # layer 1 on the MXU, K split per audio slice: (P, 64) @ (64, Bb)
        acc = acc + jnp.dot(w1p_ref[i], piece, preferred_element_type=jnp.float32)

    # post-fusion MLP (dropout = identity in eval mode)
    y = jnp.maximum(acc + b1_ref[...], 0.0)                                # (P, Bb)
    y = jnp.maximum(jnp.dot(w2t_ref[...], y,
                            preferred_element_type=jnp.float32) + b2_ref[...], 0.0)
    # final (P -> O) layer: O is tiny, do it on the VPU (broadcast-mul + sublane
    # reduce) instead of a degenerate M=1 MXU matmul.  w3t is (O, P).
    y = jnp.sum(w3t_ref[...][:, :, None] * y[None, :, :], axis=1) + b3_ref[...]
    if apply_sigmoid:
        y = jax.nn.sigmoid(y) * out_range + out_shift

    # lane-dense packed output: rows [0, O) = MLP output, row O = fusion L2 norm
    out_ref[...] = jnp.concatenate([y, jnp.sqrt(norm2)], axis=0)


def t2fn_fused(audio1, vision1, text1, w1, b1, w2, b2, w3, b3,
               *, out_range=6.0, out_shift=-3.0, apply_sigmoid=True, block_b=128):
    """Fusion + norm + MLP for all B samples; returns ((B, O), (B, 1)).

    block_b: batch-tile width (lanes). 128 default (v5e MXU rows / full lanes);
    use 256 on v6e; on v7x pick it so cdiv(B, block_b) >= 2 for both TensorCores.
    """
    B, S, A1 = audio1.shape
    V1 = vision1.shape[2]
    T1 = text1.shape[2]
    F = A1 * V1 * T1
    P = w1.shape[1]
    O = w3.shape[1]
    assert w1.shape[0] == F

    # lane tile: multiple of 128 so every vector op / store is lane-dense
    Bb = max(128, ((block_b + 127) // 128) * 128)
    nb = pl.cdiv(B, Bb)
    Bpad = nb * Bb

    # merge the three modalities into one slab with batch on the lane axis
    x = jnp.concatenate([audio1, vision1, text1], axis=2)       # (B, S, 24)
    x = jnp.transpose(x, (1, 2, 0))                             # (S, 24, B)
    if Bpad != B:
        x = jnp.pad(x, ((0, 0), (0, 0), (0, Bpad - B)))         # (S, 24, Bpad)

    # weights re-oriented for the transposed (feature-major) MLP
    w1p = jnp.transpose(w1.reshape(A1, V1 * T1, P), (0, 2, 1))  # (A1, P, V1*T1)
    w2t = jnp.transpose(w2)                                     # (P, P)
    w3t = jnp.transpose(w3)                                     # (O, P)
    b1c = jnp.transpose(b1)                                     # (P, 1)
    b2c = jnp.transpose(b2)                                     # (P, 1)
    b3c = jnp.transpose(b3)                                     # (O, 1)

    kernel = functools.partial(_t2fn_fused_kernel, a1=A1, v1=V1, t1=T1,
                               out_range=out_range, out_shift=out_shift,
                               apply_sigmoid=apply_sigmoid)

    packed = pl.pallas_call(
        kernel,
        out_shape=jax.ShapeDtypeStruct((O + 1, Bpad), jnp.float32),
        grid=(nb,),
        in_specs=[
            pl.BlockSpec((S, A1 + V1 + T1, Bb), lambda i: (0, 0, i)),
            # weights/biases: constant index_map -> fetched once, VMEM-resident
            pl.BlockSpec((A1, P, V1 * T1), lambda i: (0, 0, 0)),
            pl.BlockSpec((P, 1), lambda i: (0, 0)),
            pl.BlockSpec((P, P), lambda i: (0, 0)),
            pl.BlockSpec((P, 1), lambda i: (0, 0)),
            pl.BlockSpec((O, P), lambda i: (0, 0)),
            pl.BlockSpec((O, 1), lambda i: (0, 0)),
        ],
        out_specs=pl.BlockSpec((O + 1, Bb), lambda i: (0, i)),
        compiler_params=pltpu.CompilerParams(dimension_semantics=("parallel",)),
    )(x, w1p, b1c, w2t, b2c, w3t, b3c)

    out = jnp.transpose(packed[:O, :B])          # (B, O)
    norm = jnp.transpose(packed[O:O + 1, :B])    # (B, 1)
    return out, norm


# ----------------------------------------------------------------------------
# Plain-JAX glue: single-layer LSTM matching torch.nn.LSTM (batch_first=True)
# ----------------------------------------------------------------------------
def lstm_forward(x, params):
    w_ih, w_hh, b_ih, b_hh = params  # (4H, in), (4H, H), (4H,), (4H,)
    H = w_hh.shape[1]
    B = x.shape[0]

    def step(carry, xt):
        h, c = carry
        gates = xt @ w_ih.T + h @ w_hh.T + b_ih + b_hh  # (B, 4H)
        i, f, g, o = jnp.split(gates, 4, axis=-1)
        i, f, o = jax.nn.sigmoid(i), jax.nn.sigmoid(f), jax.nn.sigmoid(o)
        g = jnp.tanh(g)
        c = f * c + i * g
        h = o * jnp.tanh(c)
        return (h, c), h

    h0 = jnp.zeros((B, H), jnp.float32)
    c0 = jnp.zeros((B, H), jnp.float32)
    _, hs = lax.scan(step, (h0, c0), jnp.swapaxes(x, 0, 1))
    return jnp.swapaxes(hs, 0, 1)  # (B, S, H)


def init_lstm(key, in_dim, hidden):
    k = jax.random.split(key, 4)
    s = 1.0 / jnp.sqrt(hidden)
    w_ih = jax.random.uniform(k[0], (4 * hidden, in_dim), jnp.float32, -s, s)
    w_hh = jax.random.uniform(k[1], (4 * hidden, hidden), jnp.float32, -s, s)
    b_ih = jax.random.uniform(k[2], (4 * hidden,), jnp.float32, -s, s)
    b_hh = jax.random.uniform(k[3], (4 * hidden,), jnp.float32, -s, s)
    return w_ih, w_hh, b_ih, b_hh


def init_linear(key, in_dim, out_dim):
    k1, k2 = jax.random.split(key)
    s = 1.0 / jnp.sqrt(in_dim)
    w = jax.random.uniform(k1, (in_dim, out_dim), jnp.float32, -s, s)  # (in, out)
    b = jax.random.uniform(k2, (1, out_dim), jnp.float32, -s, s)
    return w, b


# ----------------------------------------------------------------------------
# Full T2FN forward (eval mode)
# ----------------------------------------------------------------------------
def t2fn_forward(params, text, audio, vision, audio_lengths, vision_lengths):
    # TODO(synk): AlignSubNet(avg_pool) and BertTextEncoder are skipped; text /
    # audio / vision are assumed already aligned to a common seq length.  Lengths
    # are unused, matching the reference forward which fuses over all timesteps.
    del audio_lengths, vision_lengths

    audio_h = lstm_forward(audio, params["audio_lstm"])
    vision_h = lstm_forward(vision, params["vision_lstm"])
    text_h = lstm_forward(text, params["text_lstm"])

    B, S = audio.shape[0], audio.shape[1]
    ones = jnp.ones((B, S, 1), jnp.float32)
    _audio_h = jnp.concatenate([ones, audio_h], axis=2)    # (B, S, Ah+1)
    _vision_h = jnp.concatenate([ones, vision_h], axis=2)  # (B, S, Vh+1)
    _text_h = jnp.concatenate([ones, text_h], axis=2)      # (B, S, Th+1)

    w1, b1 = params["post_fusion_layer_1"]
    w2, b2 = params["post_fusion_layer_2"]
    w3, b3 = params["post_fusion_layer_3"]
    O = w3.shape[1]

    # --- single fused Pallas kernel: tensor fusion + norm + 3-layer MLP ---
    output, norm = t2fn_fused(_audio_h, _vision_h, _text_h,
                              w1, b1, w2, b2, w3, b3,
                              out_range=6.0, out_shift=-3.0,
                              apply_sigmoid=(O == 1))

    ah, vh, th = params["hidden_dims"]
    tmp = jnp.sqrt(jnp.float32(ah * vh * th) / jnp.float32(max(ah, vh, th)))
    reg_loss = jnp.mean(tmp * norm[:, 0])
    return output, reg_loss


# ----------------------------------------------------------------------------
# Pure-JAX reference (numerical check)
# ----------------------------------------------------------------------------
def t2fn_reference(params, text, audio, vision):
    audio_h = lstm_forward(audio, params["audio_lstm"])
    vision_h = lstm_forward(vision, params["vision_lstm"])
    text_h = lstm_forward(text, params["text_lstm"])
    B, S = audio.shape[0], audio.shape[1]
    ones = jnp.ones((B, S, 1), jnp.float32)
    a = jnp.concatenate([ones, audio_h], axis=2)
    v = jnp.concatenate([ones, vision_h], axis=2)
    t = jnp.concatenate([ones, text_h], axis=2)
    fusion = jnp.einsum("bsi,bsj,bsc->bijc", a, v, t).reshape(B, -1)
    norm = jnp.sqrt(jnp.sum(fusion * fusion, axis=1))
    w1, b1 = params["post_fusion_layer_1"]
    w2, b2 = params["post_fusion_layer_2"]
    w3, b3 = params["post_fusion_layer_3"]
    y = jnp.maximum(fusion @ w1 + b1, 0.0)
    y = jnp.maximum(y @ w2 + b2, 0.0)
    y = y @ w3 + b3
    if w3.shape[1] == 1:
        y = jax.nn.sigmoid(y) * 6.0 - 3.0
    ah, vh, th = params["hidden_dims"]
    tmp = jnp.sqrt(jnp.float32(ah * vh * th) / jnp.float32(max(ah, vh, th)))
    return y, jnp.mean(tmp * norm)


if __name__ == "__main__":
    key = jax.random.PRNGKey(0)

    # small shapes consistent with the module
    B, S = 2, 8
    text_in, audio_in, vision_in = 16, 8, 8
    text_hidden, audio_hidden, vision_hidden = 7, 7, 7   # -> (7+1)^3 = 512 fusion dim
    post_fusion_dim, output_dim = 32, 1
    fusion_dim = (text_hidden + 1) * (vision_hidden + 1) * (audio_hidden + 1)

    keys = jax.random.split(key, 10)
    params = {
        "audio_lstm": init_lstm(keys[0], audio_in, audio_hidden),
        "vision_lstm": init_lstm(keys[1], vision_in, vision_hidden),
        "text_lstm": init_lstm(keys[2], text_in, text_hidden),
        "post_fusion_layer_1": init_linear(keys[3], fusion_dim, post_fusion_dim),
        "post_fusion_layer_2": init_linear(keys[4], post_fusion_dim, post_fusion_dim),
        "post_fusion_layer_3": init_linear(keys[5], post_fusion_dim, output_dim),
        "hidden_dims": (audio_hidden, vision_hidden, text_hidden),
    }

    text = jax.random.normal(keys[6], (B, S, text_in), jnp.float32)
    audio = jax.random.normal(keys[7], (B, S, audio_in), jnp.float32)
    vision = jax.random.normal(keys[8], (B, S, vision_in), jnp.float32)
    audio_lengths = jnp.full((B,), S, jnp.int32)
    vision_lengths = jnp.full((B,), S, jnp.int32)

    output, reg_loss = t2fn_forward(params, text, audio, vision,
                                    audio_lengths, vision_lengths)
    jax.block_until_ready((output, reg_loss))

    assert output.shape == (B, output_dim)
    assert reg_loss.shape == ()

    # numerical check against the pure-JAX reference (tightened per review)
    ref_out, ref_reg = t2fn_reference(params, text, audio, vision)
    jax.block_until_ready((ref_out, ref_reg))
    assert jnp.allclose(output, ref_out, rtol=1e-3, atol=1e-3)
    assert jnp.allclose(reg_loss, ref_reg, rtol=1e-3, atol=1e-3)

    print("KERNEL_OK")
</pallas_src>

<mosaic_0001>
module attributes {stable_mosaic.version = 11 : i64} {
  func.func @_t2fn_fused_kernel(%arg0: i32, %arg1: memref<8x24x128xf32, #tpu.memory_space<vmem>>, %arg2: memref<8x32x64xf32, #tpu.memory_space<vmem>>, %arg3: memref<32x1xf32, #tpu.memory_space<vmem>>, %arg4: memref<32x32xf32, #tpu.memory_space<vmem>>, %arg5: memref<32x1xf32, #tpu.memory_space<vmem>>, %arg6: memref<1x32xf32, #tpu.memory_space<vmem>>, %arg7: memref<1x1xf32, #tpu.memory_space<vmem>>, %arg8: memref<2x128xf32, #tpu.memory_space<vmem>>) attributes {dimension_semantics = [#tpu.dimension_semantics<parallel>], iteration_bounds = array<i64: 1>, scalar_prefetch = 0 : i64, scratch_operands = 0 : i64, tpu.core_type = #tpu.core_type<tc>, window_params = [{transform_indices = @transform_0, window_bounds = array<i64: 8, 24, 128>}, {pipeline_mode = #tpu.pipeline_mode<synchronous>, transform_indices = @transform_1, window_bounds = array<i64: 8, 32, 64>}, {pipeline_mode = #tpu.pipeline_mode<synchronous>, transform_indices = @transform_2, window_bounds = array<i64: 32, 1>}, {pipeline_mode = #tpu.pipeline_mode<synchronous>, transform_indices = @transform_3, window_bounds = array<i64: 32, 32>}, {pipeline_mode = #tpu.pipeline_mode<synchronous>, transform_indices = @transform_4, window_bounds = array<i64: 32, 1>}, {pipeline_mode = #tpu.pipeline_mode<synchronous>, transform_indices = @transform_5, window_bounds = array<i64: 1, 32>}, {pipeline_mode = #tpu.pipeline_mode<synchronous>, transform_indices = @transform_6, window_bounds = array<i64: 1, 1>}, {transform_indices = @transform_7, window_bounds = array<i64: 2, 128>}]} {
    %c0 = arith.constant 0 : index
    %c8 = arith.constant 8 : index
    %c0_0 = arith.constant 0 : index
    %0 = vector.load %arg1[%c0, %c8, %c0_0] : memref<8x24x128xf32, #tpu.memory_space<vmem>>, vector<8x8x128xf32>
    %c0_1 = arith.constant 0 : index
    %c16 = arith.constant 16 : index
    %c0_2 = arith.constant 0 : index
    %1 = vector.load %arg1[%c0_1, %c16, %c0_2] : memref<8x24x128xf32, #tpu.memory_space<vmem>>, vector<8x8x128xf32>
    %cst = arith.constant 0.000000e+00 : f32
    %2 = vector.broadcast %cst : f32 to vector<32x128xf32>
    %cst_3 = arith.constant 0.000000e+00 : f32
    %3 = vector.broadcast %cst_3 : f32 to vector<1x128xf32>
    %c0_4 = arith.constant 0 : index
    %c0_5 = arith.constant 0 : index
    %c0_6 = arith.constant 0 : index
    %4 = vector.load %arg1[%c0_4, %c0_5, %c0_6] : memref<8x24x128xf32, #tpu.memory_space<vmem>>, vector<8x1x128xf32>
    %5 = vector.broadcast %4 : vector<8x1x128xf32> to vector<8x8x128xf32>
    %6 = arith.mulf %5, %0 : vector<8x8x128xf32>
    %7 = vector.extract_strided_slice %6 {offsets = [0, 0, 0], sizes = [1, 8, 128], strides = [1, 1, 1]} : vector<8x8x128xf32> to vector<1x8x128xf32>
    %8 = vector.shape_cast %7 : vector<1x8x128xf32> to vector<8x128xf32>
    %9 = vector.shape_cast %8 : vector<8x128xf32> to vector<8x1x128xf32>
    %10 = vector.extract_strided_slice %1 {offsets = [0, 0, 0], sizes = [1, 8, 128], strides = [1, 1, 1]} : vector<8x8x128xf32> to vector<1x8x128xf32>
    %11 = vector.shape_cast %10 : vector<1x8x128xf32> to vector<8x128xf32>
    %12 = vector.shape_cast %11 : vector<8x128xf32> to vector<1x8x128xf32>
    %13 = vector.broadcast %9 : vector<8x1x128xf32> to vector<8x8x128xf32>
    %14 = vector.broadcast %12 : vector<1x8x128xf32> to vector<8x8x128xf32>
    %15 = arith.mulf %13, %14 : vector<8x8x128xf32>
    %16 = vector.extract_strided_slice %6 {offsets = [1, 0, 0], sizes = [1, 8, 128], strides = [1, 1, 1]} : vector<8x8x128xf32> to vector<1x8x128xf32>
    %17 = vector.shape_cast %16 : vector<1x8x128xf32> to vector<8x128xf32>
    %18 = vector.shape_cast %17 : vector<8x128xf32> to vector<8x1x128xf32>
    %19 = vector.extract_strided_slice %1 {offsets = [1, 0, 0], sizes = [1, 8, 128], strides = [1, 1, 1]} : vector<8x8x128xf32> to vector<1x8x128xf32>
    %20 = vector.shape_cast %19 : vector<1x8x128xf32> to vector<8x128xf32>
    %21 = vector.shape_cast %20 : vector<8x128xf32> to vector<1x8x128xf32>
    %22 = vector.broadcast %18 : vector<8x1x128xf32> to vector<8x8x128xf32>
    %23 = vector.broadcast %21 : vector<1x8x128xf32> to vector<8x8x128xf32>
    %24 = arith.mulf %22, %23 : vector<8x8x128xf32>
    %25 = arith.addf %15, %24 : vector<8x8x128xf32>
    %26 = vector.extract_strided_slice %6 {offsets = [2, 0, 0], sizes = [1, 8, 128], strides = [1, 1, 1]} : vector<8x8x128xf32> to vector<1x8x128xf32>
    %27 = vector.shape_cast %26 : vector<1x8x128xf32> to vector<8x128xf32>
    %28 = vector.shape_cast %27 : vector<8x128xf32> to vector<8x1x128xf32>
    %29 = vector.extract_strided_slice %1 {offsets = [2, 0, 0], sizes = [1, 8, 128], strides = [1, 1, 1]} : vector<8x8x128xf32> to vector<1x8x128xf32>
    %30 = vector.shape_cast %29 : vector<1x8x128xf32> to vector<8x128xf32>
    %31 = vector.shape_cast %30 : vector<8x128xf32> to vector<1x8x128xf32>
    %32 = vector.broadcast %28 : vector<8x1x128xf32> to vector<8x8x128xf32>
    %33 = vector.broadcast %31 : vector<1x8x128xf32> to vector<8x8x128xf32>
    %34 = arith.mulf %32, %33 : vector<8x8x128xf32>
    %35 = arith.addf %25, %34 : vector<8x8x128xf32>
    %36 = vector.extract_strided_slice %6 {offsets = [3, 0, 0], sizes = [1, 8, 128], strides = [1, 1, 1]} : vector<8x8x128xf32> to vector<1x8x128xf32>
    %37 = vector.shape_cast %36 : vector<1x8x128xf32> to vector<8x128xf32>
    %38 = vector.shape_cast %37 : vector<8x128xf32> to vector<8x1x128xf32>
    %39 = vector.extract_strided_slice %1 {offsets = [3, 0, 0], sizes = [1, 8, 128], strides = [1, 1, 1]} : vector<8x8x128xf32> to vector<1x8x128xf32>
    %40 = vector.shape_cast %39 : vector<1x8x128xf32> to vector<8x128xf32>
    %41 = vector.shape_cast %40 : vector<8x128xf32> to vector<1x8x128xf32>
    %42 = vector.broadcast %38 : vector<8x1x128xf32> to vector<8x8x128xf32>
    %43 = vector.broadcast %41 : vector<1x8x128xf32> to vector<8x8x128xf32>
    %44 = arith.mulf %42, %43 : vector<8x8x128xf32>
    %45 = arith.addf %35, %44 : vector<8x8x128xf32>
    %46 = vector.extract_strided_slice %6 {offsets = [4, 0, 0], sizes = [1, 8, 128], strides = [1, 1, 1]} : vector<8x8x128xf32> to vector<1x8x128xf32>
    %47 = vector.shape_cast %46 : vector<1x8x128xf32> to vector<8x128xf32>
    %48 = vector.shape_cast %47 : vector<8x128xf32> to vector<8x1x128xf32>
    %49 = vector.extract_strided_slice %1 {offsets = [4, 0, 0], sizes = [1, 8, 128], strides = [1, 1, 1]} : vector<8x8x128xf32> to vector<1x8x128xf32>
    %50 = vector.shape_cast %49 : vector<1x8x128xf32> to vector<8x128xf32>
    %51 = vector.shape_cast %50 : vector<8x128xf32> to vector<1x8x128xf32>
    %52 = vector.broadcast %48 : vector<8x1x128xf32> to vector<8x8x128xf32>
    %53 = vector.broadcast %51 : vector<1x8x128xf32> to vector<8x8x128xf32>
    %54 = arith.mulf %52, %53 : vector<8x8x128xf32>
    %55 = arith.addf %45, %54 : vector<8x8x128xf32>
    %56 = vector.extract_strided_slice %6 {offsets = [5, 0, 0], sizes = [1, 8, 128], strides = [1, 1, 1]} : vector<8x8x128xf32> to vector<1x8x128xf32>
    %57 = vector.shape_cast %56 : vector<1x8x128xf32> to vector<8x128xf32>
    %58 = vector.shape_cast %57 : vector<8x128xf32> to vector<8x1x128xf32>
    %59 = vector.extract_strided_slice %1 {offsets = [5, 0, 0], sizes = [1, 8, 128], strides = [1, 1, 1]} : vector<8x8x128xf32> to vector<1x8x128xf32>
    %60 = vector.shape_cast %59 : vector<1x8x128xf32> to vector<8x128xf32>
    %61 = vector.shape_cast %60 : vector<8x128xf32> to vector<1x8x128xf32>
    %62 = vector.broadcast %58 : vector<8x1x128xf32> to vector<8x8x128xf32>
    %63 = vector.broadcast %61 : vector<1x8x128xf32> to vector<8x8x128xf32>
    %64 = arith.mulf %62, %63 : vector<8x8x128xf32>
    %65 = arith.addf %55, %64 : vector<8x8x128xf32>
    %66 = vector.extract_strided_slice %6 {offsets = [6, 0, 0], sizes = [1, 8, 128], strides = [1, 1, 1]} : vector<8x8x128xf32> to vector<1x8x128xf32>
    %67 = vector.shape_cast %66 : vector<1x8x128xf32> to vector<8x128xf32>
    %68 = vector.shape_cast %67 : vector<8x128xf32> to vector<8x1x128xf32>
    %69 = vector.extract_strided_slice %1 {offsets = [6, 0, 0], sizes = [1, 8, 128], strides = [1, 1, 1]} : vector<8x8x128xf32> to vector<1x8x128xf32>
    %70 = vector.shape_cast %69 : vector<1x8x128xf32> to vector<8x128xf32>
    %71 = vector.shape_cast %70 : vector<8x128xf32> to vector<1x8x128xf32>
    %72 = vector.broadcast %68 : vector<8x1x128xf32> to vector<8x8x128xf32>
    %73 = vector.broadcast %71 : vector<1x8x128xf32> to vector<8x8x128xf32>
    %74 = arith.mulf %72, %73 : vector<8x8x128xf32>
    %75 = arith.addf %65, %74 : vector<8x8x128xf32>
    %76 = vector.extract_strided_slice %6 {offsets = [7, 0, 0], sizes = [1, 8, 128], strides = [1, 1, 1]} : vector<8x8x128xf32> to vector<1x8x128xf32>
    %77 = vector.shape_cast %76 : vector<1x8x128xf32> to vector<8x128xf32>
    %78 = vector.shape_cast %77 : vector<8x128xf32> to vector<8x1x128xf32>
    %79 = vector.extract_strided_slice %1 {offsets = [7, 0, 0], sizes = [1, 8, 128], strides = [1, 1, 1]} : vector<8x8x128xf32> to vector<1x8x128xf32>
    %80 = vector.shape_cast %79 : vector<1x8x128xf32> to vector<8x128xf32>
    %81 = vector.shape_cast %80 : vector<8x128xf32> to vector<1x8x128xf32>
    %82 = vector.broadcast %78 : vector<8x1x128xf32> to vector<8x8x128xf32>
    %83 = vector.broadcast %81 : vector<1x8x128xf32> to vector<8x8x128xf32>
    %84 = arith.mulf %82, %83 : vector<8x8x128xf32>
    %85 = arith.addf %75, %84 : vector<8x8x128xf32>
    %86 = vector.shape_cast %85 : vector<8x8x128xf32> to vector<64x128xf32>
    %87 = arith.mulf %86, %86 : vector<64x128xf32>
    %cst_7 = arith.constant dense<0.000000e+00> : vector<128xf32>
    %88 = vector.multi_reduction <add>, %87, %cst_7 [0] : vector<64x128xf32> to vector<128xf32>
    %89 = vector.shape_cast %88 : vector<128xf32> to vector<1x128xf32>
    %90 = arith.addf %3, %89 : vector<1x128xf32>
    %c0_8 = arith.constant 0 : index
    %c0_9 = arith.constant 0 : index
    %c0_10 = arith.constant 0 : index
    %91 = vector.load %arg2[%c0_8, %c0_9, %c0_10] : memref<8x32x64xf32, #tpu.memory_space<vmem>>, vector<1x32x64xf32>
    %92 = vector.shape_cast %91 : vector<1x32x64xf32> to vector<32x64xf32>
    %cst_11 = arith.constant dense<0.000000e+00> : vector<32x128xf32>
    %93 = tpu.matmul %92, %86, %cst_11 {dimension_numbers = #tpu.dot_dimension_numbers<[1], [0], [0], [1], [0, 0, 1, 1], [], []>} : vector<32x64xf32>, vector<64x128xf32>, vector<32x128xf32> -> vector<32x128xf32>
    %94 = arith.addf %2, %93 : vector<32x128xf32>
    %c0_12 = arith.constant 0 : index
    %c1 = arith.constant 1 : index
    %c0_13 = arith.constant 0 : index
    %95 = vector.load %arg1[%c0_12, %c1, %c0_13] : memref<8x24x128xf32, #tpu.memory_space<vmem>>, vector<8x1x128xf32>
    %96 = vector.broadcast %95 : vector<8x1x128xf32> to vector<8x8x128xf32>
    %97 = arith.mulf %96, %0 : vector<8x8x128xf32>
    %98 = vector.extract_strided_slice %97 {offsets = [0, 0, 0], sizes = [1, 8, 128], strides = [1, 1, 1]} : vector<8x8x128xf32> to vector<1x8x128xf32>
    %99 = vector.shape_cast %98 : vector<1x8x128xf32> to vector<8x128xf32>
    %100 = vector.shape_cast %99 : vector<8x128xf32> to vector<8x1x128xf32>
    %101 = vector.extract_strided_slice %1 {offsets = [0, 0, 0], sizes = [1, 8, 128], strides = [1, 1, 1]} : vector<8x8x128xf32> to vector<1x8x128xf32>
    %102 = vector.shape_cast %101 : vector<1x8x128xf32> to vector<8x128xf32>
    %103 = vector.shape_cast %102 : vector<8x128xf32> to vector<1x8x128xf32>
    %104 = vector.broadcast %100 : vector<8x1x128xf32> to vector<8x8x128xf32>
    %105 = vector.broadcast %103 : vector<1x8x128xf32> to vector<8x8x128xf32>
    %106 = arith.mulf %104, %105 : vector<8x8x128xf32>
    %107 = vector.extract_strided_slice %97 {offsets = [1, 0, 0], sizes = [1, 8, 128], strides = [1, 1, 1]} : vector<8x8x128xf32> to vector<1x8x128xf32>
    %108 = vector.shape_cast %107 : vector<1x8x128xf32> to vector<8x128xf32>
    %109 = vector.shape_cast %108 : vector<8x128xf32> to vector<8x1x128xf32>
    %110 = vector.extract_strided_slice %1 {offsets = [1, 0, 0], sizes = [1, 8, 128], strides = [1, 1, 1]} : vector<8x8x128xf32> to vector<1x8x128xf32>
    %111 = vector.shape_cast %110 : vector<1x8x128xf32> to vector<8x128xf32>
    %112 = vector.shape_cast %111 : vector<8x128xf32> to vector<1x8x128xf32>
    %113 = vector.broadcast %109 : vector<8x1x128xf32> to vector<8x8x128xf32>
    %114 = vector.broadcast %112 : vector<1x8x128xf32> to vector<8x8x128xf32>
    %115 = arith.mulf %113, %114 : vector<8x8x128xf32>
    %116 = arith.addf %106, %115 : vector<8x8x128xf32>
    %117 = vector.extract_strided_slice %97 {offsets = [2, 0, 0], sizes = [1, 8, 128], strides = [1, 1, 1]} : vector<8x8x128xf32> to vector<1x8x128xf32>
    %118 = vector.shape_cast %117 : vector<1x8x128xf32> to vector<8x128xf32>
    %119 = vector.shape_cast %118 : vector<8x128xf32> to vector<8x1x128xf32>
    %120 = vector.extract_strided_slice %1 {offsets = [2, 0, 0], sizes = [1, 8, 128], strides = [1, 1, 1]} : vector<8x8x128xf32> to vector<1x8x128xf32>
    %121 = vector.shape_cast %120 : vector<1x8x128xf32> to vector<8x128xf32>
    %122 = vector.shape_cast %121 : vector<8x128xf32> to vector<1x8x128xf32>
    %123 = vector.broadcast %119 : vector<8x1x128xf32> to vector<8x8x128xf32>
    %124 = vector.broadcast %122 : vector<1x8x128xf32> to vector<8x8x128xf32>
    %125 = arith.mulf %123, %124 : vector<8x8x128xf32>
    %126 = arith.addf %116, %125 : vector<8x8x128xf32>
    %127 = vector.extract_strided_slice %97 {offsets = [3, 0, 0], sizes = [1, 8, 128], strides = [1, 1, 1]} : vector<8x8x128xf32> to vector<1x8x128xf32>
    %128 = vector.shape_cast %127 : vector<1x8x128xf32> to vector<8x128xf32>
    %129 = vector.shape_cast %128 : vector<8x128xf32> to vector<8x1x128xf32>
    %130 = vector.extract_strided_slice %1 {offsets = [3, 0, 0], sizes = [1, 8, 128], strides = [1, 1, 1]} : vector<8x8x128xf32> to vector<1x8x128xf32>
    %131 = vector.shape_cast %130 : vector<1x8x128xf32> to vector<8x128xf32>
    %132 = vector.shape_cast %131 : vector<8x128xf32> to vector<1x8x128xf32>
    %133 = vector.broadcast %129 : vector<8x1x128xf32> to vector<8x8x128xf32>
    %134 = vector.broadcast %132 : vector<1x8x128xf32> to vector<8x8x128xf32>
    %135 = arith.mulf %133, %134 : vector<8x8x128xf32>
    %136 = arith.addf %126, %135 : vector<8x8x128xf32>
    %137 = vector.extract_strided_slice %97 {offsets = [4, 0, 0], sizes = [1, 8, 128], strides = [1, 1, 1]} : vector<8x8x128xf32> to vector<1x8x128xf32>
    %138 = vector.shape_cast %137 : vector<1x8x128xf32> to vector<8x128xf32>
    %139 = vector.shape_cast %138 : vector<8x128xf32> to vector<8x1x128xf32>
    %140 = vector.extract_strided_slice %1 {offsets = [4, 0, 0], sizes = [1, 8, 128], strides = [1, 1, 1]} : vector<8x8x128xf32> to vector<1x8x128xf32>
    %141 = vector.shape_cast %140 : vector<1x8x128xf32> to vector<8x128xf32>
    %142 = vector.shape_cast %141 : vector<8x128xf32> to vector<1x8x128xf32>
    %143 = vector.broadcast %139 : vector<8x1x128xf32> to vector<8x8x128xf32>
    %144 = vector.broadcast %142 : vector<1x8x128xf32> to vector<8x8x128xf32>
    %145 = arith.mulf %143, %144 : vector<8x8x128xf32>
    %146 = arith.addf %136, %145 : vector<8x8x128xf32>
    %147 = vector.extract_strided_slice %97 {offsets = [5, 0, 0], sizes = [1, 8, 128], strides = [1, 1, 1]} : vector<8x8x128xf32> to vector<1x8x128xf32>
    %148 = vector.shape_cast %147 : vector<1x8x128xf32> to vector<8x128xf32>
    %149 = vector.shape_cast %148 : vector<8x128xf32> to vector<8x1x128xf32>
    %150 = vector.extract_strided_slice %1 {offsets = [5, 0, 0], sizes = [1, 8, 128], strides = [1, 1, 1]} : vector<8x8x128xf32> to vector<1x8x128xf32>
    %151 = vector.shape_cast %150 : vector<1x8x128xf32> to vector<8x128xf32>
    %152 = vector.shape_cast %151 : vector<8x128xf32> to vector<1x8x128xf32>
    %153 = vector.broadcast %149 : vector<8x1x128xf32> to vector<8x8x128xf32>
    %154 = vector.broadcast %152 : vector<1x8x128xf32> to vector<8x8x128xf32>
    %155 = arith.mulf %153, %154 : vector<8x8x128xf32>
    %156 = arith.addf %146, %155 : vector<8x8x128xf32>
    %157 = vector.extract_strided_slice %97 {offsets = [6, 0, 0], sizes = [1, 8, 128], strides = [1, 1, 1]} : vector<8x8x128xf32> to vector<1x8x128xf32>
    %158 = vector.shape_cast %157 : vector<1x8x128xf32> to vector<8x128xf32>
    %159 = vector.shape_cast %158 : vector<8x128xf32> to vector<8x1x128xf32>
    %160 = vector.extract_strided_slice %1 {offsets = [6, 0, 0], sizes = [1, 8, 128], strides = [1, 1, 1]} : vector<8x8x128xf32> to vector<1x8x128xf32>
    %161 = vector.shape_cast %160 : vector<1x8x128xf32> to vector<8x128xf32>
    %162 = vector.shape_cast %161 : vector<8x128xf32> to vector<1x8x128xf32>
    %163 = vector.broadcast %159 : vector<8x1x128xf32> to vector<8x8x128xf32>
    %164 = vector.broadcast %162 : vector<1x8x128xf32> to vector<8x8x128xf32>
    %165 = arith.mulf %163, %164 : vector<8x8x128xf32>
    %166 = arith.addf %156, %165 : vector<8x8x128xf32>
    %167 = vector.extract_strided_slice %97 {offsets = [7, 0, 0], sizes = [1, 8, 128], strides = [1, 1, 1]} : vector<8x8x128xf32> to vector<1x8x128xf32>
    %168 = vector.shape_cast %167 : vector<1x8x128xf32> to vector<8x128xf32>
    %169 = vector.shape_cast %168 : vector<8x128xf32> to vector<8x1x128xf32>
    %170 = vector.extract_strided_slice %1 {offsets = [7, 0, 0], sizes = [1, 8, 128], strides = [1, 1, 1]} : vector<8x8x128xf32> to vector<1x8x128xf32>
    %171 = vector.shape_cast %170 : vector<1x8x128xf32> to vector<8x128xf32>
    %172 = vector.shape_cast %171 : vector<8x128xf32> to vector<1x8x128xf32>
    %173 = vector.broadcast %169 : vector<8x1x128xf32> to vector<8x8x128xf32>
    %174 = vector.broadcast %172 : vector<1x8x128xf32> to vector<8x8x128xf32>
    %175 = arith.mulf %173, %174 : vector<8x8x128xf32>
    %176 = arith.addf %166, %175 : vector<8x8x128xf32>
    %177 = vector.shape_cast %176 : vector<8x8x128xf32> to vector<64x128xf32>
    %178 = arith.mulf %177, %177 : vector<64x128xf32>
    %cst_14 = arith.constant dense<0.000000e+00> : vector<128xf32>
    %179 = vector.multi_reduction <add>, %178, %cst_14 [0] : vector<64x128xf32> to vector<128xf32>
    %180 = vector.shape_cast %179 : vector<128xf32> to vector<1x128xf32>
    %181 = arith.addf %90, %180 : vector<1x128xf32>
    %c1_15 = arith.constant 1 : index
    %c0_16 = arith.constant 0 : index
    %c0_17 = arith.constant 0 : index
    %182 = vector.load %arg2[%c1_15, %c0_16, %c0_17] : memref<8x32x64xf32, #tpu.memory_space<vmem>>, vector<1x32x64xf32>
    %183 = vector.shape_cast %182 : vector<1x32x64xf32> to vector<32x64xf32>
    %cst_18 = arith.constant dense<0.000000e+00> : vector<32x128xf32>
    %184 = tpu.matmul %183, %177, %cst_18 {dimension_numbers = #tpu.dot_dimension_numbers<[1], [0], [0], [1], [0, 0, 1, 1], [], []>} : vector<32x64xf32>, vector<64x128xf32>, vector<32x128xf32> -> vector<32x128xf32>
    %185 = arith.addf %94, %184 : vector<32x128xf32>
    %c0_19 = arith.constant 0 : index
    %c2 = arith.constant 2 : index
    %c0_20 = arith.constant 0 : index
    %186 = vector.load %arg1[%c0_19, %c2, %c0_20] : memref<8x24x128xf32, #tpu.memory_space<vmem>>, vector<8x1x128xf32>
    %187 = vector.broadcast %186 : vector<8x1x128xf32> to vector<8x8x128xf32>
    %188 = arith.mulf %187, %0 : vector<8x8x128xf32>
    %189 = vector.extract_strided_slice %188 {offsets = [0, 0, 0], sizes = [1, 8, 128], strides = [1, 1, 1]} : vector<8x8x128xf32> to vector<1x8x128xf32>
    %190 = vector.shape_cast %189 : vector<1x8x128xf32> to vector<8x128xf32>
    %191 = vector.shape_cast %190 : vector<8x128xf32> to vector<8x1x128xf32>
    %192 = vector.extract_strided_slice %1 {offsets = [0, 0, 0], sizes = [1, 8, 128], strides = [1, 1, 1]} : vector<8x8x128xf32> to vector<1x8x128xf32>
    %193 = vector.shape_cast %192 : vector<1x8x128xf32> to vector<8x128xf32>
    %194 = vector.shape_cast %193 : vector<8x128xf32> to vector<1x8x128xf32>
    %195 = vector.broadcast %191 : vector<8x1x128xf32> to vector<8x8x128xf32>
    %196 = vector.broadcast %194 : vector<1x8x128xf32> to vector<8x8x128xf32>
    %197 = arith.mulf %195, %196 : vector<8x8x128xf32>
    %198 = vector.extract_strided_slice %188 {offsets = [1, 0, 0], sizes = [1, 8, 128], strides = [1, 1, 1]} : vector<8x8x128xf32> to vector<1x8x128xf32>
    %199 = vector.shape_cast %198 : vector<1x8x128xf32> to vector<8x128xf32>
    %200 = vector.shape_cast %199 : vector<8x128xf32> to vector<8x1x128xf32>
    %201 = vector.extract_strided_slice %1 {offsets = [1, 0, 0], sizes = [1, 8, 128], strides = [1, 1, 1]} : vector<8x8x128xf32> to vector<1x8x128xf32>
    %202 = vector.shape_cast %201 : vector<1x8x128xf32> to vector<8x128xf32>
    %203 = vector.shape_cast %202 : vector<8x128xf32> to vector<1x8x128xf32>
    %204 = vector.broadcast %200 : vector<8x1x128xf32> to vector<8x8x128xf32>
    %205 = vector.broadcast %203 : vector<1x8x128xf32> to vector<8x8x128xf32>
    %206 = arith.mulf %204, %205 : vector<8x8x128xf32>
    %207 = arith.addf %197, %206 : vector<8x8x128xf32>
    %208 = vector.extract_strided_slice %188 {offsets = [2, 0, 0], sizes = [1, 8, 128], strides = [1, 1, 1]} : vector<8x8x128xf32> to vector<1x8x128xf32>
    %209 = vector.shape_cast %208 : vector<1x8x128xf32> to vector<8x128xf32>
    %210 = vector.shape_cast %209 : vector<8x128xf32> to vector<8x1x128xf32>
    %211 = vector.extract_strided_slice %1 {offsets = [2, 0, 0], sizes = [1, 8, 128], strides = [1, 1, 1]} : vector<8x8x128xf32> to vector<1x8x128xf32>
    %212 = vector.shape_cast %211 : vector<1x8x128xf32> to vector<8x128xf32>
    %213 = vector.shape_cast %212 : vector<8x128xf32> to vector<1x8x128xf32>
    %214 = vector.broadcast %210 : vector<8x1x128xf32> to vector<8x8x128xf32>
    %215 = vector.broadcast %213 : vector<1x8x128xf32> to vector<8x8x128xf32>
    %216 = arith.mulf %214, %215 : vector<8x8x128xf32>
    %217 = arith.addf %207, %216 : vector<8x8x128xf32>
    %218 = vector.extract_strided_slice %188 {offsets = [3, 0, 0], sizes = [1, 8, 128], strides = [1, 1, 1]} : vector<8x8x128xf32> to vector<1x8x128xf32>
    %219 = vector.shape_cast %218 : vector<1x8x128xf32> to vector<8x128xf32>
    %220 = vector.shape_cast %219 : vector<8x128xf32> to vector<8x1x128xf32>
    %221 = vector.extract_strided_slice %1 {offsets = [3, 0, 0], sizes = [1, 8, 128], strides = [1, 1, 1]} : vector<8x8x128xf32> to vector<1x8x128xf32>
    %222 = vector.shape_cast %221 : vector<1x8x128xf32> to vector<8x128xf32>
    %223 = vector.shape_cast %222 : vector<8x128xf32> to vector<1x8x128xf32>
    %224 = vector.broadcast %220 : vector<8x1x128xf32> to vector<8x8x128xf32>
    %225 = vector.broadcast %223 : vector<1x8x128xf32> to vector<8x8x128xf32>
    %226 = arith.mulf %224, %225 : vector<8x8x128xf32>
    %227 = arith.addf %217, %226 : vector<8x8x128xf32>
    %228 = vector.extract_strided_slice %188 {offsets = [4, 0, 0], sizes = [1, 8, 128], strides = [1, 1, 1]} : vector<8x8x128xf32> to vector<1x8x128xf32>
    %229 = vector.shape_cast %228 : vector<1x8x128xf32> to vector<8x128xf32>
    %230 = vector.shape_cast %229 : vector<8x128xf32> to vector<8x1x128xf32>
    %231 = vector.extract_strided_slice %1 {offsets = [4, 0, 0], sizes = [1, 8, 128], strides = [1, 1, 1]} : vector<8x8x128xf32> to vector<1x8x128xf32>
    %232 = vector.shape_cast %231 : vector<1x8x128xf32> to vector<8x128xf32>
    %233 = vector.shape_cast %232 : vector<8x128xf32> to vector<1x8x128xf32>
    %234 = vector.broadcast %230 : vector<8x1x128xf32> to vector<8x8x128xf32>
    %235 = vector.broadcast %233 : vector<1x8x128xf32> to vector<8x8x128xf32>
    %236 = arith.mulf %234, %235 : vector<8x8x128xf32>
    %237 = arith.addf %227, %236 : vector<8x8x128xf32>
    %238 = vector.extract_strided_slice %188 {offsets = [5, 0, 0], sizes = [1, 8, 128], strides = [1, 1, 1]} : vector<8x8x128xf32> to vector<1x8x128xf32>
    %239 = vector.shape_cast %238 : vector<1x8x128xf32> to vector<8x128xf32>
    %240 = vector.shape_cast %239 : vector<8x128xf32> to vector<8x1x128xf32>
    %241 = vector.extract_strided_slice %1 {offsets = [5, 0, 0], sizes = [1, 8, 128], strides = [1, 1, 1]} : vector<8x8x128xf32> to vector<1x8x128xf32>
    %242 = vector.shape_cast %241 : vector<1x8x128xf32> to vector<8x128xf32>
    %243 = vector.shape_cast %242 : vector<8x128xf32> to vector<1x8x128xf32>
    %244 = vector.broadcast %240 : vector<8x1x128xf32> to vector<8x8x128xf32>
    %245 = vector.broadcast %243 : vector<1x8x128xf32> to vector<8x8x128xf32>
    %246 = arith.mulf %244, %245 : vector<8x8x128xf32>
    %247 = arith.addf %237, %246 : vector<8x8x128xf32>
    %248 = vector.extract_strided_slice %188 {offsets = [6, 0, 0], sizes = [1, 8, 128], strides = [1, 1, 1]} : vector<8x8x128xf32> to vector<1x8x128xf32>
    %249 = vector.shape_cast %248 : vector<1x8x128xf32> to vector<8x128xf32>
    %250 = vector.shape_cast %249 : vector<8x128xf32> to vector<8x1x128xf32>
    %251 = vector.extract_strided_slice %1 {offsets = [6, 0, 0], sizes = [1, 8, 128], strides = [1, 1, 1]} : vector<8x8x128xf32> to vector<1x8x128xf32>
    %252 = vector.shape_cast %251 : vector<1x8x128xf32> to vector<8x128xf32>
    %253 = vector.shape_cast %252 : vector<8x128xf32> to vector<1x8x128xf32>
    %254 = vector.broadcast %250 : vector<8x1x128xf32> to vector<8x8x128xf32>
    %255 = vector.broadcast %253 : vector<1x8x128xf32> to vector<8x8x128xf32>
    %256 = arith.mulf %254, %255 : vector<8x8x128xf32>
    %257 = arith.addf %247, %256 : vector<8x8x128xf32>
    %258 = vector.extract_strided_slice %188 {offsets = [7, 0, 0], sizes = [1, 8, 128], strides = [1, 1, 1]} : vector<8x8x128xf32> to vector<1x8x128xf32>
    %259 = vector.shape_cast %258 : vector<1x8x128xf32> to vector<8x128xf32>
    %260 = vector.shape_cast %259 : vector<8x128xf32> to vector<8x1x128xf32>
    %261 = vector.extract_strided_slice %1 {offsets = [7, 0, 0], sizes = [1, 8, 128], strides = [1, 1, 1]} : vector<8x8x128xf32> to vector<1x8x128xf32>
    %262 = vector.shape_cast %261 : vector<1x8x128xf32> to vector<8x128xf32>
    %263 = vector.shape_cast %262 : vector<8x128xf32> to vector<1x8x128xf32>
    %264 = vector.broadcast %260 : vector<8x1x128xf32> to vector<8x8x128xf32>
    %265 = vector.broadcast %263 : vector<1x8x128xf32> to vector<8x8x128xf32>
    %266 = arith.mulf %264, %265 : vector<8x8x128xf32>
    %267 = arith.addf %257, %266 : vector<8x8x128xf32>
    %268 = vector.shape_cast %267 : vector<8x8x128xf32> to vector<64x128xf32>
    %269 = arith.mulf %268, %268 : vector<64x128xf32>
    %cst_21 = arith.constant dense<0.000000e+00> : vector<128xf32>
    %270 = vector.multi_reduction <add>, %269, %cst_21 [0] : vector<64x128xf32> to vector<128xf32>
    %271 = vector.shape_cast %270 : vector<128xf32> to vector<1x128xf32>
    %272 = arith.addf %181, %271 : vector<1x128xf32>
    %c2_22 = arith.constant 2 : index
    %c0_23 = arith.constant 0 : index
    %c0_24 = arith.constant 0 : index
    %273 = vector.load %arg2[%c2_22, %c0_23, %c0_24] : memref<8x32x64xf32, #tpu.memory_space<vmem>>, vector<1x32x64xf32>
    %274 = vector.shape_cast %273 : vector<1x32x64xf32> to vector<32x64xf32>
    %cst_25 = arith.constant dense<0.000000e+00> : vector<32x128xf32>
    %275 = tpu.matmul %274, %268, %cst_25 {dimension_numbers = #tpu.dot_dimension_numbers<[1], [0], [0], [1], [0, 0, 1, 1], [], []>} : vector<32x64xf32>, vector<64x128xf32>, vector<32x128xf32> -> vector<32x128xf32>
    %276 = arith.addf %185, %275 : vector<32x128xf32>
    %c0_26 = arith.constant 0 : index
    %c3 = arith.constant 3 : index
    %c0_27 = arith.constant 0 : index
    %277 = vector.load %arg1[%c0_26, %c3, %c0_27] : memref<8x24x128xf32, #tpu.memory_space<vmem>>, vector<8x1x128xf32>
    %278 = vector.broadcast %277 : vector<8x1x128xf32> to vector<8x8x128xf32>
    %279 = arith.mulf %278, %0 : vector<8x8x128xf32>
    %280 = vector.extract_strided_slice %279 {offsets = [0, 0, 0], sizes = [1, 8, 128], strides = [1, 1, 1]} : vector<8x8x128xf32> to vector<1x8x128xf32>
    %281 = vector.shape_cast %280 : vector<1x8x128xf32> to vector<8x128xf32>
    %282 = vector.shape_cast %281 : vector<8x128xf32> to vector<8x1x128xf32>
    %283 = vector.extract_strided_slice %1 {offsets = [0, 0, 0], sizes = [1, 8, 128], strides = [1, 1, 1]} : vector<8x8x128xf32> to vector<1x8x128xf32>
    %284 = vector.shape_cast %283 : vector<1x8x128xf32> to vector<8x128xf32>
    %285 = vector.shape_cast %284 : vector<8x128xf32> to vector<1x8x128xf32>
    %286 = vector.broadcast %282 : vector<8x1x128xf32> to vector<8x8x128xf32>
    %287 = vector.broadcast %285 : vector<1x8x128xf32> to vector<8x8x128xf32>
    %288 = arith.mulf %286, %287 : vector<8x8x128xf32>
    %289 = vector.extract_strided_slice %279 {offsets = [1, 0, 0], sizes = [1, 8, 128], strides = [1, 1, 1]} : vector<8x8x128xf32> to vector<1x8x128xf32>
    %290 = vector.shape_cast %289 : vector<1x8x128xf32> to vector<8x128xf32>
    %291 = vector.shape_cast %290 : vector<8x128xf32> to vector<8x1x128xf32>
    %292 = vector.extract_strided_slice %1 {offsets = [1, 0, 0], sizes = [1, 8, 128], strides = [1, 1, 1]} : vector<8x8x128xf32> to vector<1x8x128xf32>
    %293 = vector.shape_cast %292 : vector<1x8x128xf32> to vector<8x128xf32>
    %294 = vector.shape_cast %293 : vector<8x128xf32> to vector<1x8x128xf32>
    %295 = vector.broadcast %291 : vector<8x1x128xf32> to vector<8x8x128xf32>
    %296 = vector.broadcast %294 : vector<1x8x128xf32> to vector<8x8x128xf32>
    %297 = arith.mulf %295, %296 : vector<8x8x128xf32>
    %298 = arith.addf %288, %297 : vector<8x8x128xf32>
    %299 = vector.extract_strided_slice %279 {offsets = [2, 0, 0], sizes = [1, 8, 128], strides = [1, 1, 1]} : vector<8x8x128xf32> to vector<1x8x128xf32>
    %300 = vector.shape_cast %299 : vector<1x8x128xf32> to vector<8x128xf32>
    %301 = vector.shape_cast %300 : vector<8x128xf32> to vector<8x1x128xf32>
    %302 = vector.extract_strided_slice %1 {offsets = [2, 0, 0], sizes = [1, 8, 128], strides = [1, 1, 1]} : vector<8x8x128xf32> to vector<1x8x128xf32>
    %303 = vector.shape_cast %302 : vector<1x8x128xf32> to vector<8x128xf32>
    %304 = vector.shape_cast %303 : vector<8x128xf32> to vector<1x8x128xf32>
    %305 = vector.broadcast %301 : vector<8x1x128xf32> to vector<8x8x128xf32>
    %306 = vector.broadcast %304 : vector<1x8x128xf32> to vector<8x8x128xf32>
    %307 = arith.mulf %305, %306 : vector<8x8x128xf32>
    %308 = arith.addf %298, %307 : vector<8x8x128xf32>
    %309 = vector.extract_strided_slice %279 {offsets = [3, 0, 0], sizes = [1, 8, 128], strides = [1, 1, 1]} : vector<8x8x128xf32> to vector<1x8x128xf32>
    %310 = vector.shape_cast %309 : vector<1x8x128xf32> to vector<8x128xf32>
    %311 = vector.shape_cast %310 : vector<8x128xf32> to vector<8x1x128xf32>
    %312 = vector.extract_strided_slice %1 {offsets = [3, 0, 0], sizes = [1, 8, 128], strides = [1, 1, 1]} : vector<8x8x128xf32> to vector<1x8x128xf32>
    %313 = vector.shape_cast %312 : vector<1x8x128xf32> to vector<8x128xf32>
    %314 = vector.shape_cast %313 : vector<8x128xf32> to vector<1x8x128xf32>
    %315 = vector.broadcast %311 : vector<8x1x128xf32> to vector<8x8x128xf32>
    %316 = vector.broadcast %314 : vector<1x8x128xf32> to vector<8x8x128xf32>
    %317 = arith.mulf %315, %316 : vector<8x8x128xf32>
    %318 = arith.addf %308, %317 : vector<8x8x128xf32>
    %319 = vector.extract_strided_slice %279 {offsets = [4, 0, 0], sizes = [1, 8, 128], strides = [1, 1, 1]} : vector<8x8x128xf32> to vector<1x8x128xf32>
    %320 = vector.shape_cast %319 : vector<1x8x128xf32> to vector<8x128xf32>
    %321 = vector.shape_cast %320 : vector<8x128xf32> to vector<8x1x128xf32>
    %322 = vector.extract_strided_slice %1 {offsets = [4, 0, 0], sizes = [1, 8, 128], strides = [1, 1, 1]} : vector<8x8x128xf32> to vector<1x8x128xf32>
    %323 = vector.shape_cast %322 : vector<1x8x128xf32> to vector<8x128xf32>
    %324 = vector.shape_cast %323 : vector<8x128xf32> to vector<1x8x128xf32>
    %325 = vector.broadcast %321 : vector<8x1x128xf32> to vector<8x8x128xf32>
    %326 = vector.broadcast %324 : vector<1x8x128xf32> to vector<8x8x128xf32>
    %327 = arith.mulf %325, %326 : vector<8x8x128xf32>
    %328 = arith.addf %318, %327 : vector<8x8x128xf32>
    %329 = vector.extract_strided_slice %279 {offsets = [5, 0, 0], sizes = [1, 8, 128], strides = [1, 1, 1]} : vector<8x8x128xf32> to vector<1x8x128xf32>
    %330 = vector.shape_cast %329 : vector<1x8x128xf32> to vector<8x128xf32>
    %331 = vector.shape_cast %330 : vector<8x128xf32> to vector<8x1x128xf32>
    %332 = vector.extract_strided_slice %1 {offsets = [5, 0, 0], sizes = [1, 8, 128], strides = [1, 1, 1]} : vector<8x8x128xf32> to vector<1x8x128xf32>
    %333 = vector.shape_cast %332 : vector<1x8x128xf32> to vector<8x128xf32>
    %334 = vector.shape_cast %333 : vector<8x128xf32> to vector<1x8x128xf32>
    %335 = vector.broadcast %331 : vector<8x1x128xf32> to vector<8x8x128xf32>
    %336 = vector.broadcast %334 : vector<1x8x128xf32> to vector<8x8x128xf32>
    %337 = arith.mulf %335, %336 : vector<8x8x128xf32>
    %338 = arith.addf %328, %337 : vector<8x8x128xf32>
    %339 = vector.extract_strided_slice %279 {offsets = [6, 0, 0], sizes = [1, 8, 128], strides = [1, 1, 1]} : vector<8x8x128xf32> to vector<1x8x128xf32>
    %340 = vector.shape_cast %339 : vector<1x8x128xf32> to vector<8x128xf32>
    %341 = vector.shape_cast %340 : vector<8x128xf32> to vector<8x1x128xf32>
    %342 = vector.extract_strided_slice %1 {offsets = [6, 0, 0], sizes = [1, 8, 128], strides = [1, 1, 1]} : vector<8x8x128xf32> to vector<1x8x128xf32>
    %343 = vector.shape_cast %342 : vector<1x8x128xf32> to vector<8x128xf32>
    %344 = vector.shape_cast %343 : vector<8x128xf32> to vector<1x8x128xf32>
    %345 = vector.broadcast %341 : vector<8x1x128xf32> to vector<8x8x128xf32>
    %346 = vector.broadcast %344 : vector<1x8x128xf32> to vector<8x8x128xf32>
    %347 = arith.mulf %345, %346 : vector<8x8x128xf32>
    %348 = arith.addf %338, %347 : vector<8x8x128xf32>
    %349 = vector.extract_strided_slice %279 {offsets = [7, 0, 0], sizes = [1, 8, 128], strides = [1, 1, 1]} : vector<8x8x128xf32> to vector<1x8x128xf32>
    %350 = vector.shape_cast %349 : vector<1x8x128xf32> to vector<8x128xf32>
    %351 = vector.shape_cast %350 : vector<8x128xf32> to vector<8x1x128xf32>
    %352 = vector.extract_strided_slice %1 {offsets = [7, 0, 0], sizes = [1, 8, 128], strides = [1, 1, 1]} : vector<8x8x128xf32> to vector<1x8x128xf32>
    %353 = vector.shape_cast %352 : vector<1x8x128xf32> to vector<8x128xf32>
    %354 = vector.shape_cast %353 : vector<8x128xf32> to vector<1x8x128xf32>
    %355 = vector.broadcast %351 : vector<8x1x128xf32> to vector<8x8x128xf32>
    %356 = vector.broadcast %354 : vector<1x8x128xf32> to vector<8x8x128xf32>
    %357 = arith.mulf %355, %356 : vector<8x8x128xf32>
    %358 = arith.addf %348, %357 : vector<8x8x128xf32>
    %359 = vector.shape_cast %358 : vector<8x8x128xf32> to vector<64x128xf32>
    %360 = arith.mulf %359, %359 : vector<64x128xf32>
    %cst_28 = arith.constant dense<0.000000e+00> : vector<128xf32>
    %361 = vector.multi_reduction <add>, %360, %cst_28 [0] : vector<64x128xf32> to vector<128xf32>
    %362 = vector.shape_cast %361 : vector<128xf32> to vector<1x128xf32>
    %363 = arith.addf %272, %362 : vector<1x128xf32>
    %c3_29 = arith.constant 3 : index
    %c0_30 = arith.constant 0 : index
    %c0_31 = arith.constant 0 : index
    %364 = vector.load %arg2[%c3_29, %c0_30, %c0_31] : memref<8x32x64xf32, #tpu.memory_space<vmem>>, vector<1x32x64xf32>
    %365 = vector.shape_cast %364 : vector<1x32x64xf32> to vector<32x64xf32>
    %cst_32 = arith.constant dense<0.000000e+00> : vector<32x128xf32>
    %366 = tpu.matmul %365, %359, %cst_32 {dimension_numbers = #tpu.dot_dimension_numbers<[1], [0], [0], [1], [0, 0, 1, 1], [], []>} : vector<32x64xf32>, vector<64x128xf32>, vector<32x128xf32> -> vector<32x128xf32>
    %367 = arith.addf %276, %366 : vector<32x128xf32>
    %c0_33 = arith.constant 0 : index
    %c4 = arith.constant 4 : index
    %c0_34 = arith.constant 0 : index
    %368 = vector.load %arg1[%c0_33, %c4, %c0_34] : memref<8x24x128xf32, #tpu.memory_space<vmem>>, vector<8x1x128xf32>
    %369 = vector.broadcast %368 : vector<8x1x128xf32> to vector<8x8x128xf32>
    %370 = arith.mulf %369, %0 : vector<8x8x128xf32>
    %371 = vector.extract_strided_slice %370 {offsets = [0, 0, 0], sizes = [1, 8, 128], strides = [1, 1, 1]} : vector<8x8x128xf32> to vector<1x8x128xf32>
    %372 = vector.shape_cast %371 : vector<1x8x128xf32> to vector<8x128xf32>
    %373 = vector.shape_cast %372 : vector<8x128xf32> to vector<8x1x128xf32>
    %374 = vector.extract_strided_slice %1 {offsets = [0, 0, 0], sizes = [1, 8, 128], strides = [1, 1, 1]} : vector<8x8x128xf32> to vector<1x8x128xf32>
    %375 = vector.shape_cast %374 : vector<1x8x128xf32> to vector<8x128xf32>
    %376 = vector.shape_cast %375 : vector<8x128xf32> to vector<1x8x128xf32>
    %377 = vector.broadcast %373 : vector<8x1x128xf32> to vector<8x8x128xf32>
    %378 = vector.broadcast %376 : vector<1x8x128xf32> to vector<8x8x128xf32>
    %379 = arith.mulf %377, %378 : vector<8x8x128xf32>
    %380 = vector.extract_strided_slice %370 {offsets = [1, 0, 0], sizes = [1, 8, 128], strides = [1, 1, 1]} : vector<8x8x128xf32> to vector<1x8x128xf32>
    %381 = vector.shape_cast %380 : vector<1x8x128xf32> to vector<8x128xf32>
    %382 = vector.shape_cast %381 : vector<8x128xf32> to vector<8x1x128xf32>
    %383 = vector.extract_strided_slice %1 {offsets = [1, 0, 0], sizes = [1, 8, 128], strides = [1, 1, 1]} : vector<8x8x128xf32> to vector<1x8x128xf32>
    %384 = vector.shape_cast %383 : vector<1x8x128xf32> to vector<8x128xf32>
    %385 = vector.shape_cast %384 : vector<8x128xf32> to vector<1x8x128xf32>
    %386 = vector.broadcast %382 : vector<8x1x128xf32> to vector<8x8x128xf32>
    %387 = vector.broadcast %385 : vector<1x8x128xf32> to vector<8x8x128xf32>
    %388 = arith.mulf %386, %387 : vector<8x8x128xf32>
    %389 = arith.addf %379, %388 : vector<8x8x128xf32>
    %390 = vector.extract_strided_slice %370 {offsets = [2, 0, 0], sizes = [1, 8, 128], strides = [1, 1, 1]} : vector<8x8x128xf32> to vector<1x8x128xf32>
    %391 = vector.shape_cast %390 : vector<1x8x128xf32> to vector<8x128xf32>
    %392 = vector.shape_cast %391 : vector<8x128xf32> to vector<8x1x128xf32>
    %393 = vector.extract_strided_slice %1 {offsets = [2, 0, 0], sizes = [1, 8, 128], strides = [1, 1, 1]} : vector<8x8x128xf32> to vector<1x8x128xf32>
    %394 = vector.shape_cast %393 : vector<1x8x128xf32> to vector<8x128xf32>
    %395 = vector.shape_cast %394 : vector<8x128xf32> to vector<1x8x128xf32>
    %396 = vector.broadcast %392 : vector<8x1x128xf32> to vector<8x8x128xf32>
    %397 = vector.broadcast %395 : vector<1x8x128xf32> to vector<8x8x128xf32>
    %398 = arith.mulf %396, %397 : vector<8x8x128xf32>
    %399 = arith.addf %389, %398 : vector<8x8x128xf32>
    %400 = vector.extract_strided_slice %370 {offsets = [3, 0, 0], sizes = [1, 8, 128], strides = [1, 1, 1]} : vector<8x8x128xf32> to vector<1x8x128xf32>
    %401 = vector.shape_cast %400 : vector<1x8x128xf32> to vector<8x128xf32>
    %402 = vector.shape_cast %401 : vector<8x128xf32> to vector<8x1x128xf32>
    %403 = vector.extract_strided_slice %1 {offsets = [3, 0, 0], sizes = [1, 8, 128], strides = [1, 1, 1]} : vector<8x8x128xf32> to vector<1x8x128xf32>
    %404 = vector.shape_cast %403 : vector<1x8x128xf32> to vector<8x128xf32>
    %405 = vector.shape_cast %404 : vector<8x128xf32> to vector<1x8x128xf32>
    %406 = vector.broadcast %402 : vector<8x1x128xf32> to vector<8x8x128xf32>
    %407 = vector.broadcast %405 : vector<1x8x128xf32> to vector<8x8x128xf32>
    %408 = arith.mulf %406, %407 : vector<8x8x128xf32>
    %409 = arith.addf %399, %408 : vector<8x8x128xf32>
    %410 = vector.extract_strided_slice %370 {offsets = [4, 0, 0], sizes = [1, 8, 128], strides = [1, 1, 1]} : vector<8x8x128xf32> to vector<1x8x128xf32>
    %411 = vector.shape_cast %410 : vector<1x8x128xf32> to vector<8x128xf32>
    %412 = vector.shape_cast %411 : vector<8x128xf32> to vector<8x1x128xf32>
    %413 = vector.extract_strided_slice %1 {offsets = [4, 0, 0], sizes = [1, 8, 128], strides = [1, 1, 1]} : vector<8x8x128xf32> to vector<1x8x128xf32>
    %414 = vector.shape_cast %413 : vector<1x8x128xf32> to vector<8x128xf32>
    %415 = vector.shape_cast %414 : vector<8x128xf32> to vector<1x8x128xf32>
    %416 = vector.broadcast %412 : vector<8x1x128xf32> to vector<8x8x128xf32>
    %417 = vector.broadcast %415 : vector<1x8x128xf32> to vector<8x8x128xf32>
    %418 = arith.mulf %416, %417 : vector<8x8x128xf32>
    %419 = arith.addf %409, %418 : vector<8x8x128xf32>
    %420 = vector.extract_strided_slice %370 {offsets = [5, 0, 0], sizes = [1, 8, 128], strides = [1, 1, 1]} : vector<8x8x128xf32> to vector<1x8x128xf32>
    %421 = vector.shape_cast %420 : vector<1x8x128xf32> to vector<8x128xf32>
    %422 = vector.shape_cast %421 : vector<8x128xf32> to vector<8x1x128xf32>
    %423 = vector.extract_strided_slice %1 {offsets = [5, 0, 0], sizes = [1, 8, 128], strides = [1, 1, 1]} : vector<8x8x128xf32> to vector<1x8x128xf32>
    %424 = vector.shape_cast %423 : vector<1x8x128xf32> to vector<8x128xf32>
    %425 = vector.shape_cast %424 : vector<8x128xf32> to vector<1x8x128xf32>
    %426 = vector.broadcast %422 : vector<8x1x128xf32> to vector<8x8x128xf32>
    %427 = vector.broadcast %425 : vector<1x8x128xf32> to vector<8x8x128xf32>
    %428 = arith.mulf %426, %427 : vector<8x8x128xf32>
    %429 = arith.addf %419, %428 : vector<8x8x128xf32>
    %430 = vector.extract_strided_slice %370 {offsets = [6, 0, 0], sizes = [1, 8, 128], strides = [1, 1, 1]} : vector<8x8x128xf32> to vector<1x8x128xf32>
    %431 = vector.shape_cast %430 : vector<1x8x128xf32> to vector<8x128xf32>
    %432 = vector.shape_cast %431 : vector<8x128xf32> to vector<8x1x128xf32>
    %433 = vector.extract_strided_slice %1 {offsets = [6, 0, 0], sizes = [1, 8, 128], strides = [1, 1, 1]} : vector<8x8x128xf32> to vector<1x8x128xf32>
    %434 = vector.shape_cast %433 : vector<1x8x128xf32> to vector<8x128xf32>
    %435 = vector.shape_cast %434 : vector<8x128xf32> to vector<1x8x128xf32>
    %436 = vector.broadcast %432 : vector<8x1x128xf32> to vector<8x8x128xf32>
    %437 = vector.broadcast %435 : vector<1x8x128xf32> to vector<8x8x128xf32>
    %438 = arith.mulf %436, %437 : vector<8x8x128xf32>
    %439 = arith.addf %429, %438 : vector<8x8x128xf32>
    %440 = vector.extract_strided_slice %370 {offsets = [7, 0, 0], sizes = [1, 8, 128], strides = [1, 1, 1]} : vector<8x8x128xf32> to vector<1x8x128xf32>
    %441 = vector.shape_cast %440 : vector<1x8x128xf32> to vector<8x128xf32>
    %442 = vector.shape_cast %441 : vector<8x128xf32> to vector<8x1x128xf32>
    %443 = vector.extract_strided_slice %1 {offsets = [7, 0, 0], sizes = [1, 8, 128], strides = [1, 1, 1]} : vector<8x8x128xf32> to vector<1x8x128xf32>
    %444 = vector.shape_cast %443 : vector<1x8x128xf32> to vector<8x128xf32>
    %445 = vector.shape_cast %444 : vector<8x128xf32> to vector<1x8x128xf32>
    %446 = vector.broadcast %442 : vector<8x1x128xf32> to vector<8x8x128xf32>
    %447 = vector.broadcast %445 : vector<1x8x128xf32> to vector<8x8x128xf32>
    %448 = arith.mulf %446, %447 : vector<8x8x128xf32>
    %449 = arith.addf %439, %448 : vector<8x8x128xf32>
    %450 = vector.shape_cast %449 : vector<8x8x128xf32> to vector<64x128xf32>
    %451 = arith.mulf %450, %450 : vector<64x128xf32>
    %cst_35 = arith.constant dense<0.000000e+00> : vector<128xf32>
    %452 = vector.multi_reduction <add>, %451, %cst_35 [0] : vector<64x128xf32> to vector<128xf32>
    %453 = vector.shape_cast %452 : vector<128xf32> to vector<1x128xf32>
    %454 = arith.addf %363, %453 : vector<1x128xf32>
    %c4_36 = arith.constant 4 : index
    %c0_37 = arith.constant 0 : index
    %c0_38 = arith.constant 0 : index
    %455 = vector.load %arg2[%c4_36, %c0_37, %c0_38] : memref<8x32x64xf32, #tpu.memory_space<vmem>>, vector<1x32x64xf32>
    %456 = vector.shape_cast %455 : vector<1x32x64xf32> to vector<32x64xf32>
    %cst_39 = arith.constant dense<0.000000e+00> : vector<32x128xf32>
    %457 = tpu.matmul %456, %450, %cst_39 {dimension_numbers = #tpu.dot_dimension_numbers<[1], [0], [0], [1], [0, 0, 1, 1], [], []>} : vector<32x64xf32>, vector<64x128xf32>, vector<32x128xf32> -> vector<32x128xf32>
    %458 = arith.addf %367, %457 : vector<32x128xf32>
    %c0_40 = arith.constant 0 : index
    %c5 = arith.constant 5 : index
    %c0_41 = arith.constant 0 : index
    %459 = vector.load %arg1[%c0_40, %c5, %c0_41] : memref<8x24x128xf32, #tpu.memory_space<vmem>>, vector<8x1x128xf32>
    %460 = vector.broadcast %459 : vector<8x1x128xf32> to vector<8x8x128xf32>
    %461 = arith.mulf %460, %0 : vector<8x8x128xf32>
    %462 = vector.extract_strided_slice %461 {offsets = [0, 0, 0], sizes = [1, 8, 128], strides = [1, 1, 1]} : vector<8x8x128xf32> to vector<1x8x128xf32>
    %463 = vector.shape_cast %462 : vector<1x8x128xf32> to vector<8x128xf32>
    %464 = vector.shape_cast %463 : vector<8x128xf32> to vector<8x1x128xf32>
    %465 = vector.extract_strided_slice %1 {offsets = [0, 0, 0], sizes = [1, 8, 128], strides = [1, 1, 1]} : vector<8x8x128xf32> to vector<1x8x128xf32>
    %466 = vector.shape_cast %465 : vector<1x8x128xf32> to vector<8x128xf32>
    %467 = vector.shape_cast %466 : vector<8x128xf32> to vector<1x8x128xf32>
    %468 = vector.broadcast %464 : vector<8x1x128xf32> to vector<8x8x128xf32>
    %469 = vector.broadcast %467 : vector<1x8x128xf32> to vector<8x8x128xf32>
    %470 = arith.mulf %468, %469 : vector<8x8x128xf32>
    %471 = vector.extract_strided_slice %461 {offsets = [1, 0, 0], sizes = [1, 8, 128], strides = [1, 1, 1]} : vector<8x8x128xf32> to vector<1x8x128xf32>
    %472 = vector.shape_cast %471 : vector<1x8x128xf32> to vector<8x128xf32>
    %473 = vector.shape_cast %472 : vector<8x128xf32> to vector<8x1x128xf32>
    %474 = vector.extract_strided_slice %1 {offsets = [1, 0, 0], sizes = [1, 8, 128], strides = [1, 1, 1]} : vector<8x8x128xf32> to vector<1x8x128xf32>
    %475 = vector.shape_cast %474 : vector<1x8x128xf32> to vector<8x128xf32>
    %476 = vector.shape_cast %475 : vector<8x128xf32> to vector<1x8x128xf32>
    %477 = vector.broadcast %473 : vector<8x1x128xf32> to vector<8x8x128xf32>
    %478 = vector.broadcast %476 : vector<1x8x128xf32> to vector<8x8x128xf32>
    %479 = arith.mulf %477, %478 : vector<8x8x128xf32>
    %480 = arith.addf %470, %479 : vector<8x8x128xf32>
    %481 = vector.extract_strided_slice %461 {offsets = [2, 0, 0], sizes = [1, 8, 128], strides = [1, 1, 1]} : vector<8x8x128xf32> to vector<1x8x128xf32>
    %482 = vector.shape_cast %481 : vector<1x8x128xf32> to vector<8x128xf32>
    %483 = vector.shape_cast %482 : vector<8x128xf32> to vector<8x1x128xf32>
    %484 = vector.extract_strided_slice %1 {offsets = [2, 0, 0], sizes = [1, 8, 128], strides = [1, 1, 1]} : vector<8x8x128xf32> to vector<1x8x128xf32>
    %485 = vector.shape_cast %484 : vector<1x8x128xf32> to vector<8x128xf32>
    %486 = vector.shape_cast %485 : vector<8x128xf32> to vector<1x8x128xf32>
    %487 = vector.broadcast %483 : vector<8x1x128xf32> to vector<8x8x128xf32>
    %488 = vector.broadcast %486 : vector<1x8x128xf32> to vector<8x8x128xf32>
    %489 = arith.mulf %487, %488 : vector<8x8x128xf32>
    %490 = arith.addf %480, %489 : vector<8x8x128xf32>
    %491 = vector.extract_strided_slice %461 {offsets = [3, 0, 0], sizes = [1, 8, 128], strides = [1, 1, 1]} : vector<8x8x128xf32> to vector<1x8x128xf32>
    %492 = vector.shape_cast %491 : vector<1x8x128xf32> to vector<8x128xf32>
    %493 = vector.shape_cast %492 : vector<8x128xf32> to vector<8x1x128xf32>
    %494 = vector.extract_strided_slice %1 {offsets = [3, 0, 0], sizes = [1, 8, 128], strides = [1, 1, 1]} : vector<8x8x128xf32> to vector<1x8x128xf32>
    %495 = vector.shape_cast %494 : vector<1x8x128xf32> to vector<8x128xf32>
    %496 = vector.shape_cast %495 : vector<8x128xf32> to vector<1x8x128xf32>
    %497 = vector.broadcast %493 : vector<8x1x128xf32> to vector<8x8x128xf32>
    %498 = vector.broadcast %496 : vector<1x8x128xf32> to vector<8x8x128xf32>
    %499 = arith.mulf %497, %498 : vector<8x8x128xf32>
    %500 = arith.addf %490, %499 : vector<8x8x128xf32>
    %501 = vector.extract_strided_slice %461 {offsets = [4, 0, 0], sizes = [1, 8, 128], strides = [1, 1, 1]} : vector<8x8x128xf32> to vector<1x8x128xf32>
    %502 = vector.shape_cast %501 : vector<1x8x128xf32> to vector<8x128xf32>
    %503 = vector.shape_cast %502 : vector<8x128xf32> to vector<8x1x128xf32>
    %504 = vector.extract_strided_slice %1 {offsets = [4, 0, 0], sizes = [1, 8, 128], strides = [1, 1, 1]} : vector<8x8x128xf32> to vector<1x8x128xf32>
    %505 = vector.shape_cast %504 : vector<1x8x128xf32> to vector<8x128xf32>
    %506 = vector.shape_cast %505 : vector<8x128xf32> to vector<1x8x128xf32>
    %507 = vector.broadcast %503 : vector<8x1x128xf32> to vector<8x8x128xf32>
    %508 = vector.broadcast %506 : vector<1x8x128xf32> to vector<8x8x128xf32>
    %509 = arith.mulf %507, %508 : vector<8x8x128xf32>
    %510 = arith.addf %500, %509 : vector<8x8x128xf32>
    %511 = vector.extract_strided_slice %461 {offsets = [5, 0, 0], sizes = [1, 8, 128], strides = [1, 1, 1]} : vector<8x8x128xf32> to vector<1x8x128xf32>
    %512 = vector.shape_cast %511 : vector<1x8x128xf32> to vector<8x128xf32>
    %513 = vector.shape_cast %512 : vector<8x128xf32> to vector<8x1x128xf32>
    %514 = vector.extract_strided_slice %1 {offsets = [5, 0, 0], sizes = [1, 8, 128], strides = [1, 1, 1]} : vector<8x8x128xf32> to vector<1x8x128xf32>
    %515 = vector.shape_cast %514 : vector<1x8x128xf32> to vector<8x128xf32>
    %516 = vector.shape_cast %515 : vector<8x128xf32> to vector<1x8x128xf32>
    %517 = vector.broadcast %513 : vector<8x1x128xf32> to vector<8x8x128xf32>
    %518 = vector.broadcast %516 : vector<1x8x128xf32> to vector<8x8x128xf32>
    %519 = arith.mulf %517, %518 : vector<8x8x128xf32>
    %520 = arith.addf %510, %519 : vector<8x8x128xf32>
    %521 = vector.extract_strided_slice %461 {offsets = [6, 0, 0], sizes = [1, 8, 128], strides = [1, 1, 1]} : vector<8x8x128xf32> to vector<1x8x128xf32>
    %522 = vector.shape_cast %521 : vector<1x8x128xf32> to vector<8x128xf32>
    %523 = vector.shape_cast %522 : vector<8x128xf32> to vector<8x1x128xf32>
    %524 = vector.extract_strided_slice %1 {offsets = [6, 0, 0], sizes = [1, 8, 128], strides = [1, 1, 1]} : vector<8x8x128xf32> to vector<1x8x128xf32>
    %525 = vector.shape_cast %524 : vector<1x8x128xf32> to vector<8x128xf32>
    %526 = vector.shape_cast %525 : vector<8x128xf32> to vector<1x8x128xf32>
    %527 = vector.broadcast %523 : vector<8x1x128xf32> to vector<8x8x128xf32>
    %528 = vector.broadcast %526 : vector<1x8x128xf32> to vector<8x8x128xf32>
    %529 = arith.mulf %527, %528 : vector<8x8x128xf32>
    %530 = arith.addf %520, %529 : vector<8x8x128xf32>
    %531 = vector.extract_strided_slice %461 {offsets = [7, 0, 0], sizes = [1, 8, 128], strides = [1, 1, 1]} : vector<8x8x128xf32> to vector<1x8x128xf32>
    %532 = vector.shape_cast %531 : vector<1x8x128xf32> to vector<8x128xf32>
    %533 = vector.shape_cast %532 : vector<8x128xf32> to vector<8x1x128xf32>
    %534 = vector.extract_strided_slice %1 {offsets = [7, 0, 0], sizes = [1, 8, 128], strides = [1, 1, 1]} : vector<8x8x128xf32> to vector<1x8x128xf32>
    %535 = vector.shape_cast %534 : vector<1x8x128xf32> to vector<8x128xf32>
    %536 = vector.shape_cast %535 : vector<8x128xf32> to vector<1x8x128xf32>
    %537 = vector.broadcast %533 : vector<8x1x128xf32> to vector<8x8x128xf32>
    %538 = vector.broadcast %536 : vector<1x8x128xf32> to vector<8x8x128xf32>
    %539 = arith.mulf %537, %538 : vector<8x8x128xf32>
    %540 = arith.addf %530, %539 : vector<8x8x128xf32>
    %541 = vector.shape_cast %540 : vector<8x8x128xf32> to vector<64x128xf32>
    %542 = arith.mulf %541, %541 : vector<64x128xf32>
    %cst_42 = arith.constant dense<0.000000e+00> : vector<128xf32>
    %543 = vector.multi_reduction <add>, %542, %cst_42 [0] : vector<64x128xf32> to vector<128xf32>
    %544 = vector.shape_cast %543 : vector<128xf32> to vector<1x128xf32>
    %545 = arith.addf %454, %544 : vector<1x128xf32>
    %c5_43 = arith.constant 5 : index
    %c0_44 = arith.constant 0 : index
    %c0_45 = arith.constant 0 : index
    %546 = vector.load %arg2[%c5_43, %c0_44, %c0_45] : memref<8x32x64xf32, #tpu.memory_space<vmem>>, vector<1x32x64xf32>
    %547 = vector.shape_cast %546 : vector<1x32x64xf32> to vector<32x64xf32>
    %cst_46 = arith.constant dense<0.000000e+00> : vector<32x128xf32>
    %548 = tpu.matmul %547, %541, %cst_46 {dimension_numbers = #tpu.dot_dimension_numbers<[1], [0], [0], [1], [0, 0, 1, 1], [], []>} : vector<32x64xf32>, vector<64x128xf32>, vector<32x128xf32> -> vector<32x128xf32>
    %549 = arith.addf %458, %548 : vector<32x128xf32>
    %c0_47 = arith.constant 0 : index
    %c6 = arith.constant 6 : index
    %c0_48 = arith.constant 0 : index
    %550 = vector.load %arg1[%c0_47, %c6, %c0_48] : memref<8x24x128xf32, #tpu.memory_space<vmem>>, vector<8x1x128xf32>
    %551 = vector.broadcast %550 : vector<8x1x128xf32> to vector<8x8x128xf32>
    %552 = arith.mulf %551, %0 : vector<8x8x128xf32>
    %553 = vector.extract_strided_slice %552 {offsets = [0, 0, 0], sizes = [1, 8, 128], strides = [1, 1, 1]} : vector<8x8x128xf32> to vector<1x8x128xf32>
    %554 = vector.shape_cast %553 : vector<1x8x128xf32> to vector<8x128xf32>
    %555 = vector.shape_cast %554 : vector<8x128xf32> to vector<8x1x128xf32>
    %556 = vector.extract_strided_slice %1 {offsets = [0, 0, 0], sizes = [1, 8, 128], strides = [1, 1, 1]} : vector<8x8x128xf32> to vector<1x8x128xf32>
    %557 = vector.shape_cast %556 : vector<1x8x128xf32> to vector<8x128xf32>
    %558 = vector.shape_cast %557 : vector<8x128xf32> to vector<1x8x128xf32>
    %559 = vector.broadcast %555 : vector<8x1x128xf32> to vector<8x8x128xf32>
    %560 = vector.broadcast %558 : vector<1x8x128xf32> to vector<8x8x128xf32>
    %561 = arith.mulf %559, %560 : vector<8x8x128xf32>
    %562 = vector.extract_strided_slice %552 {offsets = [1, 0, 0], sizes = [1, 8, 128], strides = [1, 1, 1]} : vector<8x8x128xf32> to vector<1x8x128xf32>
    %563 = vector.shape_cast %562 : vector<1x8x128xf32> to vector<8x128xf32>
    %564 = vector.shape_cast %563 : vector<8x128xf32> to vector<8x1x128xf32>
    %565 = vector.extract_strided_slice %1 {offsets = [1, 0, 0], sizes = [1, 8, 128], strides = [1, 1, 1]} : vector<8x8x128xf32> to vector<1x8x128xf32>
    %566 = vector.shape_cast %565 : vector<1x8x128xf32> to vector<8x128xf32>
    %567 = vector.shape_cast %566 : vector<8x128xf32> to vector<1x8x128xf32>
    %568 = vector.broadcast %564 : vector<8x1x128xf32> to vector<8x8x128xf32>
    %569 = vector.broadcast %567 : vector<1x8x128xf32> to vector<8x8x128xf32>
    %570 = arith.mulf %568, %569 : vector<8x8x128xf32>
    %571 = arith.addf %561, %570 : vector<8x8x128xf32>
    %572 = vector.extract_strided_slice %552 {offsets = [2, 0, 0], sizes = [1, 8, 128], strides = [1, 1, 1]} : vector<8x8x128xf32> to vector<1x8x128xf32>
    %573 = vector.shape_cast %572 : vector<1x8x128xf32> to vector<8x128xf32>
    %574 = vector.shape_cast %573 : vector<8x128xf32> to vector<8x1x128xf32>
    %575 = vector.extract_strided_slice %1 {offsets = [2, 0, 0], sizes = [1, 8, 128], strides = [1, 1, 1]} : vector<8x8x128xf32> to vector<1x8x128xf32>
    %576 = vector.shape_cast %575 : vector<1x8x128xf32> to vector<8x128xf32>
    %577 = vector.shape_cast %576 : vector<8x128xf32> to vector<1x8x128xf32>
    %578 = vector.broadcast %574 : vector<8x1x128xf32> to vector<8x8x128xf32>
    %579 = vector.broadcast %577 : vector<1x8x128xf32> to vector<8x8x128xf32>
    %580 = arith.mulf %578, %579 : vector<8x8x128xf32>
    %581 = arith.addf %571, %580 : vector<8x8x128xf32>
    %582 = vector.extract_strided_slice %552 {offsets = [3, 0, 0], sizes = [1, 8, 128], strides = [1, 1, 1]} : vector<8x8x128xf32> to vector<1x8x128xf32>
    %583 = vector.shape_cast %582 : vector<1x8x128xf32> to vector<8x128xf32>
    %584 = vector.shape_cast %583 : vector<8x128xf32> to vector<8x1x128xf32>
    %585 = vector.extract_strided_slice %1 {offsets = [3, 0, 0], sizes = [1, 8, 128], strides = [1, 1, 1]} : vector<8x8x128xf32> to vector<1x8x128xf32>
    %586 = vector.shape_cast %585 : vector<1x8x128xf32> to vector<8x128xf32>
    %587 = vector.shape_cast %586 : vector<8x128xf32> to vector<1x8x128xf32>
    %588 = vector.broadcast %584 : vector<8x1x128xf32> to vector<8x8x128xf32>
    %589 = vector.broadcast %587 : vector<1x8x128xf32> to vector<8x8x128xf32>
    %590 = arith.mulf %588, %589 : vector<8x8x128xf32>
    %591 = arith.addf %581, %590 : vector<8x8x128xf32>
    %592 = vector.extract_strided_slice %552 {offsets = [4, 0, 0], sizes = [1, 8, 128], strides = [1, 1, 1]} : vector<8x8x128xf32> to vector<1x8x128xf32>
    %593 = vector.shape_cast %592 : vector<1x8x128xf32> to vector<8x128xf32>
    %594 = vector.shape_cast %593 : vector<8x128xf32> to vector<8x1x128xf32>
    %595 = vector.extract_strided_slice %1 {offsets = [4, 0, 0], sizes = [1, 8, 128], strides = [1, 1, 1]} : vector<8x8x128xf32> to vector<1x8x128xf32>
    %596 = vector.shape_cast %595 : vector<1x8x128xf32> to vector<8x128xf32>
    %597 = vector.shape_cast %596 : vector<8x128xf32> to vector<1x8x128xf32>
    %598 = vector.broadcast %594 : vector<8x1x128xf32> to vector<8x8x128xf32>
    %599 = vector.broadcast %597 : vector<1x8x128xf32> to vector<8x8x128xf32>
    %600 = arith.mulf %598, %599 : vector<8x8x128xf32>
    %601 = arith.addf %591, %600 : vector<8x8x128xf32>
    %602 = vector.extract_strided_slice %552 {offsets = [5, 0, 0], sizes = [1, 8, 128], strides = [1, 1, 1]} : vector<8x8x128xf32> to vector<1x8x128xf32>
    %603 = vector.shape_cast %602 : vector<1x8x128xf32> to vector<8x128xf32>
    %604 = vector.shape_cast %603 : vector<8x128xf32> to vector<8x1x128xf32>
    %605 = vector.extract_strided_slice %1 {offsets = [5, 0, 0], sizes = [1, 8, 128], strides = [1, 1, 1]} : vector<8x8x128xf32> to vector<1x8x128xf32>
    %606 = vector.shape_cast %605 : vector<1x8x128xf32> to vector<8x128xf32>
    %607 = vector.shape_cast %606 : vector<8x128xf32> to vector<1x8x128xf32>
    %608 = vector.broadcast %604 : vector<8x1x128xf32> to vector<8x8x128xf32>
    %609 = vector.broadcast %607 : vector<1x8x128xf32> to vector<8x8x128xf32>
    %610 = arith.mulf %608, %609 : vector<8x8x128xf32>
    %611 = arith.addf %601, %610 : vector<8x8x128xf32>
    %612 = vector.extract_strided_slice %552 {offsets = [6, 0, 0], sizes = [1, 8, 128], strides = [1, 1, 1]} : vector<8x8x128xf32> to vector<1x8x128xf32>
    %613 = vector.shape_cast %612 : vector<1x8x128xf32> to vector<8x128xf32>
    %614 = vector.shape_cast %613 : vector<8x128xf32> to vector<8x1x128xf32>
    %615 = vector.extract_strided_slice %1 {offsets = [6, 0, 0], sizes = [1, 8, 128], strides = [1, 1, 1]} : vector<8x8x128xf32> to vector<1x8x128xf32>
    %616 = vector.shape_cast %615 : vector<1x8x128xf32> to vector<8x128xf32>
    %617 = vector.shape_cast %616 : vector<8x128xf32> to vector<1x8x128xf32>
    %618 = vector.broadcast %614 : vector<8x1x128xf32> to vector<8x8x128xf32>
    %619 = vector.broadcast %617 : vector<1x8x128xf32> to vector<8x8x128xf32>
    %620 = arith.mulf %618, %619 : vector<8x8x128xf32>
    %621 = arith.addf %611, %620 : vector<8x8x128xf32>
    %622 = vector.extract_strided_slice %552 {offsets = [7, 0, 0], sizes = [1, 8, 128], strides = [1, 1, 1]} : vector<8x8x128xf32> to vector<1x8x128xf32>
    %623 = vector.shape_cast %622 : vector<1x8x128xf32> to vector<8x128xf32>
    %624 = vector.shape_cast %623 : vector<8x128xf32> to vector<8x1x128xf32>
    %625 = vector.extract_strided_slice %1 {offsets = [7, 0, 0], sizes = [1, 8, 128], strides = [1, 1, 1]} : vector<8x8x128xf32> to vector<1x8x128xf32>
    %626 = vector.shape_cast %625 : vector<1x8x128xf32> to vector<8x128xf32>
    %627 = vector.shape_cast %626 : vector<8x128xf32> to vector<1x8x128xf32>
    %628 = vector.broadcast %624 : vector<8x1x128xf32> to vector<8x8x128xf32>
    %629 = vector.broadcast %627 : vector<1x8x128xf32> to vector<8x8x128xf32>
    %630 = arith.mulf %628, %629 : vector<8x8x128xf32>
    %631 = arith.addf %621, %630 : vector<8x8x128xf32>
    %632 = vector.shape_cast %631 : vector<8x8x128xf32> to vector<64x128xf32>
    %633 = arith.mulf %632, %632 : vector<64x128xf32>
    %cst_49 = arith.constant dense<0.000000e+00> : vector<128xf32>
    %634 = vector.multi_reduction <add>, %633, %cst_49 [0] : vector<64x128xf32> to vector<128xf32>
    %635 = vector.shape_cast %634 : vector<128xf32> to vector<1x128xf32>
    %636 = arith.addf %545, %635 : vector<1x128xf32>
    %c6_50 = arith.constant 6 : index
    %c0_51 = arith.constant 0 : index
    %c0_52 = arith.constant 0 : index
    %637 = vector.load %arg2[%c6_50, %c0_51, %c0_52] : memref<8x32x64xf32, #tpu.memory_space<vmem>>, vector<1x32x64xf32>
    %638 = vector.shape_cast %637 : vector<1x32x64xf32> to vector<32x64xf32>
    %cst_53 = arith.constant dense<0.000000e+00> : vector<32x128xf32>
    %639 = tpu.matmul %638, %632, %cst_53 {dimension_numbers = #tpu.dot_dimension_numbers<[1], [0], [0], [1], [0, 0, 1, 1], [], []>} : vector<32x64xf32>, vector<64x128xf32>, vector<32x128xf32> -> vector<32x128xf32>
    %640 = arith.addf %549, %639 : vector<32x128xf32>
    %c0_54 = arith.constant 0 : index
    %c7 = arith.constant 7 : index
    %c0_55 = arith.constant 0 : index
    %641 = vector.load %arg1[%c0_54, %c7, %c0_55] : memref<8x24x128xf32, #tpu.memory_space<vmem>>, vector<8x1x128xf32>
    %642 = vector.broadcast %641 : vector<8x1x128xf32> to vector<8x8x128xf32>
    %643 = arith.mulf %642, %0 : vector<8x8x128xf32>
    %644 = vector.extract_strided_slice %643 {offsets = [0, 0, 0], sizes = [1, 8, 128], strides = [1, 1, 1]} : vector<8x8x128xf32> to vector<1x8x128xf32>
    %645 = vector.shape_cast %644 : vector<1x8x128xf32> to vector<8x128xf32>
    %646 = vector.shape_cast %645 : vector<8x128xf32> to vector<8x1x128xf32>
    %647 = vector.extract_strided_slice %1 {offsets = [0, 0, 0], sizes = [1, 8, 128], strides = [1, 1, 1]} : vector<8x8x128xf32> to vector<1x8x128xf32>
    %648 = vector.shape_cast %647 : vector<1x8x128xf32> to vector<8x128xf32>
    %649 = vector.shape_cast %648 : vector<8x128xf32> to vector<1x8x128xf32>
    %650 = vector.broadcast %646 : vector<8x1x128xf32> to vector<8x8x128xf32>
    %651 = vector.broadcast %649 : vector<1x8x128xf32> to vector<8x8x128xf32>
    %652 = arith.mulf %650, %651 : vector<8x8x128xf32>
    %653 = vector.extract_strided_slice %643 {offsets = [1, 0, 0], sizes = [1, 8, 128], strides = [1, 1, 1]} : vector<8x8x128xf32> to vector<1x8x128xf32>
    %654 = vector.shape_cast %653 : vector<1x8x128xf32> to vector<8x128xf32>
    %655 = vector.shape_cast %654 : vector<8x128xf32> to vector<8x1x128xf32>
    %656 = vector.extract_strided_slice %1 {offsets = [1, 0, 0], sizes = [1, 8, 128], strides = [1, 1, 1]} : vector<8x8x128xf32> to vector<1x8x128xf32>
    %657 = vector.shape_cast %656 : vector<1x8x128xf32> to vector<8x128xf32>
    %658 = vector.shape_cast %657 : vector<8x128xf32> to vector<1x8x128xf32>
    %659 = vector.broadcast %655 : vector<8x1x128xf32> to vector<8x8x128xf32>
    %660 = vector.broadcast %658 : vector<1x8x128xf32> to vector<8x8x128xf32>
    %661 = arith.mulf %659, %660 : vector<8x8x128xf32>
    %662 = arith.addf %652, %661 : vector<8x8x128xf32>
    %663 = vector.extract_strided_slice %643 {offsets = [2, 0, 0], sizes = [1, 8, 128], strides = [1, 1, 1]} : vector<8x8x128xf32> to vector<1x8x128xf32>
    %664 = vector.shape_cast %663 : vector<1x8x128xf32> to vector<8x128xf32>
    %665 = vector.shape_cast %664 : vector<8x128xf32> to vector<8x1x128xf32>
    %666 = vector.extract_strided_slice %1 {offsets = [2, 0, 0], sizes = [1, 8, 128], strides = [1, 1, 1]} : vector<8x8x128xf32> to vector<1x8x128xf32>
    %667 = vector.shape_cast %666 : vector<1x8x128xf32> to vector<8x128xf32>
    %668 = vector.shape_cast %667 : vector<8x128xf32> to vector<1x8x128xf32>
    %669 = vector.broadcast %665 : vector<8x1x128xf32> to vector<8x8x128xf32>
    %670 = vector.broadcast %668 : vector<1x8x128xf32> to vector<8x8x128xf32>
    %671 = arith.mulf %669, %670 : vector<8x8x128xf32>
    %672 = arith.addf %662, %671 : vector<8x8x128xf32>
    %673 = vector.extract_strided_slice %643 {offsets = [3, 0, 0], sizes = [1, 8, 128], strides = [1, 1, 1]} : vector<8x8x128xf32> to vector<1x8x128xf32>
    %674 = vector.shape_cast %673 : vector<1x8x128xf32> to vector<8x128xf32>
    %675 = vector.shape_cast %674 : vector<8x128xf32> to vector<8x1x128xf32>
    %676 = vector.extract_strided_slice %1 {offsets = [3, 0, 0], sizes = [1, 8, 128], strides = [1, 1, 1]} : vector<8x8x128xf32> to vector<1x8x128xf32>
    %677 = vector.shape_cast %676 : vector<1x8x128xf32> to vector<8x128xf32>
    %678 = vector.shape_cast %677 : vector<8x128xf32> to vector<1x8x128xf32>
    %679 = vector.broadcast %675 : vector<8x1x128xf32> to vector<8x8x128xf32>
    %680 = vector.broadcast %678 : vector<1x8x128xf32> to vector<8x8x128xf32>
    %681 = arith.mulf %679, %680 : vector<8x8x128xf32>
    %682 = arith.addf %672, %681 : vector<8x8x128xf32>
    %683 = vector.extract_strided_slice %643 {offsets = [4, 0, 0], sizes = [1, 8, 128], strides = [1, 1, 1]} : vector<8x8x128xf32> to vector<1x8x128xf32>
    %684 = vector.shape_cast %683 : vector<1x8x128xf32> to vector<8x128xf32>
    %685 = vector.shape_cast %684 : vector<8x128xf32> to vector<8x1x128xf32>
    %686 = vector.extract_strided_slice %1 {offsets = [4, 0, 0], sizes = [1, 8, 128], strides = [1, 1, 1]} : vector<8x8x128xf32> to vector<1x8x128xf32>
    %687 = vector.shape_cast %686 : vector<1x8x128xf32> to vector<8x128xf32>
    %688 = vector.shape_cast %687 : vector<8x128xf32> to vector<1x8x128xf32>
    %689 = vector.broadcast %685 : vector<8x1x128xf32> to vector<8x8x128xf32>
    %690 = vector.broadcast %688 : vector<1x8x128xf32> to vector<8x8x128xf32>
    %691 = arith.mulf %689, %690 : vector<8x8x128xf32>
    %692 = arith.addf %682, %691 : vector<8x8x128xf32>
    %693 = vector.extract_strided_slice %643 {offsets = [5, 0, 0], sizes = [1, 8, 128], strides = [1, 1, 1]} : vector<8x8x128xf32> to vector<1x8x128xf32>
    %694 = vector.shape_cast %693 : vector<1x8x128xf32> to vector<8x128xf32>
    %695 = vector.shape_cast %694 : vector<8x128xf32> to vector<8x1x128xf32>
    %696 = vector.extract_strided_slice %1 {offsets = [5, 0, 0], sizes = [1, 8, 128], strides = [1, 1, 1]} : vector<8x8x128xf32> to vector<1x8x128xf32>
    %697 = vector.shape_cast %696 : vector<1x8x128xf32> to vector<8x128xf32>
    %698 = vector.shape_cast %697 : vector<8x128xf32> to vector<1x8x128xf32>
    %699 = vector.broadcast %695 : vector<8x1x128xf32> to vector<8x8x128xf32>
    %700 = vector.broadcast %698 : vector<1x8x128xf32> to vector<8x8x128xf32>
    %701 = arith.mulf %699, %700 : vector<8x8x128xf32>
    %702 = arith.addf %692, %701 : vector<8x8x128xf32>
    %703 = vector.extract_strided_slice %643 {offsets = [6, 0, 0], sizes = [1, 8, 128], strides = [1, 1, 1]} : vector<8x8x128xf32> to vector<1x8x128xf32>
    %704 = vector.shape_cast %703 : vector<1x8x128xf32> to vector<8x128xf32>
    %705 = vector.shape_cast %704 : vector<8x128xf32> to vector<8x1x128xf32>
    %706 = vector.extract_strided_slice %1 {offsets = [6, 0, 0], sizes = [1, 8, 128], strides = [1, 1, 1]} : vector<8x8x128xf32> to vector<1x8x128xf32>
    %707 = vector.shape_cast %706 : vector<1x8x128xf32> to vector<8x128xf32>
    %708 = vector.shape_cast %707 : vector<8x128xf32> to vector<1x8x128xf32>
    %709 = vector.broadcast %705 : vector<8x1x128xf32> to vector<8x8x128xf32>
    %710 = vector.broadcast %708 : vector<1x8x128xf32> to vector<8x8x128xf32>
    %711 = arith.mulf %709, %710 : vector<8x8x128xf32>
    %712 = arith.addf %702, %711 : vector<8x8x128xf32>
    %713 = vector.extract_strided_slice %643 {offsets = [7, 0, 0], sizes = [1, 8, 128], strides = [1, 1, 1]} : vector<8x8x128xf32> to vector<1x8x128xf32>
    %714 = vector.shape_cast %713 : vector<1x8x128xf32> to vector<8x128xf32>
    %715 = vector.shape_cast %714 : vector<8x128xf32> to vector<8x1x128xf32>
    %716 = vector.extract_strided_slice %1 {offsets = [7, 0, 0], sizes = [1, 8, 128], strides = [1, 1, 1]} : vector<8x8x128xf32> to vector<1x8x128xf32>
    %717 = vector.shape_cast %716 : vector<1x8x128xf32> to vector<8x128xf32>
    %718 = vector.shape_cast %717 : vector<8x128xf32> to vector<1x8x128xf32>
    %719 = vector.broadcast %715 : vector<8x1x128xf32> to vector<8x8x128xf32>
    %720 = vector.broadcast %718 : vector<1x8x128xf32> to vector<8x8x128xf32>
    %721 = arith.mulf %719, %720 : vector<8x8x128xf32>
    %722 = arith.addf %712, %721 : vector<8x8x128xf32>
    %723 = vector.shape_cast %722 : vector<8x8x128xf32> to vector<64x128xf32>
    %724 = arith.mulf %723, %723 : vector<64x128xf32>
    %cst_56 = arith.constant dense<0.000000e+00> : vector<128xf32>
    %725 = vector.multi_reduction <add>, %724, %cst_56 [0] : vector<64x128xf32> to vector<128xf32>
    %726 = vector.shape_cast %725 : vector<128xf32> to vector<1x128xf32>
    %727 = arith.addf %636, %726 : vector<1x128xf32>
    %c7_57 = arith.constant 7 : index
    %c0_58 = arith.constant 0 : index
    %c0_59 = arith.constant 0 : index
    %728 = vector.load %arg2[%c7_57, %c0_58, %c0_59] : memref<8x32x64xf32, #tpu.memory_space<vmem>>, vector<1x32x64xf32>
    %729 = vector.shape_cast %728 : vector<1x32x64xf32> to vector<32x64xf32>
    %cst_60 = arith.constant dense<0.000000e+00> : vector<32x128xf32>
    %730 = tpu.matmul %729, %723, %cst_60 {dimension_numbers = #tpu.dot_dimension_numbers<[1], [0], [0], [1], [0, 0, 1, 1], [], []>} : vector<32x64xf32>, vector<64x128xf32>, vector<32x128xf32> -> vector<32x128xf32>
    %731 = arith.addf %640, %730 : vector<32x128xf32>
    %c0_61 = arith.constant 0 : index
    %c0_62 = arith.constant 0 : index
    %732 = vector.load %arg3[%c0_61, %c0_62] : memref<32x1xf32, #tpu.memory_space<vmem>>, vector<32x1xf32>
    %733 = vector.broadcast %732 : vector<32x1xf32> to vector<32x128xf32>
    %734 = arith.addf %731, %733 : vector<32x128xf32>
    %cst_63 = arith.constant 0.000000e+00 : f32
    %735 = vector.broadcast %cst_63 : f32 to vector<32x128xf32>
    %736 = arith.maximumf %734, %735 : vector<32x128xf32>
    %c0_64 = arith.constant 0 : index
    %c0_65 = arith.constant 0 : index
    %737 = vector.load %arg4[%c0_64, %c0_65] : memref<32x32xf32, #tpu.memory_space<vmem>>, vector<32x32xf32>
    %cst_66 = arith.constant dense<0.000000e+00> : vector<32x128xf32>
    %738 = tpu.matmul %737, %736, %cst_66 {dimension_numbers = #tpu.dot_dimension_numbers<[1], [0], [0], [1], [0, 0, 1, 1], [], []>} : vector<32x32xf32>, vector<32x128xf32>, vector<32x128xf32> -> vector<32x128xf32>
    %c0_67 = arith.constant 0 : index
    %c0_68 = arith.constant 0 : index
    %739 = vector.load %arg5[%c0_67, %c0_68] : memref<32x1xf32, #tpu.memory_space<vmem>>, vector<32x1xf32>
    %740 = vector.broadcast %739 : vector<32x1xf32> to vector<32x128xf32>
    %741 = arith.addf %738, %740 : vector<32x128xf32>
    %cst_69 = arith.constant 0.000000e+00 : f32
    %742 = vector.broadcast %cst_69 : f32 to vector<32x128xf32>
    %743 = arith.maximumf %741, %742 : vector<32x128xf32>
    %c0_70 = arith.constant 0 : index
    %c0_71 = arith.constant 0 : index
    %744 = vector.load %arg6[%c0_70, %c0_71] : memref<1x32xf32, #tpu.memory_space<vmem>>, vector<1x32xf32>
    %745 = vector.shape_cast %744 : vector<1x32xf32> to vector<1x32x1xf32>
    %746 = vector.shape_cast %743 : vector<32x128xf32> to vector<1x32x128xf32>
    %747 = vector.broadcast %745 : vector<1x32x1xf32> to vector<1x32x128xf32>
    %748 = arith.mulf %747, %746 : vector<1x32x128xf32>
    %cst_72 = arith.constant dense<0.000000e+00> : vector<1x128xf32>
    %749 = vector.multi_reduction <add>, %748, %cst_72 [1] : vector<1x32x128xf32> to vector<1x128xf32>
    %c0_73 = arith.constant 0 : index
    %c0_74 = arith.constant 0 : index
    %750 = vector.load %arg7[%c0_73, %c0_74] : memref<1x1xf32, #tpu.memory_space<vmem>>, vector<1x1xf32>
    %751 = vector.broadcast %750 : vector<1x1xf32> to vector<1x128xf32>
    %752 = arith.addf %749, %751 : vector<1x128xf32>
    %753 = arith.negf %752 : vector<1x128xf32>
    %754 = math.exp %753 : vector<1x128xf32>
    %cst_75 = arith.constant 1.000000e+00 : f32
    %755 = vector.broadcast %cst_75 : f32 to vector<1x128xf32>
    %756 = arith.addf %755, %754 : vector<1x128xf32>
    %757 = arith.divf %755, %756 : vector<1x128xf32>
    %cst_76 = arith.constant 6.000000e+00 : f32
    %758 = vector.broadcast %cst_76 : f32 to vector<1x128xf32>
    %759 = arith.mulf %757, %758 : vector<1x128xf32>
    %cst_77 = arith.constant -3.000000e+00 : f32
    %760 = vector.broadcast %cst_77 : f32 to vector<1x128xf32>
    %761 = arith.addf %759, %760 : vector<1x128xf32>
    %762 = math.sqrt %727 : vector<1x128xf32>
    %763 = tpu.concatenate %761, %762 in 0 : vector<1x128xf32>, vector<1x128xf32> -> vector<2x128xf32>
    %c0_78 = arith.constant 0 : index
    %c0_79 = arith.constant 0 : index
    %764 = vector.load %arg8[%c0_78, %c0_79] : memref<2x128xf32, #tpu.memory_space<vmem>>, vector<2x128xf32>
    tpu.vector_store %arg8[%c0_78, %c0_79], %763 {strides = array<i32>} : memref<2x128xf32, #tpu.memory_space<vmem>>, vector<2x128xf32>,
    return
  }
  func.func @transform_0(%arg0: i32) -> (i32, i32, i32) {
    %c0_i32 = arith.constant 0 : i32
    %c0_i32_0 = arith.constant 0 : i32
    %c0_i32_1 = arith.constant 0 : i32
    return %c0_i32, %c0_i32_0, %arg0 : i32, i32, i32
  }
  func.func @transform_1(%arg0: i32) -> (i32, i32, i32) {
    %c0_i32 = arith.constant 0 : i32
    %c0_i32_0 = arith.constant 0 : i32
    %c0_i32_1 = arith.constant 0 : i32
    %c0_i32_2 = arith.constant 0 : i32
    return %c0_i32, %c0_i32_0, %c0_i32_1 : i32, i32, i32
  }
  func.func @transform_2(%arg0: i32) -> (i32, i32) {
    %c0_i32 = arith.constant 0 : i32
    %c0_i32_0 = arith.constant 0 : i32
    %c0_i32_1 = arith.constant 0 : i32
    return %c0_i32, %c0_i32_0 : i32, i32
  }
  func.func @transform_3(%arg0: i32) -> (i32, i32) {
    %c0_i32 = arith.constant 0 : i32
    %c0_i32_0 = arith.constant 0 : i32
    %c0_i32_1 = arith.constant 0 : i32
    return %c0_i32, %c0_i32_0 : i32, i32
  }
  func.func @transform_4(%arg0: i32) -> (i32, i32) {
    %c0_i32 = arith.constant 0 : i32
    %c0_i32_0 = arith.constant 0 : i32
    %c0_i32_1 = arith.constant 0 : i32
    return %c0_i32, %c0_i32_0 : i32, i32
  }
  func.func @transform_5(%arg0: i32) -> (i32, i32) {
    %c0_i32 = arith.constant 0 : i32
    %c0_i32_0 = arith.constant 0 : i32
    %c0_i32_1 = arith.constant 0 : i32
    return %c0_i32, %c0_i32_0 : i32, i32
  }
  func.func @transform_6(%arg0: i32) -> (i32, i32) {
    %c0_i32 = arith.constant 0 : i32
    %c0_i32_0 = arith.constant 0 : i32
    %c0_i32_1 = arith.constant 0 : i32
    return %c0_i32, %c0_i32_0 : i32, i32
  }
  func.func @transform_7(%arg0: i32) -> (i32, i32) {
    %c0_i32 = arith.constant 0 : i32
    %c0_i32_0 = arith.constant 0 : i32
    return %c0_i32, %arg0 : i32, i32
  }
}

</mosaic_0001>

<bundles_post_ra>
// kernel: tpu_custom_call.1
= control target key start
LH: loop header
LB: loop body
LE: loop exit
PB: predicated region body
PF: predicated region fallthrough
CT: control target
= control target key end

     0   :  { %s12780_s0 = inlined_call_operand.hbm [shape: f32[8,24,128], index: 0, kind: input, shape index: {}]   ;;  %s12781_s1 = inlined_call_operand.hbm [shape: f32[8,32,64], index: 1, kind: input, shape index: {}]   ;;  %s12782_s2 = inlined_call_operand.vmem [shape: f32[32,1], index: 2, kind: input, shape index: {}]   ;;  %s12783_s3 = inlined_call_operand.vmem [shape: f32[32,32], index: 3, kind: input, shape index: {}]   ;;  %s12784_s4 = inlined_call_operand.vmem [shape: f32[32,1], index: 4, kind: input, shape index: {}]   ;;  %s12785_s5 = inlined_call_operand.vmem [shape: f32[1,32], index: 5, kind: input, shape index: {}]   ;;  %s12786_s6 = inlined_call_operand.<no memory space> [shape: f32[1,1], index: 6, kind: input, shape index: {}]   ;;  %s12787_s7 = inlined_call_operand.hbm [shape: f32[2,128], index: 7, kind: output, shape index: {}]  }
   0x1   :  { %v12_v0 = vstv %s12786_s6 }
   0x2   :  { %13 = vst [vmem:[#allocation2] sm:$0x1] %v12_v0 }
   0x3   :  { %14 = vsyncpa [#allocation4], 0 }
   0x4   :  { %15 = vsyncpa [#allocation7], 0 }
   0x5   :  { %16 = vsyncpa [#allocation5], 0  ;;  %s9140_s26 = smov [#allocation3]   ;;  %s9068_s30 = scalar_lea.hbm %s12780_s0, 3072 }
   0x6   :  { %s22_s27 = sshll.u32 %s9140_s26, 4  ;;  %p9069_p0 = scmp.ne.s32.totalorder %s12780_s0, %s9068_s30  ;;  %s23_s27 = int_to_ptr.vmem [resolvable:$true] %s22_s27 }
   0x7   :  { %p9072_p1 = scmp.lt.u32.totalorder %s9068_s30, %s12780_s0 }
   0x9   :  { %p9074_p2 = pnand %p9072_p1, %p9069_p0 }
   0xb   :  { %9077 = shalt.err (!%p9074_p2)
}
   0xc   :  { %s9078_s6 = scalar_lea.vmem %s23_s27, 3072  ;;  %p9083_p4 = scmp.lt.s32.totalorder %s23_s27, %s23_s27 }
   0xd   :  { %p9079_p3 = scmp.ne.s32.totalorder %s23_s27, %s9078_s6  ;;  %p9084_p5 = scmp.lt.s32.totalorder %s9078_s6, %s9078_s6 }
   0xf   :  { %p9085_p6 = por %p9084_p5, %p9083_p4 }
  0x11   :  { %p9086_p7 = pnand %p9085_p6, %p9079_p3 }
  0x13   :  { %9089 = shalt.err (!%p9086_p7)
}
  0x14   :  { %s9141_s12 = smov 128   ;;  %s9142_s13 = smov 8  }
  0x15   :  { %28 = dma.hbm_to_vmem [thread:$0]  %s12780_s0, 3072, %s23_s27, [#allocation4], %s9141_s12, %s9141_s12, %s9142_s13  }
  0x16   :  { %s9143_s16 = smov [#allocation6]   ;;  %s9090_s20 = scalar_lea.hbm %s12781_s1, 4096 }
  0x17   :  { %s34_s17 = sshll.u32 %s9143_s16, 4  ;;  %p9091_p8 = scmp.ne.s32.totalorder %s12781_s1, %s9090_s20  ;;  %s35_s17 = int_to_ptr.vmem [resolvable:$true] %s34_s17 }
  0x18   :  { %p9094_p9 = scmp.lt.u32.totalorder %s9090_s20, %s12781_s1 }
  0x1a   :  { %p9096_p10 = pnand %p9094_p9, %p9091_p8 }
  0x1c   :  { %9099 = shalt.err (!%p9096_p10)
}
  0x1d   :  { %s9100_s25 = scalar_lea.vmem %s35_s17, 4096  ;;  %p9105_p12 = scmp.lt.s32.totalorder %s35_s17, %s35_s17 }
  0x1e   :  { %p9101_p11 = scmp.ne.s32.totalorder %s35_s17, %s9100_s25  ;;  %p9106_p13 = scmp.lt.s32.totalorder %s9100_s25, %s9100_s25 }
  0x20   :  { %p9107_p0 = por %p9106_p13, %p9105_p12 }
  0x22   :  { %p9108_p1 = pnand %p9107_p0, %p9101_p11 }
  0x24   :  { %9111 = shalt.err (!%p9108_p1)
}
  0x25   :  { %40 = dma.hbm_to_vmem [thread:$0]  %s12781_s1, 4096, %s35_s17, [#allocation7], %s9141_s12, %s9141_s12, %s9142_s13  }
  0x26   :  { %9134 = dma.done.wait [#allocation4], 3072  }
  0x27   :  { %9135 = vsyncadd [#allocation4], 4294964224 }
  0x28   :  { %9136 = dma.done.wait [#allocation7], 4096  }
  0x29   :  { %9137 = vsyncadd [#allocation7], 4294963200  ;;  %v9144_v1 = vmov 1966171168   ;;  %v126_v3 = vlaneseq  ;;  %v9214_v6 = vld [vmem:[#allocation3 + $0x8] sm:$0xff]  ;;  %v9216_v7 = vld [vmem:[#allocation3 + $0x20] sm:$0xff] }
  0x2a   :  { %v124_v2 = vunpack.c.l.s4 %v9144_v1  ;;  %v9218_v8 = vld [vmem:[#allocation3 + $0x38] sm:$0xff]  ;;  %v9220_v9 = vld [vmem:[#allocation3 + $0x50] sm:$0xff]  ;;  %v9222_v10 = vld [vmem:[#allocation3 + $0x68] sm:$0xff]  ;;  %vm1902_vm0 = vcmask 523264   ;;  %vm8253_vm1 = vcmask 261120   ;;  %vm8414_vm4 = vcmask 1040384  }
  0x2b   :  { %v127_v5 = vshrl.u32 %v126_v3, 7  ;;  %v9224_v11 = vld [vmem:[#allocation3 + $0x80] sm:$0xff]  ;;  %v9226_v12 = vld [vmem:[#allocation3 + $0x98] sm:$0xff]  ;;  %v9228_v13 = vld [vmem:[#allocation3 + $0xb0] sm:$0xff] }
  0x2c   :  { %v125_v4 = vunpack.c.0.s8 %v124_v2  ;;  %v8441_v16 = vld [vmem:[#allocation3 + $0x1] ss:$0 sm:$0xff]  ;;  %v8442_v17 = vld [vmem:[#allocation3 + $0x19] ss:$0 sm:$0xff]  ;;  %v8443_v18 = vld [vmem:[#allocation3 + $0x31] ss:$0 sm:$0xff] }
  0x2d   :  { %v9232_v15 = vsub.s32 0, %v127_v5  ;;  %v8444_v19 = vld [vmem:[#allocation3 + $0x49] ss:$0 sm:$0xff]  ;;  %v8445_v20 = vld [vmem:[#allocation3 + $0x61] ss:$0 sm:$0xff]  ;;  %v9235_v21 = vmul.f32 %v8441_v16, %v9214_v6  ;;  %v9238_v22 = vmul.f32 %v8442_v17, %v9216_v7  ;;  %v9241_v26 = vmul.f32 %v8443_v18, %v9218_v8  ;;  %v9282_v45 = vld [vmem:[#allocation3 + $0x10] sm:$0xff] }
  0x2e   :  { %v9230_v14 = vsub.s32 %v125_v4, %v127_v5  ;;  %v8446_v23 = vld [vmem:[#allocation3 + $0x79] ss:$0 sm:$0xff]  ;;  %v8447_v24 = vld [vmem:[#allocation3 + $0x91] ss:$0 sm:$0xff]  ;;  %v8448_v25 = vld [vmem:[#allocation3 + $0xa9] ss:$0 sm:$0xff]  ;;  %v9244_v27 = vmul.f32 %v8444_v19, %v9220_v9  ;;  %v9247_v28 = vmul.f32 %v8445_v20, %v9222_v10 }
  0x2f   :  { %v9250_v29 = vmul.f32 %v8446_v23, %v9224_v11  ;;  %v9253_v30 = vmul.f32 %v8447_v24, %v9226_v12  ;;  %v9256_v31 = vmul.f32 %v8448_v25, %v9228_v13  ;;  %v9290_v50 = vld [vmem:[#allocation3 + $0x28] sm:$0xff]  ;;  %v9311_v59 = vld [vmem:[#allocation3 + $0x40] sm:$0xff]  ;;  %v9327_v4 = vld [vmem:[#allocation3 + $0x58] sm:$0xff] }
  0x30   :  { %12851 = vst [vmem:[#allocation12_spill] sm:$0xff] %v9247_v28  ;;  %v1043_v33 = vrot.slane %v9235_v21, %v9230_v14  ;;  %v1141_v35 = vrot.slane %v9238_v22, %v9230_v14  ;;  %v1247_v37 = vrot.slane %v9241_v26, %v9230_v14  ;;  %v1353_v39 = vrot.slane %v9244_v27, %v9230_v14  ;;  %v8481_v36 = vld [vmem:[#allocation3 + $0x4] ss:$0 sm:$0xff]  ;;  %v8487_v58 = vld [vmem:[#allocation3 + $0x94] ss:$0 sm:$0xff]  ;;  %v9425_v60 = vld [vmem:[#allocation3 + $0xb8] sm:$0xff] }
  0x31   :  { %12852 = vst [vmem:[#allocation13_spill] sm:$0xff] %v9250_v29  ;;  %12853 = vst [vmem:[#allocation14_spill] sm:$0xff] %v9253_v30  ;;  %v9417_v2 = vmul.f32 %v8481_v36, %v9214_v6  ;;  %v8488_v63 = vld [vmem:[#allocation3 + $0xac] ss:$0 sm:$0xff] }
  0x32   :  { %12854 = vst [vmem:[#allocation15_spill] sm:$0xff] %v9256_v31  ;;  %v1051_v41 = vcombine.high %v1043_v33, %v1043_v33  ;;  %v9277_v42 = vrot.slane %v1043_v33, %v9230_v14  ;;  %v1149_v43 = vcombine.high %v1141_v35, %v1141_v35  ;;  %v9280_v44 = vrot.slane %v1141_v35, %v9230_v14 }
  0x33   :  { %v1255_v46 = vcombine.high %v1247_v37, %v1247_v37  ;;  %v9285_v47 = vrot.slane %v1247_v37, %v9230_v14  ;;  %v1361_v48 = vcombine.high %v1353_v39, %v1353_v39  ;;  %v9288_v49 = vrot.slane %v1353_v39, %v9230_v14  ;;  %12855 = vst [vmem:[#allocation16_spill] sm:$0xff] %v9417_v2 }
  0x34   :  { %v9293_v51 = vrot.slane %v1051_v41, %v9230_v14  ;;  %v1088_v53 = vrot.slane %v9277_v42, %v9232_v15  ;;  %v9300_v54 = vrot.slane %v1149_v43, %v9230_v14  ;;  %v1186_v56 = vrot.slane %v9280_v44, %v9232_v15 }
  0x35   :  { %v9307_v57 = vrot.slane %v1255_v46, %v9230_v14  ;;  %v1292_v3 = vrot.slane %v9285_v47, %v9232_v15  ;;  %v9333_v17 = vrot.slane %v1361_v48, %v9230_v14  ;;  %v1398_v24 = vrot.slane %v9288_v49, %v9232_v15  ;;  %v9395_v46 = vld [vmem:[#allocation3 + $0xa0] sm:$0xff] }
  0x36   :  { %v1092_v61 = vrot.slane %v9293_v51, %v9232_v15  ;;  %v1125_v62 = vmul.f32 %v1088_v53, %v9282_v45  ;;  %v1190_v0 = vrot.slane %v9300_v54, %v9232_v15  ;;  %v1223_v1 = vmul.f32 %v1186_v56, %v9290_v50 }
  0x37   :  { %v1296_v16 = vrot.slane %v9307_v57, %v9232_v15  ;;  %v1329_v23 = vmul.f32 %v1292_v3, %v9311_v59  ;;  %v1402_v35 = vrot.slane %v9333_v17, %v9232_v15  ;;  %v1459_v37 = vrot.slane %v9247_v28, %v9230_v14 }
  0x38   :  { %v1126_v5 = vmul.f32 %v1092_v61, %v9282_v45  ;;  %v1224_v19 = vmul.f32 %v1190_v0, %v9290_v50  ;;  %v1231_v20 = vadd.f32 %v1223_v1, %v1125_v62  ;;  %v1435_v43 = vmul.f32 %v1398_v24, %v9327_v4  ;;  %v9357_v62 = vld [vmem:[#allocation3 + $0x70] sm:$0xff] }
  0x39   :  { %v1330_v25 = vmul.f32 %v1296_v16, %v9311_v59  ;;  %v1436_v48 = vmul.f32 %v1402_v35, %v9327_v4  ;;  %v1467_v53 = vcombine.high %v1459_v37, %v1459_v37  ;;  %v9353_v56 = vrot.slane %v1459_v37, %v9230_v14 }
  0x3a   :  { %v1232_v39 = vadd.f32 %v1224_v19, %v1126_v5  ;;  %v1337_v41 = vadd.f32 %v1329_v23, %v1231_v20  ;;  %v1565_v61 = vrot.slane %v9250_v29, %v9230_v14  ;;  %v1671_v5 = vrot.slane %v9253_v30, %v9230_v14  ;;  %v8485_v19 = vld [vmem:[#allocation3 + $0x64] ss:$0 sm:$0xff] }
  0x3b   :  { %v9364_v16 = vrot.slane %v1467_v53, %v9230_v14  ;;  %v1504_v20 = vrot.slane %v9353_v56, %v9232_v15  ;;  %v9434_v36 = vmul.f32 %v8485_v19, %v9222_v10 }
  0x3c   :  { %v1338_v0 = vadd.f32 %v1330_v25, %v1232_v39  ;;  %v1443_v1 = vadd.f32 %v1435_v43, %v1337_v41  ;;  %v1573_v23 = vcombine.high %v1565_v61, %v1565_v61  ;;  %v9371_v25 = vrot.slane %v1565_v61, %v9230_v14  ;;  %v9376_v39 = vld [vmem:[#allocation3 + $0x88] sm:$0xff] }
  0x3d   :  { %v1679_v35 = vcombine.high %v1671_v5, %v1671_v5  ;;  %v9374_v37 = vrot.slane %v1671_v5, %v9230_v14  ;;  %v1508_v43 = vrot.slane %v9364_v16, %v9232_v15  ;;  %v1541_v53 = vmul.f32 %v1504_v20, %v9357_v62  ;;  %v8484_v41 = vld [vmem:[#allocation3 + $0x4c] ss:$0 sm:$0xff]  ;;  %12859 = vst [vmem:[#allocation20_spill] sm:$0xff] %v9434_v36 }
  0x3e   :  { %v1444_v24 = vadd.f32 %v1436_v48, %v1338_v0  ;;  %v9384_v3 = vrot.slane %v1573_v23, %v9230_v14  ;;  %v1610_v61 = vrot.slane %v9371_v25, %v9232_v15  ;;  %v1777_v48 = vrot.slane %v9256_v31, %v9230_v14  ;;  %v8486_v23 = vld [vmem:[#allocation3 + $0x7c] ss:$0 sm:$0xff] }
  0x3f   :  { %v9391_v0 = vrot.slane %v1679_v35, %v9230_v14  ;;  %v1542_v40 = vmul.f32 %v1508_v43, %v9357_v62  ;;  %v1549_v20 = vadd.f32 %v1541_v53, %v1443_v1  ;;  %v1716_v32 = vrot.slane %v9374_v37, %v9232_v15  ;;  %v8482_v43 = vld [vmem:[#allocation3 + $0x1c] ss:$0 sm:$0xff] }
  0x40   :  { %v1614_v38 = vrot.slane %v9384_v3, %v9232_v15  ;;  %v1647_v34 = vmul.f32 %v1610_v61, %v9376_v39  ;;  %v8483_v61 = vld [vmem:[#allocation3 + $0x34] ss:$0 sm:$0xff]  ;;  %v9423_v55 = vmul.f32 %v8482_v43, %v9216_v7  ;;  %v9431_v6 = vmul.f32 %v8484_v41, %v9220_v9 }
  0x41   :  { %v1720_v5 = vrot.slane %v9391_v0, %v9232_v15  ;;  %v1550_v1 = vadd.f32 %v1542_v40, %v1444_v24  ;;  %v1753_v33 = vmul.f32 %v1716_v32, %v9395_v46  ;;  %v1785_v24 = vcombine.high %v1777_v48, %v1777_v48 }
  0x42   :  { %v1648_v53 = vmul.f32 %v1614_v38, %v9376_v39  ;;  %v1655_v35 = vadd.f32 %v1647_v34, %v1549_v20  ;;  %v9420_v38 = vrot.slane %v1777_v48, %v9230_v14  ;;  %12856 = vst [vmem:[#allocation17_spill] sm:$0xff] %v9423_v55  ;;  %v9428_v32 = vmul.f32 %v8483_v61, %v9218_v8 }
  0x43   :  { %v1754_v18 = vmul.f32 %v1720_v5, %v9395_v46  ;;  %12858 = vst [vmem:[#allocation19_spill] sm:$0xff] %v9431_v6  ;;  %v9437_v5 = vrot.slane %v1785_v24, %v9230_v14  ;;  %v9447_v8 = vmul.f32 %v8487_v58, %v9226_v12  ;;  %v9450_v9 = vmul.f32 %v8488_v63, %v9228_v13 }
  0x44   :  { %v1656_v40 = vadd.f32 %v1648_v53, %v1550_v1  ;;  %v1761_v34 = vadd.f32 %v1753_v33, %v1655_v35  ;;  %12857 = vst [vmem:[#allocation18_spill] sm:$0xff] %v9428_v32  ;;  %v1822_v20 = vrot.slane %v9420_v38, %v9232_v15  ;;  %v9444_v33 = vmul.f32 %v8486_v23, %v9224_v11 }
  0x45   :  { %12861 = vst [vmem:[#allocation22_spill] sm:$0xff] %v9447_v8  ;;  %12862 = vst [vmem:[#allocation23_spill] sm:$0xff] %v9450_v9  ;;  %v1826_v19 = vrot.slane %v9437_v5, %v9232_v15  ;;  %v4185_v11 = vrot.slane %v9417_v2, %v9230_v14  ;;  %v4283_v13 = vrot.slane %v9423_v55, %v9230_v14 }
  0x46   :  { %v1762_v48 = vadd.f32 %v1754_v18, %v1656_v40  ;;  %12860 = vst [vmem:[#allocation21_spill] sm:$0xff] %v9444_v33  ;;  %v1859_v41 = vmul.f32 %v1822_v20, %v9425_v60  ;;  %v4389_v63 = vrot.slane %v9428_v32, %v9230_v14  ;;  %v4707_v52 = vrot.slane %v9444_v33, %v9230_v14 }
  0x47   :  { %v1860_v23 = vmul.f32 %v1826_v19, %v9425_v60  ;;  %v4193_v43 = vcombine.high %v4185_v11, %v4185_v11  ;;  %v9471_v1 = vrot.slane %v4185_v11, %v9230_v14  ;;  %v4291_v53 = vcombine.high %v4283_v13, %v4283_v13 }
  0x48   :  { %v1867_v35 = vadd.f32 %v1859_v41, %v1761_v34  ;;  %v9474_v61 = vrot.slane %v4283_v13, %v9230_v14  ;;  %v4397_v40 = vcombine.high %v4389_v63, %v4389_v63  ;;  %v9477_v24 = vrot.slane %v4389_v63, %v9230_v14 }
  0x49   :  { %v1868_v20 = vadd.f32 %v1860_v23, %v1762_v48  ;;  %v9480_v12 = vrot.slane %v4193_v43, %v9230_v14  ;;  %v4230_v19 = vrot.slane %v9471_v1, %v9232_v15  ;;  %v9487_v41 = vrot.slane %v4291_v53, %v9230_v14 }
  0x4a   :  { %v1875_v58 = vmul.f32 %v1867_v35, %v1867_v35  ;;  %v4328_v13 = vrot.slane %v9474_v61, %v9232_v15  ;;  %v4434_v53 = vrot.slane %v9477_v24, %v9232_v15 }
  0x4b   :  { %v1876_v48 = vmul.f32 %v1868_v20, %v1868_v20  ;;  %v8829_v63 = vpack.c.bf16 %v1868_v20, %v1867_v35  ;;  %v4234_v43 = vrot.slane %v9480_v12, %v9232_v15  ;;  %v4267_v10 = vmul.f32 %v4230_v19, %v9282_v45 }
  0x4c   :  { %v4332_v34 = vrot.slane %v9487_v41, %v9232_v15  ;;  %v4365_v11 = vmul.f32 %v4328_v13, %v9290_v50  ;;  %v9507_v20 = vrot.slane %v4397_v40, %v9230_v14 }
  0x4d   :  { %v9503_v18 = vadd.f32 %v1876_v48, %v1875_v58  ;;  %8830 = vmatprep.subr.bf16.mxu1 %v8829_v63  ;;  %v4268_v35 = vmul.f32 %v4234_v43, %v9282_v45  ;;  %v4495_v48 = vrot.slane %v9431_v6, %v9230_v14  ;;  %v4601_v43 = vrot.slane %v9434_v36, %v9230_v14 }
  0x4e   :  { %v4366_v19 = vmul.f32 %v4332_v34, %v9290_v50  ;;  %v4373_v7 = vadd.f32 %v4365_v11, %v4267_v10  ;;  %8832 = vmatpush3.bf16.msra.mxu1 %v8829_v63  ;;  %v4438_v40 = vrot.slane %v9507_v20, %v9232_v15  ;;  %v4471_v11 = vmul.f32 %v4434_v53, %v9311_v59 }
  0x4f   :  { %v4503_v58 = vcombine.high %v4495_v48, %v4495_v48  ;;  %v9531_v23 = vrot.slane %v4495_v48, %v9230_v14  ;;  %v4609_v34 = vcombine.high %v4601_v43, %v4601_v43  ;;  %v9560_v53 = vrot.slane %v4707_v52, %v9230_v14 }
  0x50   :  { %v4374_v10 = vadd.f32 %v4366_v19, %v4268_v35  ;;  %v4472_v13 = vmul.f32 %v4438_v40, %v9311_v59  ;;  %v4479_v6 = vadd.f32 %v4471_v11, %v4373_v7  ;;  %v9536_v35 = vrot.slane %v4601_v43, %v9230_v14 }
  0x51   :  { %v9541_v63 = vrot.slane %v4503_v58, %v9230_v14  ;;  %v4540_v48 = vrot.slane %v9531_v23, %v9232_v15  ;;  %v9548_v33 = vrot.slane %v4609_v34, %v9230_v14  ;;  %v4715_v43 = vcombine.high %v4707_v52, %v4707_v52 }
  0x52   :  { %v4480_v19 = vadd.f32 %v4472_v13, %v4374_v10  ;;  %v4646_v11 = vrot.slane %v9536_v35, %v9232_v15  ;;  %v4752_v52 = vrot.slane %v9560_v53, %v9232_v15  ;;  %v4919_v34 = vrot.slane %v9450_v9, %v9230_v14 }
  0x53   :  { %v4544_v58 = vrot.slane %v9541_v63, %v9232_v15  ;;  %v4577_v10 = vmul.f32 %v4540_v48, %v9327_v4  ;;  %v4650_v7 = vrot.slane %v9548_v33, %v9232_v15  ;;  %v9568_v36 = vrot.slane %v4715_v43, %v9230_v14 }
  0x54   :  { %v4683_v40 = vmul.f32 %v4646_v11, %v9357_v62  ;;  %v4813_v43 = vrot.slane %v9447_v8, %v9230_v14 }
  0x55   :  { %v4578_v13 = vmul.f32 %v4544_v58, %v9327_v4  ;;  %v4585_v32 = vadd.f32 %v4577_v10, %v4479_v6  ;;  %v4684_v55 = vmul.f32 %v4650_v7, %v9357_v62  ;;  %v4756_v11 = vrot.slane %v9568_v36, %v9232_v15 }
  0x56   :  { %v4789_v6 = vmul.f32 %v4752_v52, %v9376_v39  ;;  %v4821_v31 = vcombine.high %v4813_v43, %v4813_v43  ;;  %v9587_v7 = vrot.slane %v4813_v43, %v9230_v14 }
  0x57   :  { %v4586_v2 = vadd.f32 %v4578_v13, %v4480_v19  ;;  %v4691_v58 = vadd.f32 %v4683_v40, %v4585_v32  ;;  %v4790_v48 = vmul.f32 %v4756_v11, %v9376_v39  ;;  %v12863_v32 = vcombine.high %v9277_v42, %v9277_v42 }
  0x58   :  { %v12864_v40 = vcombine.high %v9293_v51, %v9293_v51  ;;  %v9600_v52 = vrot.slane %v4821_v31, %v9230_v14 }
  0x59   :  { %v4692_v30 = vadd.f32 %v4684_v55, %v4586_v2  ;;  %v4797_v29 = vadd.f32 %v4789_v6, %v4691_v58  ;;  %v1096_v19 = vrot.slane %v12863_v32, %v9232_v15  ;;  %v4858_v55 = vrot.slane %v9587_v7, %v9232_v15 }
  0x5a   :  { %v1100_v13 = vrot.slane %v12864_v40, %v9232_v15  ;;  %v4927_v2 = vcombine.high %v4919_v34, %v4919_v34  ;;  %v9607_v58 = vrot.slane %v4919_v34, %v9230_v14  ;;  %v4862_v31 = vrot.slane %v9600_v52, %v9232_v15 }
  0x5b   :  { %v4798_v43 = vadd.f32 %v4790_v48, %v4692_v30  ;;  %v1127_v42 = vmul.f32 %v1096_v19, %v9282_v45  ;;  %v4895_v32 = vmul.f32 %v4858_v55, %v9395_v46  ;;  %v12865_v48 = vcombine.high %v9280_v44, %v9280_v44 }
  0x5c   :  { %v1128_v6 = vmul.f32 %v1100_v13, %v9282_v45  ;;  %v9617_v40 = vrot.slane %v4927_v2, %v9230_v14  ;;  %v4964_v34 = vrot.slane %v9607_v58, %v9232_v15  ;;  %v12866_v13 = vcombine.high %v9300_v54, %v9300_v54 }
  0x5d   :  { %v1194_v19 = vrot.slane %v12865_v48, %v9232_v15  ;;  %v4896_v55 = vmul.f32 %v4862_v31, %v9395_v46  ;;  %v4903_v2 = vadd.f32 %v4895_v32, %v4797_v29  ;;  %v12867_v54 = vcombine.high %v9285_v47, %v9285_v47 }
  0x5e   :  { %v1198_v10 = vrot.slane %v12866_v13, %v9232_v15  ;;  %v4968_v30 = vrot.slane %v9617_v40, %v9232_v15  ;;  %v5001_v11 = vmul.f32 %v4964_v34, %v9425_v60  ;;  %v12868_v31 = vcombine.high %v9307_v57, %v9307_v57 }
  0x5f   :  { %v1225_v9 = vmul.f32 %v1194_v19, %v9290_v50  ;;  %v1300_v48 = vrot.slane %v12867_v54, %v9232_v15  ;;  %v4904_v13 = vadd.f32 %v4896_v55, %v4798_v43  ;;  %v12869_v34 = vcombine.high %v9288_v49, %v9288_v49 }
  0x60   :  { %v1226_v44 = vmul.f32 %v1198_v10, %v9290_v50  ;;  %v5002_v29 = vmul.f32 %v4968_v30, %v9425_v60  ;;  %v1304_v32 = vrot.slane %v12868_v31, %v9232_v15  ;;  %v5009_v51 = vadd.f32 %v5001_v11, %v4903_v2 }
  0x61   :  { %v1406_v19 = vrot.slane %v12869_v34, %v9232_v15  ;;  %v1233_v10 = vadd.f32 %v1225_v9, %v1127_v42  ;;  %v1331_v28 = vmul.f32 %v1300_v48, %v9311_v59  ;;  %v12870_v30 = vcombine.high %v9333_v17, %v9333_v17 }
  0x62   :  { %v1234_v8 = vadd.f32 %v1226_v44, %v1128_v6  ;;  %v5010_v47 = vadd.f32 %v5002_v29, %v4904_v13  ;;  %v1332_v43 = vmul.f32 %v1304_v32, %v9311_v59  ;;  %v5017_v54 = vmul.f32 %v5009_v51, %v5009_v51 }
  0x63   :  { %v1410_v55 = vrot.slane %v12870_v30, %v9232_v15  ;;  %v1437_v57 = vmul.f32 %v1406_v19, %v9327_v4  ;;  %v1339_v31 = vadd.f32 %v1331_v28, %v1233_v10  ;;  %v12871_v49 = vcombine.high %v9353_v56, %v9353_v56 }
  0x64   :  { %v12872_v11 = vcombine.high %v9364_v16, %v9364_v16  ;;  %v5018_v6 = vmul.f32 %v5010_v47, %v5010_v47  ;;  %v8893_v2 = vpack.c.bf16 %v5010_v47, %v5009_v51  ;;  %v1340_v44 = vadd.f32 %v1332_v43, %v1234_v8 }
  0x65   :  { %v1512_v9 = vrot.slane %v12871_v49, %v9232_v15  ;;  %v1438_v17 = vmul.f32 %v1410_v55, %v9327_v4  ;;  %v1445_v48 = vadd.f32 %v1437_v57, %v1339_v31  ;;  %v12873_v56 = vcombine.high %v9371_v25, %v9371_v25 }
  0x66   :  { %v1516_v42 = vrot.slane %v12872_v11, %v9232_v15  ;;  %v9674_v32 = vadd.f32 %v5018_v6, %v5017_v54  ;;  %8894 = vmatprep.subr.bf16.mxu0 %v8893_v2  ;;  %v12874_v8 = vcombine.high %v9384_v3, %v9384_v3  ;;  %v12875_v34 = vcombine.high %v9374_v37, %v9374_v37 }
  0x67   :  { %v1543_v13 = vmul.f32 %v1512_v9, %v9357_v62  ;;  %v1618_v29 = vrot.slane %v12873_v56, %v9232_v15  ;;  %v1446_v16 = vadd.f32 %v1438_v17, %v1340_v44  ;;  %8896 = vmatpush3.bf16.msra.mxu0 %v8893_v2  ;;  %v12876_v25 = vcombine.high %v9391_v0, %v9391_v0 }
  0x68   :  { %v1544_v28 = vmul.f32 %v1516_v42, %v9357_v62  ;;  %v1622_v51 = vrot.slane %v12874_v8, %v9232_v15  ;;  %v1724_v19 = vrot.slane %v12875_v34, %v9232_v15  ;;  %v12877_v30 = vcombine.high %v9420_v38, %v9420_v38 }
  0x69   :  { %v1551_v10 = vadd.f32 %v1543_v13, %v1445_v48  ;;  %v1649_v47 = vmul.f32 %v1618_v29, %v9376_v39  ;;  %v1728_v43 = vrot.slane %v12876_v25, %v9232_v15  ;;  %v12878_v54 = vcombine.high %v9437_v5, %v9437_v5 }
  0x6a   :  { %v1830_v3 = vrot.slane %v12877_v30, %v9232_v15  ;;  %v1552_v55 = vadd.f32 %v1544_v28, %v1446_v16  ;;  %v1650_v57 = vmul.f32 %v1622_v51, %v9376_v39  ;;  %v1755_v37 = vmul.f32 %v1724_v19, %v9395_v46 }
  0x6b   :  { %v1834_v31 = vrot.slane %v12878_v54, %v9232_v15  ;;  %v1657_v49 = vadd.f32 %v1649_v47, %v1551_v10  ;;  %v1756_v9 = vmul.f32 %v1728_v43, %v9395_v46  ;;  %v12879_v38 = vcombine.high %v9471_v1, %v9471_v1 }
  0x6c   :  { %v1861_v0 = vmul.f32 %v1830_v3, %v9425_v60  ;;  %v1658_v42 = vadd.f32 %v1650_v57, %v1552_v55  ;;  %v12880_v2 = vcombine.high %v9480_v12, %v9480_v12  ;;  %v12881_v5 = vcombine.high %v9474_v61, %v9474_v61 }
  0x6d   :  { %v4238_v11 = vrot.slane %v12879_v38, %v9232_v15  ;;  %v1862_v6 = vmul.f32 %v1834_v31, %v9425_v60  ;;  %v1763_v48 = vadd.f32 %v1755_v37, %v1657_v49  ;;  %v12882_v1 = vcombine.high %v9487_v41, %v9487_v41 }
  0x6e   :  { %v4242_v44 = vrot.slane %v12880_v2, %v9232_v15  ;;  %v4336_v17 = vrot.slane %v12881_v5, %v9232_v15  ;;  %v12883_v56 = vcombine.high %v9477_v24, %v9477_v24  ;;  %v1764_v12 = vadd.f32 %v1756_v9, %v1658_v42 }
  0x6f   :  { %v4269_v13 = vmul.f32 %v4238_v11, %v9282_v45  ;;  %v4340_v28 = vrot.slane %v12882_v1, %v9232_v15  ;;  %v12884_v61 = vcombine.high %v9507_v20, %v9507_v20  ;;  %v1869_v34 = vadd.f32 %v1861_v0, %v1763_v48 }
  0x70   :  { %v4442_v29 = vrot.slane %v12883_v56, %v9232_v15  ;;  %v4270_v16 = vmul.f32 %v4242_v44, %v9282_v45  ;;  %v4367_v8 = vmul.f32 %v4336_v17, %v9290_v50  ;;  %v12885_v24 = vcombine.high %v9531_v23, %v9531_v23 }
  0x71   :  { %v4446_v51 = vrot.slane %v12884_v61, %v9232_v15  ;;  %v4368_v19 = vmul.f32 %v4340_v28, %v9290_v50  ;;  %v1870_v47 = vadd.f32 %v1862_v6, %v1764_v12  ;;  %v12886_v30 = vcombine.high %v9541_v63, %v9541_v63 }
  0x72   :  { %v4473_v41 = vmul.f32 %v4442_v29, %v9311_v59  ;;  %v4548_v10 = vrot.slane %v12885_v24, %v9232_v15  ;;  %v4375_v25 = vadd.f32 %v4367_v8, %v4269_v13  ;;  %v1877_v3 = vmul.f32 %v1869_v34, %v1869_v34 }
  0x73   :  { %v4474_v43 = vmul.f32 %v4446_v51, %v9311_v59  ;;  %v4552_v20 = vrot.slane %v12886_v30, %v9232_v15  ;;  %v4376_v55 = vadd.f32 %v4368_v19, %v4270_v16  ;;  %v12887_v37 = vcombine.high %v9536_v35, %v9536_v35 }
  0x74   :  { %v4579_v57 = vmul.f32 %v4548_v10, %v9327_v4  ;;  %v1878_v23 = vmul.f32 %v1870_v47, %v1870_v47  ;;  %v8833_v31 = vpack.c.bf16 %v1870_v47, %v1869_v34  ;;  %v4481_v49 = vadd.f32 %v4473_v41, %v4375_v25 }
  0x75   :  { %v4654_v54 = vrot.slane %v12887_v37, %v9232_v15  ;;  %v4580_v9 = vmul.f32 %v4552_v20, %v9327_v4  ;;  %v1884_v0 = vadd.f32 %v9503_v18, %v1877_v3  ;;  %v4482_v38 = vadd.f32 %v4474_v43, %v4376_v55 }
  0x76   :  { %v12888_v63 = vcombine.high %v9548_v33, %v9548_v33  ;;  %8834 = vmatprep.subr.bf16.mxu1 %v8833_v31  ;;  %v4587_v6 = vadd.f32 %v4579_v57, %v4481_v49  ;;  %v12889_v35 = vcombine.high %v9560_v53, %v9560_v53  ;;  %v12890_v44 = vcombine.high %v9568_v36, %v9568_v36 }
  0x77   :  { %v4685_v42 = vmul.f32 %v4654_v54, %v9357_v62  ;;  %v12891_v5 = vcombine.high %v9587_v7, %v9587_v7  ;;  %v9764_v17 = vadd.f32 %v1884_v0, %v1878_v23  ;;  %v4588_v48 = vadd.f32 %v4580_v9, %v4482_v38  ;;  %8836 = vmatpush3.bf16.msra.mxu1 %v8833_v31 }
  0x78   :  { %v4658_v11 = vrot.slane %v12888_v63, %v9232_v15  ;;  %v4760_v2 = vrot.slane %v12889_v35, %v9232_v15  ;;  %v4764_v18 = vrot.slane %v12890_v44, %v9232_v15  ;;  %v12892_v53 = vcombine.high %v9600_v52, %v9600_v52 }
  0x79   :  { %v4866_v33 = vrot.slane %v12891_v5, %v9232_v15  ;;  %v4693_v28 = vadd.f32 %v4685_v42, %v4587_v6  ;;  %v12893_v16 = vcombine.high %v9607_v58, %v9607_v58  ;;  %v12894_v52 = vcombine.high %v9617_v40, %v9617_v40 }
  0x7a   :  { %v4686_v13 = vmul.f32 %v4658_v11, %v9357_v62  ;;  %v4870_v1 = vrot.slane %v12892_v53, %v9232_v15  ;;  %v4791_v36 = vmul.f32 %v4760_v2, %v9376_v39  ;;  %v4792_v56 = vmul.f32 %v4764_v18, %v9376_v39 }
  0x7b   :  { %v4897_v29 = vmul.f32 %v4866_v33, %v9395_v46  ;;  %v4972_v8 = vrot.slane %v12893_v16, %v9232_v15  ;;  %v4976_v61 = vrot.slane %v12894_v52, %v9232_v15  ;;  %v12895_v34 = vcombine.high %v9235_v21, %v9235_v21  ;;  %v12901_v16 = vld [vmem:[#allocation13_spill] sm:$0xff] }
  0x7c   :  { %v4694_v7 = vadd.f32 %v4686_v13, %v4588_v48  ;;  %v4898_v12 = vmul.f32 %v4870_v1, %v9395_v46  ;;  %v4799_v51 = vadd.f32 %v4791_v36, %v4693_v28  ;;  %v12896_v41 = vcombine.high %v9238_v22, %v9238_v22 }
  0x7d   :  { %v1050_v19 = vrot.slane %v12895_v34, %v9230_v14  ;;  %v12897_v58 = vcombine.high %v9241_v26, %v9241_v26  ;;  %v5003_v40 = vmul.f32 %v4972_v8, %v9425_v60  ;;  %v5004_v25 = vmul.f32 %v4976_v61, %v9425_v60 }
  0x7e   :  { %v1148_v24 = vrot.slane %v12896_v41, %v9230_v14  ;;  %v4800_v47 = vadd.f32 %v4792_v56, %v4694_v7  ;;  %v12898_v21 = vcombine.high %v9244_v27, %v9244_v27  ;;  %v4905_v30 = vadd.f32 %v4897_v29, %v4799_v51 }
  0x7f   :  { %v1254_v10 = vrot.slane %v12897_v58, %v9230_v14  ;;  %v1052_v20 = vcombine.high %v1050_v19, %v1050_v19  ;;  %v9802_v22 = vrot.slane %v1050_v19, %v9230_v14  ;;  %v12902_v8 = vcombine.high %v12901_v16, %v12901_v16  ;;  %v12903_v19 = vld [vmem:[#allocation14_spill] sm:$0xff] }
  0x80   :  { %v1360_v43 = vrot.slane %v12898_v21, %v9230_v14  ;;  %v1150_v3 = vcombine.high %v1148_v24, %v1148_v24  ;;  %v4906_v55 = vadd.f32 %v4898_v12, %v4800_v47  ;;  %v9805_v26 = vrot.slane %v1148_v24, %v9230_v14 }
  0x81   :  { %v1256_v57 = vcombine.high %v1254_v10, %v1254_v10  ;;  %v9808_v37 = vrot.slane %v1254_v10, %v9230_v14  ;;  %v5011_v54 = vadd.f32 %v5003_v40, %v4905_v30  ;;  %v9811_v23 = vrot.slane %v1052_v20, %v9230_v14 }
  0x82   :  { %v1104_v27 = vrot.slane %v9802_v22, %v9232_v15  ;;  %v9816_v31 = vrot.slane %v1150_v3, %v9230_v14  ;;  %v5012_v49 = vadd.f32 %v5004_v25, %v4906_v55  ;;  %v1202_v9 = vrot.slane %v9805_v26, %v9232_v15 }
  0x83   :  { %v9821_v0 = vrot.slane %v1256_v57, %v9230_v14  ;;  %v1308_v38 = vrot.slane %v9808_v37, %v9232_v15  ;;  %v5019_v63 = vmul.f32 %v5011_v54, %v5011_v54  ;;  %v1108_v11 = vrot.slane %v9811_v23, %v9232_v15 }
  0x84   :  { %v1129_v42 = vmul.f32 %v1104_v27, %v9282_v45  ;;  %v1206_v6 = vrot.slane %v9816_v31, %v9232_v15  ;;  %v5020_v35 = vmul.f32 %v5012_v49, %v5012_v49  ;;  %v8897_v2 = vpack.c.bf16 %v5012_v49, %v5011_v54 }
  0x85   :  { %v1227_v44 = vmul.f32 %v1202_v9, %v9290_v50  ;;  %v1312_v18 = vrot.slane %v9821_v0, %v9232_v15  ;;  %v5026_v5 = vadd.f32 %v9674_v32, %v5019_v63  ;;  %v1130_v33 = vmul.f32 %v1108_v11, %v9282_v45  ;;  %v12899_v32 = vld [vmem:[#allocation12_spill] sm:$0xff] }
  0x86   :  { %v1228_v48 = vmul.f32 %v1206_v6, %v9290_v50  ;;  %v1333_v13 = vmul.f32 %v1308_v38, %v9311_v59  ;;  %8898 = vmatprep.subr.bf16.mxu0 %v8897_v2  ;;  %v1362_v28 = vcombine.high %v1360_v43, %v1360_v43  ;;  %v9839_v36 = vrot.slane %v1360_v43, %v9230_v14 }
  0x87   :  { %v1235_v53 = vadd.f32 %v1227_v44, %v1129_v42  ;;  %v1334_v1 = vmul.f32 %v1312_v18, %v9311_v59  ;;  %v9841_v56 = vadd.f32 %v5026_v5, %v5020_v35  ;;  %8900 = vmatpush3.bf16.msra.mxu0 %v8897_v2  ;;  %v12900_v7 = vcombine.high %v12899_v32, %v12899_v32  ;;  %v12905_v44 = vld [vmem:[#allocation15_spill] sm:$0xff]  ;;  %v12907_v32 = vld [vmem:[#allocation16_spill] sm:$0xff] }
  0x88   :  { %v1236_v29 = vadd.f32 %v1228_v48, %v1130_v33  ;;  %v1572_v52 = vrot.slane %v12902_v8, %v9230_v14  ;;  %v9852_v51 = vrot.slane %v1362_v28, %v9230_v14  ;;  %v1414_v34 = vrot.slane %v9839_v36, %v9232_v15 }
  0x89   :  { %v1466_v12 = vrot.slane %v12900_v7, %v9230_v14  ;;  %v1341_v61 = vadd.f32 %v1333_v13, %v1235_v53  ;;  %v12904_v41 = vcombine.high %v12903_v19, %v12903_v19  ;;  %v12906_v18 = vcombine.high %v12905_v44, %v12905_v44  ;;  %v12911_v19 = vld [vmem:[#allocation18_spill] sm:$0xff] }
  0x8a   :  { %v1342_v58 = vadd.f32 %v1334_v1, %v1236_v29  ;;  %v1574_v40 = vcombine.high %v1572_v52, %v1572_v52  ;;  %v1418_v25 = vrot.slane %v9852_v51, %v9232_v15  ;;  %v1439_v21 = vmul.f32 %v1414_v34, %v9327_v4 }
  0x8b   :  { %v1678_v24 = vrot.slane %v12904_v41, %v9230_v14  ;;  %v1468_v10 = vcombine.high %v1466_v12, %v1466_v12  ;;  %v9861_v47 = vrot.slane %v1466_v12, %v9230_v14  ;;  %v9867_v43 = vrot.slane %v1572_v52, %v9230_v14  ;;  %v12909_v52 = vld [vmem:[#allocation17_spill] sm:$0xff] }
  0x8c   :  { %v9875_v55 = vrot.slane %v1574_v40, %v9230_v14  ;;  %v1440_v54 = vmul.f32 %v1418_v25, %v9327_v4  ;;  %v1447_v27 = vadd.f32 %v1439_v21, %v1341_v61  ;;  %v1784_v5 = vrot.slane %v12906_v18, %v9230_v14 }
  0x8d   :  { %v1680_v30 = vcombine.high %v1678_v24, %v1678_v24  ;;  %v9870_v20 = vrot.slane %v1468_v10, %v9230_v14  ;;  %v1520_v3 = vrot.slane %v9861_v47, %v9232_v15  ;;  %v9878_v57 = vrot.slane %v1678_v24, %v9230_v14 }
  0x8e   :  { %v1626_v49 = vrot.slane %v9867_v43, %v9232_v15  ;;  %v1630_v11 = vrot.slane %v9875_v55, %v9232_v15  ;;  %v1448_v6 = vadd.f32 %v1440_v54, %v1342_v58  ;;  %v1786_v28 = vcombine.high %v1784_v5, %v1784_v5 }
  0x8f   :  { %v9884_v9 = vrot.slane %v1680_v30, %v9230_v14  ;;  %v1524_v38 = vrot.slane %v9870_v20, %v9232_v15  ;;  %v1545_v63 = vmul.f32 %v1520_v3, %v9357_v62  ;;  %v1732_v42 = vrot.slane %v9878_v57, %v9232_v15 }
  0x90   :  { %v1651_v35 = vmul.f32 %v1626_v49, %v9376_v39  ;;  %v1652_v13 = vmul.f32 %v1630_v11, %v9376_v39  ;;  %v9905_v29 = vrot.slane %v1784_v5, %v9230_v14  ;;  %v12908_v7 = vcombine.high %v12907_v32, %v12907_v32 }
  0x91   :  { %v1736_v2 = vrot.slane %v9884_v9, %v9232_v15  ;;  %v1546_v33 = vmul.f32 %v1524_v38, %v9357_v62  ;;  %v1553_v48 = vadd.f32 %v1545_v63, %v1447_v27  ;;  %v1757_v53 = vmul.f32 %v1732_v42, %v9395_v46 }
  0x92   :  { %v4192_v12 = vrot.slane %v12908_v7, %v9230_v14  ;;  %v12910_v61 = vcombine.high %v12909_v52, %v12909_v52  ;;  %v12912_v41 = vcombine.high %v12911_v19, %v12911_v19  ;;  %v9920_v58 = vrot.slane %v1786_v28, %v9230_v14  ;;  %v12913_v7 = vld [vmem:[#allocation19_spill] sm:$0xff] }
  0x93   :  { %v1758_v1 = vmul.f32 %v1736_v2, %v9395_v46  ;;  %v1554_v16 = vadd.f32 %v1546_v33, %v1448_v6  ;;  %v1659_v8 = vadd.f32 %v1651_v35, %v1553_v48  ;;  %v1838_v10 = vrot.slane %v9905_v29, %v9232_v15 }
  0x94   :  { %v4290_v34 = vrot.slane %v12910_v61, %v9230_v14  ;;  %v4396_v24 = vrot.slane %v12912_v41, %v9230_v14  ;;  %v4194_v40 = vcombine.high %v4192_v12, %v4192_v12  ;;  %v9925_v25 = vrot.slane %v4192_v12, %v9230_v14 }
  0x95   :  { %v1660_v21 = vadd.f32 %v1652_v13, %v1554_v16  ;;  %v1765_v30 = vadd.f32 %v1757_v53, %v1659_v8  ;;  %v1842_v27 = vrot.slane %v9920_v58, %v9232_v15  ;;  %v1863_v49 = vmul.f32 %v1838_v10, %v9425_v60 }
  0x96   :  { %v4292_v3 = vcombine.high %v4290_v34, %v4290_v34  ;;  %v9928_v54 = vrot.slane %v4290_v34, %v9230_v14  ;;  %v9934_v38 = vrot.slane %v4194_v40, %v9230_v14  ;;  %v4246_v63 = vrot.slane %v9925_v25, %v9232_v15 }
  0x97   :  { %v1766_v11 = vadd.f32 %v1758_v1, %v1660_v21  ;;  %v4398_v35 = vcombine.high %v4396_v24, %v4396_v24  ;;  %v1864_v2 = vmul.f32 %v1842_v27, %v9425_v60  ;;  %v1871_v44 = vadd.f32 %v1863_v49, %v1765_v30 }
  0x98   :  { %v9939_v42 = vrot.slane %v4292_v3, %v9230_v14  ;;  %v4344_v6 = vrot.slane %v9928_v54, %v9232_v15  ;;  %v4250_v18 = vrot.slane %v9934_v38, %v9232_v15  ;;  %v4271_v5 = vmul.f32 %v4246_v63, %v9282_v45  ;;  %v12915_v63 = vld [vmem:[#allocation20_spill] sm:$0xff] }
  0x99   :  { %v9951_v13 = vrot.slane %v4396_v24, %v9230_v14  ;;  %v9954_v53 = vrot.slane %v4398_v35, %v9230_v14  ;;  %v1872_v1 = vadd.f32 %v1864_v2, %v1766_v11  ;;  %v1879_v28 = vmul.f32 %v1871_v44, %v1871_v44 }
  0x9a   :  { %v4348_v33 = vrot.slane %v9939_v42, %v9232_v15  ;;  %v4369_v48 = vmul.f32 %v4344_v6, %v9290_v50  ;;  %v4272_v32 = vmul.f32 %v4250_v18, %v9282_v45  ;;  %v12914_v12 = vcombine.high %v12913_v7, %v12913_v7  ;;  %v12917_v6 = vld [vmem:[#allocation21_spill] sm:$0xff] }
  0x9b   :  { %v4450_v61 = vrot.slane %v9951_v13, %v9232_v15  ;;  %v4454_v34 = vrot.slane %v9954_v53, %v9232_v15  ;;  %v1880_v19 = vmul.f32 %v1872_v1, %v1872_v1  ;;  %v1886_v41 = vadd.f32 %v9764_v17, %v1879_v28 }
  0x9c   :  { %v4502_v16 = vrot.slane %v12914_v12, %v9230_v14  ;;  %v4370_v8 = vmul.f32 %v4348_v33, %v9290_v50  ;;  %v4377_v52 = vadd.f32 %v4369_v48, %v4271_v5  ;;  %v8837_v24 = vpack.c.bf16 %v1872_v1, %v1871_v44  ;;  %v12919_v33 = vld [vmem:[#allocation22_spill] sm:$0xff] }
  0x9d   :  { %v4475_v21 = vmul.f32 %v4450_v61, %v9311_v59  ;;  %v4476_v30 = vmul.f32 %v4454_v34, %v9311_v59  ;;  %v9972_v27 = vadd.f32 %v1886_v41, %v1880_v19  ;;  %v12916_v17 = vcombine.high %v12915_v63, %v12915_v63 }
  0x9e   :  { %v4504_v10 = vcombine.high %v4502_v16, %v4502_v16  ;;  %v4378_v40 = vadd.f32 %v4370_v8, %v4272_v32  ;;  %v9970_v3 = vrot.slane %v4502_v16, %v9230_v14  ;;  %8838 = vmatprep.subr.bf16.mxu1 %v8837_v24  ;;  %v12918_v35 = vcombine.high %v12917_v6, %v12917_v6 }
  0x9f   :  { %v4608_v11 = vrot.slane %v12916_v17, %v9230_v14  ;;  %v4483_v44 = vadd.f32 %v4475_v21, %v4377_v52  ;;  %v12920_v48 = vcombine.high %v12919_v33, %v12919_v33  ;;  %8840 = vmatpush3.bf16.msra.mxu1 %v8837_v24 }
  0xa0   :  { %v9975_v49 = vrot.slane %v4504_v10, %v9230_v14  ;;  %v4714_v2 = vrot.slane %v12918_v35, %v9230_v14  ;;  %v4484_v18 = vadd.f32 %v4476_v30, %v4378_v40  ;;  %v4556_v5 = vrot.slane %v9970_v3, %v9232_v15 }
  0xa1   :  { %v4820_v1 = vrot.slane %v12920_v48, %v9230_v14  ;;  %v4610_v32 = vcombine.high %v4608_v11, %v4608_v11  ;;  %v9994_v7 = vrot.slane %v4608_v11, %v9230_v14 }
  0xa2   :  { %v4560_v28 = vrot.slane %v9975_v49, %v9232_v15  ;;  %v4716_v12 = vcombine.high %v4714_v2, %v4714_v2  ;;  %v4581_v16 = vmul.f32 %v4556_v5, %v9327_v4  ;;  %v9998_v8 = vrot.slane %v4714_v2, %v9230_v14  ;;  %v12921_v5 = vld [vmem:[#allocation23_spill] sm:$0xff] }
  0xa3   :  { %v4822_v52 = vcombine.high %v4820_v1, %v4820_v1  ;;  %v10001_v61 = vrot.slane %v4820_v1, %v9230_v14  ;;  %v10005_v19 = vrot.slane %v4610_v32, %v9230_v14  ;;  %v4662_v41 = vrot.slane %v9994_v7, %v9232_v15 }
  0xa4   :  { %v4582_v34 = vmul.f32 %v4560_v28, %v9327_v4  ;;  %v10010_v24 = vrot.slane %v4716_v12, %v9230_v14  ;;  %v4589_v10 = vadd.f32 %v4581_v16, %v4483_v44  ;;  %v4768_v40 = vrot.slane %v9998_v8, %v9232_v15 }
  0xa5   :  { %v10015_v21 = vrot.slane %v4822_v52, %v9230_v14  ;;  %v4874_v30 = vrot.slane %v10001_v61, %v9232_v15  ;;  %v4666_v17 = vrot.slane %v10005_v19, %v9232_v15  ;;  %v4687_v11 = vmul.f32 %v4662_v41, %v9357_v62 }
  0xa6   :  { %v4590_v63 = vadd.f32 %v4582_v34, %v4484_v18  ;;  %v4772_v6 = vrot.slane %v10010_v24, %v9232_v15  ;;  %v4793_v35 = vmul.f32 %v4768_v40, %v9376_v39  ;;  %v12922_v33 = vcombine.high %v12921_v5, %v12921_v5 }
  0xa7   :  { %v4878_v2 = vrot.slane %v10015_v21, %v9232_v15  ;;  %v4899_v44 = vmul.f32 %v4874_v30, %v9395_v46  ;;  %v4688_v48 = vmul.f32 %v4666_v17, %v9357_v62  ;;  %v4695_v1 = vadd.f32 %v4687_v11, %v4589_v10 }
  0xa8   :  { %v4926_v18 = vrot.slane %v12922_v33, %v9230_v14  ;;  %v4794_v28 = vmul.f32 %v4772_v6, %v9376_v39  ;;  %v1082_v32 = vcombine.high %v9802_v22, %v9802_v22  ;;  %v1084_v34 = vcombine.high %v9811_v23, %v9811_v23 }
  0xa9   :  { %v4900_v12 = vmul.f32 %v4878_v2, %v9395_v46  ;;  %v4696_v41 = vadd.f32 %v4688_v48, %v4590_v63  ;;  %v4801_v40 = vadd.f32 %v4793_v35, %v4695_v1  ;;  %v1180_v10 = vcombine.high %v9805_v26, %v9805_v26 }
  0xaa   :  { %v4928_v16 = vcombine.high %v4926_v18, %v4926_v18  ;;  %v10038_v52 = vrot.slane %v4926_v18, %v9230_v14  ;;  %v1112_v30 = vrot.slane %v1082_v32, %v9232_v15  ;;  %v1116_v11 = vrot.slane %v1084_v34, %v9232_v15 }
  0xab   :  { %v1182_v6 = vcombine.high %v9816_v31, %v9816_v31  ;;  %v4802_v2 = vadd.f32 %v4794_v28, %v4696_v41  ;;  %v4907_v23 = vadd.f32 %v4899_v44, %v4801_v40  ;;  %v1210_v35 = vrot.slane %v1180_v10, %v9232_v15 }
  0xac   :  { %v10046_v17 = vrot.slane %v4928_v16, %v9230_v14  ;;  %v4980_v22 = vrot.slane %v10038_v52, %v9232_v15  ;;  %v1131_v63 = vmul.f32 %v1112_v30, %v9282_v45  ;;  %v1132_v33 = vmul.f32 %v1116_v11, %v9282_v45 }
  0xad   :  { %v1214_v18 = vrot.slane %v1182_v6, %v9232_v15  ;;  %v4908_v48 = vadd.f32 %v4900_v12, %v4802_v2  ;;  %v1229_v1 = vmul.f32 %v1210_v35, %v9290_v50  ;;  %v1286_v31 = vcombine.high %v9808_v37, %v9808_v37 }
  0xae   :  { %v4984_v26 = vrot.slane %v10046_v17, %v9232_v15  ;;  %v5005_v5 = vmul.f32 %v4980_v22, %v9425_v60  ;;  %v1288_v44 = vcombine.high %v9821_v0, %v9821_v0  ;;  %v1392_v34 = vcombine.high %v9839_v36, %v9839_v36 }
  0xaf   :  { %v1230_v16 = vmul.f32 %v1214_v18, %v9290_v50  ;;  %v1237_v45 = vadd.f32 %v1229_v1, %v1131_v63  ;;  %v1316_v41 = vrot.slane %v1286_v31, %v9232_v15  ;;  %v1394_v40 = vcombine.high %v9852_v51, %v9852_v51 }
  0xb0   :  { %v5006_v28 = vmul.f32 %v4984_v26, %v9425_v60  ;;  %v5013_v32 = vadd.f32 %v5005_v5, %v4907_v23  ;;  %v1320_v12 = vrot.slane %v1288_v44, %v9232_v15  ;;  %v1422_v0 = vrot.slane %v1392_v34, %v9232_v15 }
  0xb1   :  { %v1238_v10 = vadd.f32 %v1230_v16, %v1132_v33  ;;  %v1335_v22 = vmul.f32 %v1316_v41, %v9311_v59  ;;  %v1426_v11 = vrot.slane %v1394_v40, %v9232_v15  ;;  %v1498_v36 = vcombine.high %v9861_v47, %v9861_v47 }
  0xb2   :  { %v5014_v37 = vadd.f32 %v5006_v28, %v4908_v48  ;;  %v5021_v30 = vmul.f32 %v5013_v32, %v5013_v32  ;;  %v1336_v50 = vmul.f32 %v1320_v12, %v9311_v59  ;;  %v1441_v51 = vmul.f32 %v1422_v0, %v9327_v4 }
  0xb3   :  { %v1343_v63 = vadd.f32 %v1335_v22, %v1237_v45  ;;  %v1442_v26 = vmul.f32 %v1426_v11, %v9327_v4  ;;  %v1500_v5 = vcombine.high %v9870_v20, %v9870_v20  ;;  %v1528_v59 = vrot.slane %v1498_v36, %v9232_v15 }
  0xb4   :  { %v5022_v6 = vmul.f32 %v5014_v37, %v5014_v37  ;;  %v5028_v2 = vadd.f32 %v9841_v56, %v5021_v30  ;;  %v8901_v23 = vpack.c.bf16 %v5014_v37, %v5013_v32  ;;  %v1344_v35 = vadd.f32 %v1336_v50, %v1238_v10 }
  0xb5   :  { %v1604_v47 = vcombine.high %v9867_v43, %v9867_v43  ;;  %v1606_v56 = vcombine.high %v9875_v55, %v9875_v55  ;;  %v1449_v18 = vadd.f32 %v1441_v51, %v1343_v63  ;;  %v1532_v1 = vrot.slane %v1500_v5, %v9232_v15 }
  0xb6   :  { %v10084_v33 = vadd.f32 %v5028_v2, %v5022_v6  ;;  %8902 = vmatprep.subr.bf16.mxu0 %v8901_v23  ;;  %v1450_v48 = vadd.f32 %v1442_v26, %v1344_v35  ;;  %v1710_v4 = vcombine.high %v9878_v57, %v9878_v57  ;;  %v1547_v20 = vmul.f32 %v1528_v59, %v9357_v62 }
  0xb7   :  { %8904 = vmatpush3.bf16.msra.mxu0 %v8901_v23  ;;  %v1634_v31 = vrot.slane %v1604_v47, %v9232_v15  ;;  %v1638_v44 = vrot.slane %v1606_v56, %v9232_v15  ;;  %v1712_v43 = vcombine.high %v9884_v9, %v9884_v9  ;;  %v1548_v28 = vmul.f32 %v1532_v1, %v9357_v62  ;;  %v10129_v23 = vld [vmem:[#allocation3 + $0x10] sm:$0xff] }
  0xb8   :  { %v1740_v55 = vrot.slane %v1710_v4, %v9232_v15  ;;  %v1816_v32 = vcombine.high %v9905_v29, %v9905_v29  ;;  %v1818_v16 = vcombine.high %v9920_v58, %v9920_v58  ;;  %v1555_v57 = vadd.f32 %v1547_v20, %v1449_v18  ;;  %v10144_v4 = vld [vmem:[#allocation3 + $0x40] sm:$0xff] }
  0xb9   :  { %v1653_v34 = vmul.f32 %v1634_v31, %v9376_v39  ;;  %v1654_v45 = vmul.f32 %v1638_v44, %v9376_v39  ;;  %v1744_v41 = vrot.slane %v1712_v43, %v9232_v15  ;;  %v1556_v12 = vadd.f32 %v1548_v28, %v1450_v48 }
  0xba   :  { %v1759_v9 = vmul.f32 %v1740_v55, %v9395_v46  ;;  %v1846_v62 = vrot.slane %v1816_v32, %v9232_v15  ;;  %v1850_v40 = vrot.slane %v1818_v16, %v9232_v15  ;;  %v4224_v58 = vcombine.high %v9925_v25, %v9925_v25 }
  0xbb   :  { %v1661_v37 = vadd.f32 %v1653_v34, %v1555_v57  ;;  %v1760_v29 = vmul.f32 %v1744_v41, %v9395_v46  ;;  %v4226_v30 = vcombine.high %v9934_v38, %v9934_v38  ;;  %v1662_v10 = vadd.f32 %v1654_v45, %v1556_v12  ;;  %v10155_v34 = vld [vmem:[#allocation3 + $0x58] sm:$0xff] }
  0xbc   :  { %v1865_v39 = vmul.f32 %v1846_v62, %v9425_v60  ;;  %v1866_v0 = vmul.f32 %v1850_v40, %v9425_v60  ;;  %v4322_v22 = vcombine.high %v9928_v54, %v9928_v54  ;;  %v4254_v11 = vrot.slane %v4224_v58, %v9232_v15  ;;  %v10168_v58 = vld [vmem:[#allocation3 + $0x70] sm:$0xff] }
  0xbd   :  { %v1767_v50 = vadd.f32 %v1759_v9, %v1661_v37  ;;  %v4258_v36 = vrot.slane %v4226_v30, %v9232_v15  ;;  %v4324_v46 = vcombine.high %v9939_v42, %v9939_v42  ;;  %v1768_v25 = vadd.f32 %v1760_v29, %v1662_v10  ;;  %v10134_v42 = vld [vmem:[#allocation3 + $0x28] sm:$0xff] }
  0xbe   :  { %v4352_v6 = vrot.slane %v4322_v22, %v9232_v15  ;;  %v4428_v38 = vcombine.high %v9951_v13, %v9951_v13  ;;  %v4430_v60 = vcombine.high %v9954_v53, %v9954_v53  ;;  %v4273_v54 = vmul.f32 %v10129_v23, %v4254_v11 }
  0xbf   :  { %v1873_v2 = vadd.f32 %v1865_v39, %v1767_v50  ;;  %v4274_v51 = vmul.f32 %v10129_v23, %v4258_v36  ;;  %v4356_v63 = vrot.slane %v4324_v46, %v9232_v15  ;;  %v1874_v35 = vadd.f32 %v1866_v0, %v1768_v25  ;;  %v10173_v39 = vld [vmem:[#allocation3 + $0x88] sm:$0xff]  ;;  %v1898_v46 = vld [vmem:[#allocation6 + $0x20] sm:$0xff] }
  0xc0   :  { %v4371_v26 = vmul.f32 %v10134_v42, %v4352_v6  ;;  %v4458_v5 = vrot.slane %v4428_v38, %v9232_v15  ;;  %v4462_v13 = vrot.slane %v4430_v60, %v9232_v15  ;;  %v4534_v47 = vcombine.high %v9970_v3, %v9970_v3  ;;  %v8433_v25 = vld [vmem:[#allocation3] ss:$0 sm:$0xff]  ;;  %8655 = vmatprep.mubr.msk.f32.mxu1 %vm1902_vm0, %v1898_v46 }
  0xc1   :  { %v1881_v59 = vmul.f32 %v1873_v2, %v1873_v2  ;;  %v4372_v53 = vmul.f32 %v10134_v42, %v4356_v63  ;;  %v4536_v56 = vcombine.high %v9975_v49, %v9975_v49  ;;  %v1882_v18 = vmul.f32 %v1874_v35, %v1874_v35  ;;  %v10185_v60 = vld [vmem:[#allocation3 + $0xa0] sm:$0xff] }
  0xc2   :  { %v8841_v48 = vpack.c.bf16 %v1874_v35, %v1873_v2  ;;  %v4379_v1 = vadd.f32 %v4371_v26, %v4273_v54  ;;  %v4477_v20 = vmul.f32 %v10144_v4, %v4458_v5  ;;  %v4478_v43 = vmul.f32 %v10144_v4, %v4462_v13  ;;  %v8434_v54 = vld [vmem:[#allocation3 + $0x18] ss:$0 sm:$0xff]  ;;  %v5040_v63 = vld [vmem:[#allocation6 + $0x80] sm:$0xff]  ;;  %v8436_v5 = vld [vmem:[#allocation3 + $0x48] ss:$0 sm:$0xff] }
  0xc3   :  { %v1888_v31 = vadd.f32 %v9972_v27, %v1881_v59  ;;  %v4380_v44 = vadd.f32 %v4372_v53, %v4274_v51  ;;  %v4564_v28 = vrot.slane %v4534_v47, %v9232_v15  ;;  %v4568_v3 = vrot.slane %v4536_v56, %v9232_v15  ;;  %v8435_v51 = vld [vmem:[#allocation3 + $0x30] ss:$0 sm:$0xff]  ;;  %v1899_v13 = vld [vmem:[#allocation6 + $0x28] sm:$0xff]  ;;  %8743 = vmatprep.mubr.msk.f32.mxu0 %vm1902_vm0, %v5040_v63 }
  0xc4   :  { %8842 = vmatprep.subr.bf16.mxu1 %v8841_v48  ;;  %v4485_v55 = vadd.f32 %v4477_v20, %v4379_v1  ;;  %v4640_v49 = vcombine.high %v9994_v7, %v9994_v7  ;;  %v4642_v32 = vcombine.high %v10005_v19, %v10005_v19  ;;  %v4746_v45 = vcombine.high %v9998_v8, %v9998_v8  ;;  %v10194_v47 = vld [vmem:[#allocation3 + $0x8] sm:$0xff]  ;;  %v8437_v1 = vld [vmem:[#allocation3 + $0x60] ss:$0 sm:$0xff]  ;;  %v8438_v20 = vld [vmem:[#allocation3 + $0x78] ss:$0 sm:$0xff] }
  0xc5   :  { %v1889_v16 = vadd.f32 %v1888_v31, %v1882_v18  ;;  %v4486_v57 = vadd.f32 %v4478_v43, %v4380_v44  ;;  %v4583_v27 = vmul.f32 %v10155_v34, %v4564_v28  ;;  %8844 = vmatpush3.bf16.msra.mxu1 %v8841_v48  ;;  %v4584_v41 = vmul.f32 %v10155_v34, %v4568_v3  ;;  %v10199_v18 = vld [vmem:[#allocation3 + $0xb8] sm:$0xff]  ;;  %v10202_v31 = vld [vmem:[#allocation3 + $0x20] sm:$0xff] }
  0xc6   :  { %v4670_v12 = vrot.slane %v4640_v49, %v9232_v15  ;;  %v4674_v9 = vrot.slane %v4642_v32, %v9232_v15  ;;  %v4748_v7 = vcombine.high %v10010_v24, %v10010_v24  ;;  %v4776_v40 = vrot.slane %v4746_v45, %v9232_v15  ;;  %v10207_v43 = vld [vmem:[#allocation3 + $0x38] sm:$0xff]  ;;  %v10214_v49 = vld [vmem:[#allocation3 + $0x50] sm:$0xff]  ;;  %v10221_v45 = vld [vmem:[#allocation3 + $0x68] sm:$0xff] }
  0xc7   :  { %v1890_v19 = vrot.slane %v1889_v16, 4  ;;  %v4591_v62 = vadd.f32 %v4583_v27, %v4485_v55  ;;  %v4852_v37 = vcombine.high %v10001_v61, %v10001_v61  ;;  %v4592_v29 = vadd.f32 %v4584_v41, %v4486_v57 }
  0xc8   :  { %v4689_v8 = vmul.f32 %v10168_v58, %v4670_v12  ;;  %v4690_v30 = vmul.f32 %v10168_v58, %v4674_v9  ;;  %v4780_v10 = vrot.slane %v4748_v7, %v9232_v15  ;;  %v4795_v24 = vmul.f32 %v10173_v39, %v4776_v40  ;;  %8656 = vmatmul.mubr.msk.f32.vlgmr.msra.gmra.mrb[0].mxu1 %vm1902_vm0, %v1899_v13  ;;  %v10226_v12 = vld [vmem:[#allocation3 + $0x80] sm:$0xff] }
  0xc9   :  { %v4854_v0 = vcombine.high %v10015_v21, %v10015_v21  ;;  %v4882_v22 = vrot.slane %v4852_v37, %v9232_v15  ;;  %v4958_v36 = vcombine.high %v10038_v52, %v10038_v52  ;;  %v10182_v6 = vadd.f32 %v1890_v19, %v1889_v16 }
  0xca   :  { %v4697_v50 = vadd.f32 %v4689_v8, %v4591_v62  ;;  %v4698_v61 = vadd.f32 %v4690_v30, %v4592_v29  ;;  %v4796_v11 = vmul.f32 %v10173_v39, %v4780_v10  ;;  %v4960_v21 = vcombine.high %v10046_v17, %v10046_v17 }
  0xcb   :  { %v4886_v38 = vrot.slane %v4854_v0, %v9232_v15  ;;  %v4901_v2 = vmul.f32 %v10185_v60, %v4882_v22  ;;  %v4988_v52 = vrot.slane %v4958_v36, %v9232_v15  ;;  %v10197_v17 = vmul.f32 %v10194_v47, %v8433_v25 }
  0xcc   :  { %v4803_v35 = vadd.f32 %v4795_v24, %v4697_v50  ;;  %v4804_v26 = vadd.f32 %v4796_v11, %v4698_v61  ;;  %v4992_v53 = vrot.slane %v4960_v21, %v9232_v15  ;;  %v10205_v44 = vmul.f32 %v10202_v31, %v8434_v54  ;;  %v8439_v61 = vld [vmem:[#allocation3 + $0x90] ss:$0 sm:$0xff]  ;;  %v5041_v54 = vld [vmem:[#allocation6 + $0x88] sm:$0xff] }
  0xcd   :  { %v4902_v59 = vmul.f32 %v10185_v60, %v4886_v38  ;;  %v5007_v48 = vmul.f32 %v10199_v18, %v4988_v52  ;;  %v10210_v28 = vmul.f32 %v10207_v43, %v8435_v51  ;;  %v10217_v32 = vmul.f32 %v10214_v49, %v8436_v5  ;;  %v1900_v52 = vld [vmem:[#allocation6 + $0x30] sm:$0xff]  ;;  %v10270_v5 = vld [vmem:[#allocation3 + $0x98] sm:$0xff] }
  0xce   :  { %v4909_v56 = vadd.f32 %v4901_v2, %v4803_v35  ;;  %v5008_v3 = vmul.f32 %v10199_v18, %v4992_v53  ;;  %v1892_v16 = vrot.slane %v10182_v6, 2  ;;  %v10224_v41 = vmul.f32 %v10221_v45, %v8437_v1  ;;  %8658 = vmatprep.mubr.msk.f32.mxu1 %vm1902_vm0, %v1900_v52 }
  0xcf   :  { %v4910_v55 = vadd.f32 %v4902_v59, %v4804_v26  ;;  %v10229_v9 = vmul.f32 %v10226_v12, %v8438_v20  ;;  %v129_v7 = vrot.slane %v10197_v17, %v9230_v14  ;;  %v227_v62 = vrot.slane %v10205_v44, %v9230_v14 }
  0xd0   :  { %v5015_v57 = vadd.f32 %v5007_v48, %v4909_v56  ;;  %v333_v40 = vrot.slane %v10210_v28, %v9230_v14  ;;  %v439_v37 = vrot.slane %v10217_v32, %v9230_v14  ;;  %v10273_v13 = vmul.f32 %v10270_v5, %v8439_v61  ;;  %v8440_v48 = vld [vmem:[#allocation3 + $0xa8] ss:$0 sm:$0xff] }
  0xd1   :  { %v5016_v27 = vadd.f32 %v5008_v3, %v4910_v55  ;;  %12923 = vst [vmem:[#allocation12_spill] sm:$0xff] %v10229_v9  ;;  %v137_v30 = vcombine.high %v129_v7, %v129_v7  ;;  %v10240_v10 = vrot.slane %v129_v7, %v9230_v14  ;;  %v235_v0 = vcombine.high %v227_v62, %v227_v62 }
  0xd2   :  { %v5023_v19 = vmul.f32 %v5015_v57, %v5015_v57  ;;  %v10244_v22 = vrot.slane %v227_v62, %v9230_v14  ;;  %v341_v50 = vcombine.high %v333_v40, %v333_v40  ;;  %v10252_v46 = vrot.slane %v333_v40, %v9230_v14  ;;  %12924 = vst [vmem:[#allocation13_spill] sm:$0xff] %v10273_v13 }
  0xd3   :  { %v5024_v29 = vmul.f32 %v5016_v27, %v5016_v27  ;;  %v8905_v8 = vpack.c.bf16 %v5016_v27, %v5015_v57  ;;  %v10247_v11 = vrot.slane %v137_v30, %v9230_v14  ;;  %v174_v36 = vrot.slane %v10240_v10, %v9232_v15 }
  0xd4   :  { %v5030_v24 = vadd.f32 %v10084_v33, %v5023_v19  ;;  %v447_v25 = vcombine.high %v439_v37, %v439_v37  ;;  %v10255_v33 = vrot.slane %v235_v0, %v9230_v14  ;;  %v272_v2 = vrot.slane %v10244_v22, %v9232_v15 }
  0xd5   :  { %8906 = vmatprep.subr.bf16.mxu0 %v8905_v8  ;;  %v10260_v21 = vrot.slane %v341_v50, %v9230_v14  ;;  %v178_v51 = vrot.slane %v10247_v11, %v9232_v15  ;;  %v211_v63 = vmul.f32 %v10129_v23, %v174_v36  ;;  %v378_v35 = vrot.slane %v10252_v46, %v9232_v15 }
  0xd6   :  { %v5031_v38 = vadd.f32 %v5030_v24, %v5024_v29  ;;  %8908 = vmatpush3.bf16.msra.mxu0 %v8905_v8  ;;  %v10268_v26 = vrot.slane %v439_v37, %v9230_v14  ;;  %v276_v59 = vrot.slane %v10255_v33, %v9232_v15  ;;  %v309_v53 = vmul.f32 %v10134_v42, %v272_v2  ;;  %v9027_v8 = vld [vmem:[#allocation3 + $0xb0] sm:$0xff] }
  0xd7   :  { %v382_v56 = vrot.slane %v10260_v21, %v9232_v15  ;;  %v212_v1 = vmul.f32 %v10129_v23, %v178_v51  ;;  %v415_v20 = vmul.f32 %v10144_v4, %v378_v35  ;;  %v10284_v55 = vrot.slane %v447_v25, %v9230_v14 }
  0xd8   :  { %v484_v3 = vrot.slane %v10268_v26, %v9232_v15  ;;  %v10290_v57 = vadd.f32 %v1892_v16, %v10182_v6  ;;  %v310_v27 = vmul.f32 %v10134_v42, %v276_v59  ;;  %v317_v7 = vadd.f32 %v309_v53, %v211_v63  ;;  %v8498_v53 = vld [vmem:[#allocation3 + $0x7d] ss:$0 sm:$0xff] }
  0xd9   :  { %8744 = vmatmul.mubr.msk.f32.vlgmr.msra.gmra.mrb[0].mxu0 %vm1902_vm0, %v5041_v54  ;;  %v416_v19 = vmul.f32 %v10144_v4, %v382_v56  ;;  %v488_v62 = vrot.slane %v10284_v55, %v9232_v15  ;;  %v545_v37 = vrot.slane %v10224_v41, %v9230_v14  ;;  %v651_v29 = vrot.slane %v10229_v9, %v9230_v14 }
  0xda   :  { %12925 = vst [vmem:[#allocation14_spill] sm:$0xff] %v10290_v57  ;;  %v521_v40 = vmul.f32 %v10155_v34, %v484_v3  ;;  %v10301_v30 = vmul.f32 %v9027_v8, %v8440_v48  ;;  %v318_v6 = vadd.f32 %v310_v27, %v212_v1  ;;  %v423_v16 = vadd.f32 %v415_v20, %v317_v7  ;;  %v8500_v57 = vld [vmem:[#allocation3 + $0xad] ss:$0 sm:$0xff] }
  0xdb   :  { %v757_v24 = vrot.slane %v10273_v13, %v9230_v14  ;;  %v522_v0 = vmul.f32 %v10155_v34, %v488_v62  ;;  %v553_v50 = vcombine.high %v545_v37, %v545_v37  ;;  %v10307_v61 = vrot.slane %v545_v37, %v9230_v14 }
  0xdc   :  { %12926 = vst [vmem:[#allocation15_spill] sm:$0xff] %v10301_v30  ;;  %v659_v36 = vcombine.high %v651_v29, %v651_v29  ;;  %v5032_v25 = vrot.slane %v5031_v38, 4  ;;  %v424_v2 = vadd.f32 %v416_v19, %v318_v6  ;;  %v529_v54 = vadd.f32 %v521_v40, %v423_v16  ;;  %v8493_v19 = vld [vmem:[#allocation3 + $0x5] ss:$0 sm:$0xff]  ;;  %v8494_v6 = vld [vmem:[#allocation3 + $0x1d] ss:$0 sm:$0xff] }
  0xdd   :  { %v10310_v51 = vrot.slane %v651_v29, %v9230_v14  ;;  %v10313_v63 = vrot.slane %v553_v50, %v9230_v14  ;;  %v590_v35 = vrot.slane %v10307_v61, %v9232_v15  ;;  %v765_v59 = vcombine.high %v757_v24, %v757_v24 }
  0xde   :  { %v10318_v52 = vrot.slane %v659_v36, %v9230_v14  ;;  %v530_v56 = vadd.f32 %v522_v0, %v424_v2  ;;  %v10324_v1 = vrot.slane %v757_v24, %v9230_v14  ;;  %v10334_v62 = vadd.f32 %v5032_v25, %v5031_v38  ;;  %v8495_v36 = vld [vmem:[#allocation3 + $0x35] ss:$0 sm:$0xff]  ;;  %v8496_v38 = vld [vmem:[#allocation3 + $0x4d] ss:$0 sm:$0xff] }
  0xdf   :  { %v696_v48 = vrot.slane %v10310_v51, %v9232_v15  ;;  %v594_v20 = vrot.slane %v10313_v63, %v9232_v15  ;;  %v627_v3 = vmul.f32 %v10168_v58, %v590_v35  ;;  %v10332_v7 = vrot.slane %v765_v59, %v9230_v14  ;;  %v5042_v25 = vld [vmem:[#allocation6 + $0x90] sm:$0xff] }
  0xe0   :  { %v700_v27 = vrot.slane %v10318_v52, %v9232_v15  ;;  %12927 = vst [vmem:[#allocation16_spill] sm:$0xff] %v10334_v62  ;;  %v802_v37 = vrot.slane %v10324_v1, %v9232_v15  ;;  %v863_v29 = vrot.slane %v10301_v30, %v9230_v14  ;;  %v10350_v62 = vmul.f32 %v10194_v47, %v8493_v19 }
  0xe1   :  { %v733_v40 = vmul.f32 %v10173_v39, %v696_v48  ;;  %v628_v16 = vmul.f32 %v10168_v58, %v594_v20  ;;  %v635_v24 = vadd.f32 %v627_v3, %v529_v54  ;;  %v806_v50 = vrot.slane %v10332_v7, %v9232_v15  ;;  %v8497_v48 = vld [vmem:[#allocation3 + $0x65] ss:$0 sm:$0xff]  ;;  %8746 = vmatprep.mubr.msk.f32.mxu0 %vm1902_vm0, %v5042_v25 }
  0xe2   :  { %v734_v0 = vmul.f32 %v10173_v39, %v700_v27  ;;  %v839_v2 = vmul.f32 %v10185_v60, %v802_v37  ;;  %v871_v35 = vcombine.high %v863_v29, %v863_v29  ;;  %v10347_v59 = vrot.slane %v863_v29, %v9230_v14  ;;  %12928 = vst [vmem:[#allocation17_spill] sm:$0xff] %v10350_v62  ;;  %v8499_v27 = vld [vmem:[#allocation3 + $0x95] ss:$0 sm:$0xff] }
  0xe3   :  { %v636_v54 = vadd.f32 %v628_v16, %v530_v56  ;;  %v741_v20 = vadd.f32 %v733_v40, %v635_v24  ;;  %v840_v3 = vmul.f32 %v10185_v60, %v806_v50  ;;  %v10355_v30 = vmul.f32 %v10202_v31, %v8494_v6 }
  0xe4   :  { %v10358_v37 = vrot.slane %v871_v35, %v9230_v14  ;;  %v908_v29 = vrot.slane %v10347_v59, %v9232_v15  ;;  %v10363_v47 = vmul.f32 %v10207_v43, %v8495_v36  ;;  %v10366_v19 = vmul.f32 %v10214_v49, %v8496_v38 }
  0xe5   :  { %12929 = vst [vmem:[#allocation18_spill] sm:$0xff] %v10355_v30  ;;  %v742_v56 = vadd.f32 %v734_v0, %v636_v54  ;;  %v847_v40 = vadd.f32 %v839_v2, %v741_v20  ;;  %v10369_v16 = vmul.f32 %v10221_v45, %v8497_v48  ;;  %v10372_v31 = vmul.f32 %v10226_v12, %v8498_v53 }
  0xe6   :  { %12930 = vst [vmem:[#allocation19_spill] sm:$0xff] %v10363_v47  ;;  %12931 = vst [vmem:[#allocation20_spill] sm:$0xff] %v10366_v19  ;;  %v912_v6 = vrot.slane %v10358_v37, %v9232_v15  ;;  %v945_v24 = vmul.f32 %v10199_v18, %v908_v29  ;;  %v10378_v50 = vmul.f32 %v10270_v5, %v8499_v27 }
  0xe7   :  { %12932 = vst [vmem:[#allocation21_spill] sm:$0xff] %v10369_v16  ;;  %12933 = vst [vmem:[#allocation22_spill] sm:$0xff] %v10372_v31  ;;  %v10380_v43 = vmul.f32 %v9027_v8, %v8500_v57  ;;  %v848_v49 = vadd.f32 %v840_v3, %v742_v56  ;;  %v5201_v0 = vrot.slane %v10350_v62, %v9230_v14  ;;  %v5043_v62 = vld [vmem:[#allocation6 + $0x98] sm:$0xff] }
  0xe8   :  { %12934 = vst [vmem:[#allocation23_spill] sm:$0xff] %v10378_v50  ;;  %v5299_v45 = vrot.slane %v10355_v30, %v9230_v14  ;;  %v5405_v12 = vrot.slane %v10363_v47, %v9230_v14  ;;  %v946_v53 = vmul.f32 %v10199_v18, %v912_v6  ;;  %v953_v36 = vadd.f32 %v945_v24, %v847_v40 }
  0xe9   :  { %12935 = vst [vmem:[#allocation24_spill] sm:$0xff] %v10380_v43  ;;  %v5511_v38 = vrot.slane %v10366_v19, %v9230_v14  ;;  %v5617_v5 = vrot.slane %v10369_v16, %v9230_v14  ;;  %v5209_v57 = vcombine.high %v5201_v0, %v5201_v0  ;;  %v10394_v8 = vrot.slane %v5201_v0, %v9230_v14 }
  0xea   :  { %v5307_v25 = vcombine.high %v5299_v45, %v5299_v45  ;;  %v10397_v2 = vrot.slane %v5299_v45, %v9230_v14  ;;  %v954_v35 = vadd.f32 %v946_v53, %v848_v49  ;;  %v961_v48 = vmul.f32 %v953_v36, %v953_v36  ;;  %8747 = vmatmul.mubr.msk.f32.gmra.mrb[2].mxu0 %vm1902_vm0, %v5043_v62 }
  0xeb   :  { %v5413_v54 = vcombine.high %v5405_v12, %v5405_v12  ;;  %v10400_v20 = vrot.slane %v5405_v12, %v9230_v14  ;;  %v10403_v3 = vrot.slane %v5209_v57, %v9230_v14  ;;  %v5246_v27 = vrot.slane %v10394_v8, %v9232_v15 }
  0xec   :  { %v10408_v29 = vrot.slane %v5307_v25, %v9230_v14  ;;  %v5344_v56 = vrot.slane %v10397_v2, %v9232_v15  ;;  %v962_v40 = vmul.f32 %v954_v35, %v954_v35  ;;  %v8845_v6 = vpack.c.bf16 %v954_v35, %v953_v36 }
  0xed   :  { %v10413_v24 = vrot.slane %v5413_v54, %v9230_v14  ;;  %v5450_v49 = vrot.slane %v10400_v20, %v9232_v15  ;;  %v5250_v0 = vrot.slane %v10403_v3, %v9232_v15  ;;  %v5283_v45 = vmul.f32 %v10129_v23, %v5246_v27 }
  0xee   :  { %v5348_v12 = vrot.slane %v10408_v29, %v9232_v15  ;;  %v5381_v53 = vmul.f32 %v10134_v42, %v5344_v56  ;;  %v10423_v57 = vadd.f32 %v962_v40, %v961_v48  ;;  %8846 = vmatprep.subr.bf16.mxu1 %v8845_v6  ;;  %v5519_v35 = vcombine.high %v5511_v38, %v5511_v38 }
  0xef   :  { %v5454_v36 = vrot.slane %v10413_v24, %v9232_v15  ;;  %v5487_v25 = vmul.f32 %v10144_v4, %v5450_v49  ;;  %v5284_v54 = vmul.f32 %v10129_v23, %v5250_v0  ;;  %v10431_v27 = vrot.slane %v5511_v38, %v9230_v14  ;;  %8848 = vmatpush3.bf16.msra.mxu1 %v8845_v6 }
  0xf0   :  { %v5382_v16 = vmul.f32 %v10134_v42, %v5348_v12  ;;  %v5389_v19 = vadd.f32 %v5381_v53, %v5283_v45  ;;  %v10435_v48 = vrot.slane %v5519_v35, %v9230_v14  ;;  %v5625_v40 = vcombine.high %v5617_v5, %v5617_v5 }
  0xf1   :  { %v5488_v56 = vmul.f32 %v10144_v4, %v5454_v36  ;;  %v10438_v47 = vrot.slane %v5617_v5, %v9230_v14  ;;  %v5556_v0 = vrot.slane %v10431_v27, %v9232_v15  ;;  %v5723_v45 = vrot.slane %v10372_v31, %v9230_v14  ;;  %v1901_v31 = vld [vmem:[#allocation6 + $0x38] sm:$0xff] }
  0xf2   :  { %v5390_v49 = vadd.f32 %v5382_v16, %v5284_v54  ;;  %v5495_v30 = vadd.f32 %v5487_v25, %v5389_v19  ;;  %v5560_v38 = vrot.slane %v10435_v48, %v9232_v15  ;;  %v10447_v6 = vrot.slane %v5625_v40, %v9230_v14  ;;  %8659 = vmatmul.mubr.msk.f32.gmra.mrb[2].mxu1 %vm1902_vm0, %v1901_v31 }
  0xf3   :  { %v5662_v12 = vrot.slane %v10438_v47, %v9232_v15  ;;  %v5829_v5 = vrot.slane %v10378_v50, %v9230_v14  ;;  %v5593_v19 = vmul.f32 %v10155_v34, %v5556_v0  ;;  %v5731_v53 = vcombine.high %v5723_v45, %v5723_v45 }
  0xf4   :  { %v5496_v16 = vadd.f32 %v5488_v56, %v5390_v49  ;;  %v10455_v36 = vrot.slane %v5723_v45, %v9230_v14  ;;  %v5594_v25 = vmul.f32 %v10155_v34, %v5560_v38  ;;  %v5666_v35 = vrot.slane %v10447_v6, %v9232_v15 }
  0xf5   :  { %v5699_v54 = vmul.f32 %v10168_v58, %v5662_v12  ;;  %v5837_v40 = vcombine.high %v5829_v5, %v5829_v5  ;;  %v5601_v13 = vadd.f32 %v5593_v19, %v5495_v30  ;;  %v10462_v50 = vrot.slane %v5731_v53, %v9230_v14 }
  0xf6   :  { %v5768_v56 = vrot.slane %v10455_v36, %v9232_v15  ;;  %v10467_v49 = vrot.slane %v5829_v5, %v9230_v14  ;;  %v5602_v0 = vadd.f32 %v5594_v25, %v5496_v16  ;;  %v5700_v45 = vmul.f32 %v10168_v58, %v5666_v35  ;;  %v983_v16 = vld [vmem:[#allocation6] sm:$0xff] }
  0xf7   :  { %v10472_v38 = vrot.slane %v5837_v40, %v9230_v14  ;;  %v5935_v30 = vrot.slane %v10380_v43, %v9230_v14  ;;  %v5707_v12 = vadd.f32 %v5699_v54, %v5601_v13  ;;  %v5772_v19 = vrot.slane %v10462_v50, %v9232_v15  ;;  %8677 = vmatprep.mubr.msk.f32.mxu1 %vm1902_vm0, %v983_v16 }
  0xf8   :  { %v5805_v5 = vmul.f32 %v10173_v39, %v5768_v56  ;;  %v5874_v31 = vrot.slane %v10467_v49, %v9232_v15  ;;  %v5708_v53 = vadd.f32 %v5700_v45, %v5602_v0  ;;  %v167_v56 = vcombine.high %v10240_v10, %v10240_v10 }
  0xf9   :  { %v5878_v25 = vrot.slane %v10472_v38, %v9232_v15  ;;  %v5943_v35 = vcombine.high %v5935_v30, %v5935_v30  ;;  %v10485_v40 = vrot.slane %v5935_v30, %v9230_v14  ;;  %v5806_v13 = vmul.f32 %v10173_v39, %v5772_v19 }
  0xfa   :  { %v5813_v62 = vadd.f32 %v5805_v5, %v5707_v12  ;;  %v5911_v54 = vmul.f32 %v10185_v60, %v5874_v31  ;;  %v169_v30 = vcombine.high %v10247_v11, %v10247_v11  ;;  %v182_v12 = vrot.slane %v167_v56, %v9232_v15 }
  0xfb   :  { %v5912_v43 = vmul.f32 %v10185_v60, %v5878_v25  ;;  %v10494_v0 = vrot.slane %v5943_v35, %v9230_v14  ;;  %v5980_v45 = vrot.slane %v10485_v40, %v9232_v15  ;;  %v5814_v16 = vadd.f32 %v5806_v13, %v5708_v53 }
  0xfc   :  { %v5919_v9 = vadd.f32 %v5911_v54, %v5813_v62  ;;  %v265_v19 = vcombine.high %v10244_v22, %v10244_v22  ;;  %v186_v31 = vrot.slane %v169_v30, %v9232_v15  ;;  %v267_v25 = vcombine.high %v10255_v33, %v10255_v33 }
  0xfd   :  { %v5984_v10 = vrot.slane %v10494_v0, %v9232_v15  ;;  %v6017_v5 = vmul.f32 %v10199_v18, %v5980_v45  ;;  %v5920_v35 = vadd.f32 %v5912_v43, %v5814_v16  ;;  %v213_v11 = vmul.f32 %v10129_v23, %v182_v12 }
  0xfe   :  { %v280_v53 = vrot.slane %v265_v19, %v9232_v15  ;;  %v371_v13 = vcombine.high %v10252_v46, %v10252_v46  ;;  %v214_v54 = vmul.f32 %v10129_v23, %v186_v31  ;;  %v284_v56 = vrot.slane %v267_v25, %v9232_v15 }
  0xff   :  { %v6018_v22 = vmul.f32 %v10199_v18, %v5984_v10  ;;  %v6025_v62 = vadd.f32 %v6017_v5, %v5919_v9  ;;  %v373_v33 = vcombine.high %v10260_v21, %v10260_v21  ;;  %v477_v30 = vcombine.high %v10268_v26, %v10268_v26 }
 0x100   :  { %v311_v45 = vmul.f32 %v10134_v42, %v280_v53  ;;  %v386_v43 = vrot.slane %v371_v13, %v9232_v15  ;;  %v312_v46 = vmul.f32 %v10134_v42, %v284_v56  ;;  %v479_v9 = vcombine.high %v10284_v55, %v10284_v55 }
 0x101   :  { %v6026_v16 = vadd.f32 %v6018_v22, %v5920_v35  ;;  %v6033_v12 = vmul.f32 %v6025_v62, %v6025_v62  ;;  %v390_v10 = vrot.slane %v373_v33, %v9232_v15  ;;  %v492_v31 = vrot.slane %v477_v30, %v9232_v15 }
 0x102   :  { %v319_v19 = vadd.f32 %v311_v45, %v213_v11  ;;  %v417_v5 = vmul.f32 %v10144_v4, %v386_v43  ;;  %v320_v53 = vadd.f32 %v312_v46, %v214_v54  ;;  %v496_v13 = vrot.slane %v479_v9, %v9232_v15 }
 0x103   :  { %v6034_v21 = vmul.f32 %v6026_v16, %v6026_v16  ;;  %v8909_v25 = vpack.c.bf16 %v6026_v16, %v6025_v62  ;;  %v418_v26 = vmul.f32 %v10144_v4, %v390_v10  ;;  %v523_v22 = vmul.f32 %v10155_v34, %v492_v31 }
 0x104   :  { %v425_v35 = vadd.f32 %v417_v5, %v319_v19  ;;  %v583_v55 = vcombine.high %v10307_v61, %v10307_v61  ;;  %v524_v56 = vmul.f32 %v10155_v34, %v496_v13  ;;  %v585_v45 = vcombine.high %v10313_v63, %v10313_v63 }
 0x105   :  { %v10533_v11 = vadd.f32 %v6034_v21, %v6033_v12  ;;  %8910 = vmatprep.subr.bf16.mxu0 %v8909_v25  ;;  %v689_v62 = vcombine.high %v10310_v51, %v10310_v51  ;;  %v426_v54 = vadd.f32 %v418_v26, %v320_v53  ;;  %v691_v30 = vcombine.high %v10318_v52, %v10318_v52 }
 0x106   :  { %8912 = vmatpush3.bf16.msra.mxu0 %v8909_v25  ;;  %v531_v33 = vadd.f32 %v523_v22, %v425_v35  ;;  %v598_v43 = vrot.slane %v583_v55, %v9232_v15  ;;  %v602_v61 = vrot.slane %v585_v45, %v9232_v15  ;;  %v795_v12 = vcombine.high %v10324_v1, %v10324_v1 }
 0x107   :  { %v704_v16 = vrot.slane %v689_v62, %v9232_v15  ;;  %v797_v63 = vcombine.high %v10332_v7, %v10332_v7  ;;  %v532_v46 = vadd.f32 %v524_v56, %v426_v54  ;;  %v708_v9 = vrot.slane %v691_v30, %v9232_v15 }
 0x108   :  { %v629_v51 = vmul.f32 %v10168_v58, %v598_v43  ;;  %v901_v19 = vcombine.high %v10347_v59, %v10347_v59  ;;  %v630_v52 = vmul.f32 %v10168_v58, %v602_v61  ;;  %v810_v5 = vrot.slane %v795_v12, %v9232_v15  ;;  %v6056_v61 = vld [vmem:[#allocation6 + $0xa0] sm:$0xff] }
 0x109   :  { %v735_v10 = vmul.f32 %v10173_v39, %v704_v16  ;;  %v814_v31 = vrot.slane %v797_v63, %v9232_v15  ;;  %v736_v21 = vmul.f32 %v10173_v39, %v708_v9  ;;  %v903_v7 = vcombine.high %v10358_v37, %v10358_v37  ;;  %8765 = vmatprep.mubr.msk.f32.mxu0 %vm1902_vm0, %v6056_v61 }
 0x10a   :  { %v637_v1 = vadd.f32 %v629_v51, %v531_v33  ;;  %v916_v25 = vrot.slane %v901_v19, %v9232_v15  ;;  %v638_v53 = vadd.f32 %v630_v52, %v532_v46  ;;  %v841_v13 = vmul.f32 %v10185_v60, %v810_v5 }
 0x10b   :  { %v842_v59 = vmul.f32 %v10185_v60, %v814_v31  ;;  %v5239_v26 = vcombine.high %v10394_v8, %v10394_v8  ;;  %v920_v22 = vrot.slane %v903_v7, %v9232_v15  ;;  %v5241_v56 = vcombine.high %v10403_v3, %v10403_v3 }
 0x10c   :  { %v743_v35 = vadd.f32 %v735_v10, %v637_v1  ;;  %v947_v55 = vmul.f32 %v10199_v18, %v916_v25  ;;  %v744_v45 = vadd.f32 %v736_v21, %v638_v53  ;;  %v5337_v62 = vcombine.high %v10397_v2, %v10397_v2 }
 0x10d   :  { %v5254_v37 = vrot.slane %v5239_v26, %v9232_v15  ;;  %v5339_v54 = vcombine.high %v10408_v29, %v10408_v29  ;;  %v948_v8 = vmul.f32 %v10199_v18, %v920_v22  ;;  %v5258_v43 = vrot.slane %v5241_v56, %v9232_v15 }
 0x10e   :  { %v849_v33 = vadd.f32 %v841_v13, %v743_v35  ;;  %v5443_v30 = vcombine.high %v10400_v20, %v10400_v20  ;;  %v850_v16 = vadd.f32 %v842_v59, %v744_v45  ;;  %v5352_v12 = vrot.slane %v5337_v62, %v9232_v15 }
 0x10f   :  { %v5285_v3 = vmul.f32 %v10129_v23, %v5254_v37  ;;  %v5356_v63 = vrot.slane %v5339_v54, %v9232_v15  ;;  %v5286_v29 = vmul.f32 %v10129_v23, %v5258_v43  ;;  %v5445_v46 = vcombine.high %v10413_v24, %v10413_v24 }
 0x110   :  { %v955_v2 = vadd.f32 %v947_v55, %v849_v33  ;;  %v5458_v51 = vrot.slane %v5443_v30, %v9232_v15  ;;  %v956_v9 = vadd.f32 %v948_v8, %v850_v16  ;;  %v5383_v20 = vmul.f32 %v10134_v42, %v5352_v12 }
 0x111   :  { %v5384_v19 = vmul.f32 %v10134_v42, %v5356_v63  ;;  %v5549_v52 = vcombine.high %v10431_v27, %v10431_v27  ;;  %v5462_v5 = vrot.slane %v5445_v46, %v9232_v15  ;;  %v5551_v1 = vcombine.high %v10435_v48, %v10435_v48 }
 0x112   :  { %v963_v10 = vmul.f32 %v955_v2, %v955_v2  ;;  %v5489_v31 = vmul.f32 %v10144_v4, %v5458_v51  ;;  %v964_v21 = vmul.f32 %v956_v9, %v956_v9  ;;  %v8849_v24 = vpack.c.bf16 %v956_v9, %v955_v2 }
 0x113   :  { %v5391_v7 = vadd.f32 %v5383_v20, %v5285_v3  ;;  %v5392_v25 = vadd.f32 %v5384_v19, %v5286_v29  ;;  %v5490_v13 = vmul.f32 %v10144_v4, %v5462_v5  ;;  %v5564_v59 = vrot.slane %v5549_v52, %v9232_v15 }
 0x114   :  { %v970_v53 = vadd.f32 %v10423_v57, %v963_v10  ;;  %v5568_v27 = vrot.slane %v5551_v1, %v9232_v15  ;;  %8850 = vmatprep.subr.bf16.mxu1 %v8849_v24  ;;  %v5655_v35 = vcombine.high %v10438_v47, %v10438_v47  ;;  %v5657_v48 = vcombine.high %v10447_v6, %v10447_v6 }
 0x115   :  { %v5497_v26 = vadd.f32 %v5489_v31, %v5391_v7  ;;  %v5761_v22 = vcombine.high %v10455_v36, %v10455_v36  ;;  %v5498_v57 = vadd.f32 %v5490_v13, %v5392_v25  ;;  %v5595_v56 = vmul.f32 %v10155_v34, %v5564_v59  ;;  %8852 = vmatpush3.bf16.msra.mxu1 %v8849_v24 }
 0x116   :  { %v10604_v55 = vadd.f32 %v970_v53, %v964_v21  ;;  %v5596_v45 = vmul.f32 %v10155_v34, %v5568_v27  ;;  %v5670_v37 = vrot.slane %v5655_v35, %v9232_v15  ;;  %v5674_v62 = vrot.slane %v5657_v48, %v9232_v15 }
 0x117   :  { %v5763_v47 = vcombine.high %v10462_v50, %v10462_v50  ;;  %v5776_v6 = vrot.slane %v5761_v22, %v9232_v15  ;;  %v5603_v54 = vadd.f32 %v5595_v56, %v5497_v26  ;;  %v5867_v36 = vcombine.high %v10467_v49, %v10467_v49 }
 0x118   :  { %v5604_v33 = vadd.f32 %v5596_v45, %v5498_v57  ;;  %v5869_v8 = vcombine.high %v10472_v38, %v10472_v38  ;;  %v5701_v43 = vmul.f32 %v10168_v58, %v5670_v37  ;;  %v5702_v30 = vmul.f32 %v10168_v58, %v5674_v62 }
 0x119   :  { %v5780_v61 = vrot.slane %v5763_v47, %v9232_v15  ;;  %v5807_v16 = vmul.f32 %v10173_v39, %v5776_v6  ;;  %v5882_v50 = vrot.slane %v5867_v36, %v9232_v15  ;;  %v5973_v12 = vcombine.high %v10485_v40, %v10485_v40 }
 0x11a   :  { %v5886_v3 = vrot.slane %v5869_v8, %v9232_v15  ;;  %v5975_v49 = vcombine.high %v10494_v0, %v10494_v0  ;;  %v5709_v63 = vadd.f32 %v5701_v43, %v5603_v54  ;;  %v5710_v38 = vadd.f32 %v5702_v30, %v5604_v33 }
 0x11b   :  { %v5808_v2 = vmul.f32 %v10173_v39, %v5780_v61  ;;  %v122_v29 = vcombine.high %v10197_v17, %v10197_v17  ;;  %v5913_v46 = vmul.f32 %v10185_v60, %v5882_v50  ;;  %v5988_v9 = vrot.slane %v5973_v12, %v9232_v15 }
 0x11c   :  { %v5914_v51 = vmul.f32 %v10185_v60, %v5886_v3  ;;  %v5992_v20 = vrot.slane %v5975_v49, %v9232_v15  ;;  %v5815_v19 = vadd.f32 %v5807_v16, %v5709_v63  ;;  %v220_v0 = vcombine.high %v10205_v44, %v10205_v44 }
 0x11d   :  { %v5816_v40 = vadd.f32 %v5808_v2, %v5710_v38  ;;  %v136_v52 = vrot.slane %v122_v29, %v9230_v14  ;;  %v6019_v10 = vmul.f32 %v10199_v18, %v5988_v9  ;;  %v326_v17 = vcombine.high %v10210_v28, %v10210_v28 }
 0x11e   :  { %v6020_v5 = vmul.f32 %v10199_v18, %v5992_v20  ;;  %v432_v31 = vcombine.high %v10217_v32, %v10217_v32  ;;  %v5921_v1 = vadd.f32 %v5913_v46, %v5815_v19  ;;  %v234_v25 = vrot.slane %v220_v0, %v9230_v14 }
 0x11f   :  { %v5922_v21 = vadd.f32 %v5914_v51, %v5816_v40  ;;  %v138_v24 = vcombine.high %v136_v52, %v136_v52  ;;  %v10644_v7 = vrot.slane %v136_v52, %v9230_v14  ;;  %v340_v44 = vrot.slane %v326_v17, %v9230_v14  ;;  %v12936_v51 = vld [vmem:[#allocation12_spill] sm:$0xff]  ;;  %v12937_v40 = vld [vmem:[#allocation13_spill] sm:$0xff] }
 0x120   :  { %v446_v53 = vrot.slane %v432_v31, %v9230_v14  ;;  %v538_v13 = vcombine.high %v10224_v41, %v10224_v41  ;;  %v6027_v59 = vadd.f32 %v6019_v10, %v5921_v1  ;;  %v236_v26 = vcombine.high %v234_v25, %v234_v25 }
 0x121   :  { %v6028_v28 = vadd.f32 %v6020_v5, %v5922_v21  ;;  %v10652_v27 = vrot.slane %v138_v24, %v9230_v14  ;;  %v190_v32 = vrot.slane %v10644_v7, %v9232_v15  ;;  %v10657_v35 = vrot.slane %v234_v25, %v9230_v14  ;;  %v12938_v21 = vld [vmem:[#allocation15_spill] sm:$0xff] }
 0x122   :  { %v342_v48 = vcombine.high %v340_v44, %v340_v44  ;;  %v10660_v22 = vrot.slane %v340_v44, %v9230_v14  ;;  %v6035_v57 = vmul.f32 %v6027_v59, %v6027_v59  ;;  %v10666_v62 = vrot.slane %v236_v26, %v9230_v14 }
 0x123   :  { %v6036_v56 = vmul.f32 %v6028_v28, %v6028_v28  ;;  %v8913_v45 = vpack.c.bf16 %v6028_v28, %v6027_v59  ;;  %v194_v41 = vrot.slane %v10652_v27, %v9232_v15  ;;  %v215_v37 = vmul.f32 %v10129_v23, %v190_v32 }
 0x124   :  { %v288_v47 = vrot.slane %v10657_v35, %v9232_v15  ;;  %v10671_v6 = vrot.slane %v342_v48, %v9230_v14  ;;  %v6042_v54 = vadd.f32 %v10533_v11, %v6035_v57  ;;  %v394_v36 = vrot.slane %v10660_v22, %v9232_v15 }
 0x125   :  { %8914 = vmatprep.subr.bf16.mxu0 %v8913_v45  ;;  %v216_v33 = vmul.f32 %v10129_v23, %v194_v41  ;;  %v448_v8 = vcombine.high %v446_v53, %v446_v53  ;;  %v292_v43 = vrot.slane %v10666_v62, %v9232_v15  ;;  %v10683_v16 = vrot.slane %v446_v53, %v9230_v14 }
 0x126   :  { %8916 = vmatpush3.bf16.msra.mxu0 %v8913_v45  ;;  %v313_v30 = vmul.f32 %v10134_v42, %v288_v47  ;;  %v398_v61 = vrot.slane %v10671_v6, %v9232_v15  ;;  %v10685_v11 = vadd.f32 %v6042_v54, %v6036_v56  ;;  %v419_v23 = vmul.f32 %v10144_v4, %v394_v36  ;;  %v12939_v36 = vld [vmem:[#allocation17_spill] sm:$0xff] }
 0x127   :  { %v10689_v50 = vrot.slane %v448_v8, %v9230_v14  ;;  %v552_v3 = vrot.slane %v538_v13, %v9230_v14  ;;  %v314_v12 = vmul.f32 %v10134_v42, %v292_v43  ;;  %v500_v38 = vrot.slane %v10683_v16, %v9232_v15 }
 0x128   :  { %v321_v49 = vadd.f32 %v313_v30, %v215_v37  ;;  %v420_v63 = vmul.f32 %v10144_v4, %v398_v61  ;;  %v644_v9 = vcombine.high %v12936_v51, %v12936_v51  ;;  %v750_v4 = vcombine.high %v12937_v40, %v12937_v40 }
 0x129   :  { %v504_v2 = vrot.slane %v10689_v50, %v9232_v15  ;;  %v554_v29 = vcombine.high %v552_v3, %v552_v3  ;;  %v10699_v46 = vrot.slane %v552_v3, %v9230_v14  ;;  %v322_v20 = vadd.f32 %v314_v12, %v216_v33 }
 0x12a   :  { %v427_v19 = vadd.f32 %v419_v23, %v321_v49  ;;  %v525_v42 = vmul.f32 %v10155_v34, %v500_v38  ;;  %v658_v5 = vrot.slane %v644_v9, %v9230_v14  ;;  %v764_v1 = vrot.slane %v750_v4, %v9230_v14  ;;  %v12941_v9 = vld [vmem:[#allocation19_spill] sm:$0xff] }
 0x12b   :  { %v526_v52 = vmul.f32 %v10155_v34, %v504_v2  ;;  %v10708_v0 = vrot.slane %v554_v29, %v9230_v14  ;;  %v606_v10 = vrot.slane %v10699_v46, %v9232_v15  ;;  %v428_v17 = vadd.f32 %v420_v63, %v322_v20  ;;  %v12940_v63 = vld [vmem:[#allocation18_spill] sm:$0xff] }
 0x12c   :  { %v533_v31 = vadd.f32 %v525_v42, %v427_v19  ;;  %v856_v24 = vcombine.high %v12938_v21, %v12938_v21  ;;  %v660_v44 = vcombine.high %v658_v5, %v658_v5  ;;  %v10720_v53 = vrot.slane %v658_v5, %v9230_v14 }
 0x12d   :  { %v610_v25 = vrot.slane %v10708_v0, %v9232_v15  ;;  %v631_v34 = vmul.f32 %v10168_v58, %v606_v10  ;;  %v534_v13 = vadd.f32 %v526_v52, %v428_v17  ;;  %v766_v59 = vcombine.high %v764_v1, %v764_v1  ;;  %v12942_v10 = vld [vmem:[#allocation20_spill] sm:$0xff] }
 0x12e   :  { %v10723_v28 = vrot.slane %v764_v1, %v9230_v14  ;;  %v870_v32 = vrot.slane %v856_v24, %v9230_v14  ;;  %v10728_v57 = vrot.slane %v660_v44, %v9230_v14  ;;  %v712_v56 = vrot.slane %v10720_v53, %v9232_v15 }
 0x12f   :  { %v632_v26 = vmul.f32 %v10168_v58, %v610_v25  ;;  %v639_v48 = vadd.f32 %v631_v34, %v533_v31  ;;  %v10733_v45 = vrot.slane %v766_v59, %v9230_v14  ;;  %v5194_v8 = vcombine.high %v12939_v36, %v12939_v36 }
 0x130   :  { %v818_v41 = vrot.slane %v10723_v28, %v9232_v15  ;;  %v872_v37 = vcombine.high %v870_v32, %v870_v32  ;;  %v10738_v47 = vrot.slane %v870_v32, %v9230_v14  ;;  %v716_v58 = vrot.slane %v10728_v57, %v9232_v15  ;;  %v10784_v32 = vld [vmem:[#allocation3 + $0x10] sm:$0xff] }
 0x131   :  { %v640_v54 = vadd.f32 %v632_v26, %v534_v13  ;;  %v737_v33 = vmul.f32 %v10173_v39, %v712_v56  ;;  %v822_v43 = vrot.slane %v10733_v45, %v9232_v15  ;;  %v5208_v49 = vrot.slane %v5194_v8, %v9230_v14 }
 0x132   :  { %v843_v30 = vmul.f32 %v10185_v60, %v818_v41  ;;  %v10749_v61 = vrot.slane %v872_v37, %v9230_v14  ;;  %v924_v23 = vrot.slane %v10738_v47, %v9232_v15  ;;  %v738_v3 = vmul.f32 %v10173_v39, %v716_v58 }
 0x133   :  { %v745_v12 = vadd.f32 %v737_v33, %v639_v48  ;;  %v5292_v38 = vcombine.high %v12940_v63, %v12940_v63  ;;  %v844_v2 = vmul.f32 %v10185_v60, %v822_v43  ;;  %v5398_v20 = vcombine.high %v12941_v9, %v12941_v9  ;;  %v10801_v43 = vld [vmem:[#allocation3 + $0x28] sm:$0xff] }
 0x134   :  { %v928_v29 = vrot.slane %v10749_v61, %v9232_v15  ;;  %v949_v51 = vmul.f32 %v10199_v18, %v924_v23  ;;  %v746_v19 = vadd.f32 %v738_v3, %v640_v54  ;;  %v5210_v40 = vcombine.high %v5208_v49, %v5208_v49  ;;  %v10806_v3 = vld [vmem:[#allocation3 + $0x40] sm:$0xff]  ;;  %v12943_v63 = vld [vmem:[#allocation21_spill] sm:$0xff] }
 0x135   :  { %v851_v42 = vadd.f32 %v843_v30, %v745_v12  ;;  %v10764_v39 = vrot.slane %v5208_v49, %v9230_v14  ;;  %v5306_v52 = vrot.slane %v5292_v38, %v9230_v14  ;;  %v5412_v60 = vrot.slane %v5398_v20, %v9230_v14 }
 0x136   :  { %v950_v4 = vmul.f32 %v10199_v18, %v928_v29  ;;  %v5504_v5 = vcombine.high %v12942_v10, %v12942_v10  ;;  %v852_v17 = vadd.f32 %v844_v2, %v746_v19  ;;  %v10772_v1 = vrot.slane %v5210_v40, %v9230_v14  ;;  %v12944_v2 = vld [vmem:[#allocation22_spill] sm:$0xff]  ;;  %v12945_v19 = vld [vmem:[#allocation23_spill] sm:$0xff] }
 0x137   :  { %v957_v31 = vadd.f32 %v949_v51, %v851_v42  ;;  %v5262_v21 = vrot.slane %v10764_v39, %v9232_v15  ;;  %v5308_v24 = vcombine.high %v5306_v52, %v5306_v52  ;;  %v10777_v25 = vrot.slane %v5306_v52, %v9230_v14 }
 0x138   :  { %v5414_v18 = vcombine.high %v5412_v60, %v5412_v60  ;;  %v10780_v34 = vrot.slane %v5412_v60, %v9230_v14  ;;  %v958_v44 = vadd.f32 %v950_v4, %v852_v17  ;;  %v5266_v59 = vrot.slane %v10772_v1, %v9232_v15 }
 0x139   :  { %v965_v13 = vmul.f32 %v957_v31, %v957_v31  ;;  %v5287_v26 = vmul.f32 %v10784_v32, %v5262_v21  ;;  %v10788_v48 = vrot.slane %v5308_v24, %v9230_v14  ;;  %v5360_v56 = vrot.slane %v10777_v25, %v9232_v15 }
 0x13a   :  { %v10793_v41 = vrot.slane %v5414_v18, %v9230_v14  ;;  %v5466_v37 = vrot.slane %v10780_v34, %v9232_v15  ;;  %v966_v54 = vmul.f32 %v958_v44, %v958_v44  ;;  %v8853_v33 = vpack.c.bf16 %v958_v44, %v957_v31  ;;  %v12946_v31 = vld [vmem:[#allocation24_spill] sm:$0xff] }
 0x13b   :  { %v972_v58 = vadd.f32 %v10604_v55, %v965_v13  ;;  %v5288_v36 = vmul.f32 %v10784_v32, %v5266_v59  ;;  %v5364_v8 = vrot.slane %v10788_v48, %v9232_v15  ;;  %v5385_v30 = vmul.f32 %v10801_v43, %v5360_v56 }
 0x13c   :  { %v5470_v23 = vrot.slane %v10793_v41, %v9232_v15  ;;  %v5491_v12 = vmul.f32 %v10806_v3, %v5466_v37  ;;  %8854 = vmatprep.subr.bf16.mxu1 %v8853_v33  ;;  %v5518_v55 = vrot.slane %v5504_v5, %v9230_v14  ;;  %v5610_v38 = vcombine.high %v12943_v63, %v12943_v63 }
 0x13d   :  { %v10809_v49 = vadd.f32 %v972_v58, %v966_v54  ;;  %v5716_v29 = vcombine.high %v12944_v2, %v12944_v2  ;;  %v5386_v51 = vmul.f32 %v10801_v43, %v5364_v8  ;;  %v5393_v9 = vadd.f32 %v5385_v30, %v5287_v26  ;;  %8856 = vmatpush3.bf16.msra.mxu1 %v8853_v33  ;;  %v10841_v58 = vld [vmem:[#allocation3 + $0x58] sm:$0xff] }
 0x13e   :  { %v5492_v20 = vmul.f32 %v10806_v3, %v5470_v23  ;;  %v5822_v42 = vcombine.high %v12945_v19, %v12945_v19  ;;  %v5520_v40 = vcombine.high %v5518_v55, %v5518_v55  ;;  %v10821_v4 = vrot.slane %v5518_v55, %v9230_v14 }
 0x13f   :  { %v5624_v52 = vrot.slane %v5610_v38, %v9230_v14  ;;  %v5730_v60 = vrot.slane %v5716_v29, %v9230_v14  ;;  %v5394_v10 = vadd.f32 %v5386_v51, %v5288_v36  ;;  %v5499_v5 = vadd.f32 %v5491_v12, %v5393_v9  ;;  %v10863_v29 = vld [vmem:[#allocation3 + $0x70] sm:$0xff] }
 0x140   :  { %v5836_v17 = vrot.slane %v5822_v42, %v9230_v14  ;;  %v5928_v21 = vcombine.high %v12946_v31, %v12946_v31  ;;  %v10829_v24 = vrot.slane %v5520_v40, %v9230_v14  ;;  %v5572_v18 = vrot.slane %v10821_v4, %v9232_v15  ;;  %v10878_v31 = vld [vmem:[#allocation3 + $0xa0] sm:$0xff] }
 0x141   :  { %v5626_v44 = vcombine.high %v5624_v52, %v5624_v52  ;;  %v10834_v13 = vrot.slane %v5624_v52, %v9230_v14  ;;  %v5500_v59 = vadd.f32 %v5492_v20, %v5394_v10  ;;  %v5732_v26 = vcombine.high %v5730_v60, %v5730_v60  ;;  %v10868_v20 = vld [vmem:[#allocation3 + $0x88] sm:$0xff] }
 0x142   :  { %v10837_v56 = vrot.slane %v5730_v60, %v9230_v14  ;;  %v5838_v37 = vcombine.high %v5836_v17, %v5836_v17  ;;  %v5576_v54 = vrot.slane %v10829_v24, %v9232_v15  ;;  %v5597_v33 = vmul.f32 %v10841_v58, %v5572_v18 }
 0x143   :  { %v10845_v36 = vrot.slane %v5626_v44, %v9230_v14  ;;  %v5678_v8 = vrot.slane %v10834_v13, %v9232_v15  ;;  %v10850_v30 = vrot.slane %v5732_v26, %v9230_v14  ;;  %v10855_v12 = vrot.slane %v5836_v17, %v9230_v14 }
 0x144   :  { %v5784_v23 = vrot.slane %v10837_v56, %v9232_v15  ;;  %v10858_v55 = vrot.slane %v5838_v37, %v9230_v14  ;;  %v5598_v63 = vmul.f32 %v10841_v58, %v5576_v54  ;;  %v5605_v38 = vadd.f32 %v5597_v33, %v5499_v5 }
 0x145   :  { %v5682_v2 = vrot.slane %v10845_v36, %v9232_v15  ;;  %v5703_v51 = vmul.f32 %v10863_v29, %v5678_v8  ;;  %v5788_v9 = vrot.slane %v10850_v30, %v9232_v15  ;;  %v5890_v42 = vrot.slane %v10855_v12, %v9232_v15 }
 0x146   :  { %v5809_v19 = vmul.f32 %v10868_v20, %v5784_v23  ;;  %v5894_v40 = vrot.slane %v10858_v55, %v9232_v15  ;;  %v5606_v52 = vadd.f32 %v5598_v63, %v5500_v59  ;;  %v5942_v5 = vrot.slane %v5928_v21, %v9230_v14 }
 0x147   :  { %v5704_v60 = vmul.f32 %v10863_v29, %v5682_v2  ;;  %v5711_v10 = vadd.f32 %v5703_v51, %v5605_v38  ;;  %v5810_v17 = vmul.f32 %v10868_v20, %v5788_v9  ;;  %v5915_v18 = vmul.f32 %v10878_v31, %v5890_v42 }
 0x148   :  { %v5916_v44 = vmul.f32 %v10878_v31, %v5894_v40  ;;  %v168_v26 = vcombine.high %v10644_v7, %v10644_v7  ;;  %v5944_v33 = vcombine.high %v5942_v5, %v5942_v5  ;;  %v10885_v59 = vrot.slane %v5942_v5, %v9230_v14  ;;  %v10905_v40 = vld [vmem:[#allocation3 + $0xb8] sm:$0xff] }
 0x149   :  { %v5712_v37 = vadd.f32 %v5704_v60, %v5606_v52  ;;  %v5817_v54 = vadd.f32 %v5809_v19, %v5711_v10  ;;  %v170_v21 = vcombine.high %v10652_v27, %v10652_v27  ;;  %v266_v23 = vcombine.high %v10657_v35, %v10657_v35 }
 0x14a   :  { %v198_v8 = vrot.slane %v168_v26, %v9232_v15  ;;  %v268_v63 = vcombine.high %v10666_v62, %v10666_v62  ;;  %v10895_v7 = vrot.slane %v5944_v33, %v9230_v14  ;;  %v5996_v51 = vrot.slane %v10885_v59, %v9232_v15 }
 0x14b   :  { %v5818_v38 = vadd.f32 %v5810_v17, %v5712_v37  ;;  %v5923_v2 = vadd.f32 %v5915_v18, %v5817_v54  ;;  %v202_v9 = vrot.slane %v170_v21, %v9232_v15  ;;  %v296_v19 = vrot.slane %v266_v23, %v9232_v15 }
 0x14c   :  { %v217_v27 = vmul.f32 %v10784_v32, %v198_v8  ;;  %v300_v42 = vrot.slane %v268_v63, %v9232_v15  ;;  %v6000_v62 = vrot.slane %v10895_v7, %v9232_v15  ;;  %v6021_v52 = vmul.f32 %v10905_v40, %v5996_v51 }
 0x14d   :  { %v5924_v35 = vadd.f32 %v5916_v44, %v5818_v38  ;;  %v372_v60 = vcombine.high %v10660_v22, %v10660_v22  ;;  %v218_v10 = vmul.f32 %v10784_v32, %v202_v9  ;;  %v315_v5 = vmul.f32 %v10801_v43, %v296_v19 }
 0x14e   :  { %v316_v17 = vmul.f32 %v10801_v43, %v300_v42  ;;  %v374_v18 = vcombine.high %v10671_v6, %v10671_v6  ;;  %v6022_v44 = vmul.f32 %v10905_v40, %v6000_v62  ;;  %v6029_v26 = vadd.f32 %v6021_v52, %v5923_v2 }
 0x14f   :  { %v402_v37 = vrot.slane %v372_v60, %v9232_v15  ;;  %v478_v54 = vcombine.high %v10683_v16, %v10683_v16  ;;  %v323_v33 = vadd.f32 %v315_v5, %v217_v27  ;;  %v480_v8 = vcombine.high %v10689_v50, %v10689_v50 }
 0x150   :  { %v324_v21 = vadd.f32 %v316_v17, %v218_v10  ;;  %v406_v22 = vrot.slane %v374_v18, %v9232_v15  ;;  %v6030_v23 = vadd.f32 %v6022_v44, %v5924_v35  ;;  %v6037_v63 = vmul.f32 %v6029_v26, %v6029_v26 }
 0x151   :  { %v421_v38 = vmul.f32 %v10806_v3, %v402_v37  ;;  %v508_v6 = vrot.slane %v478_v54, %v9232_v15  ;;  %v512_v51 = vrot.slane %v480_v8, %v9232_v15  ;;  %v584_v16 = vcombine.high %v10699_v46, %v10699_v46 }
 0x152   :  { %v422_v2 = vmul.f32 %v10806_v3, %v406_v22  ;;  %v586_v9 = vcombine.high %v10708_v0, %v10708_v0  ;;  %v6038_v27 = vmul.f32 %v6030_v23, %v6030_v23  ;;  %v6044_v19 = vadd.f32 %v10685_v11, %v6037_v63 }
 0x153   :  { %v8917_v50 = vpack.c.bf16 %v6030_v23, %v6029_v26  ;;  %v429_v42 = vadd.f32 %v421_v38, %v323_v33  ;;  %v527_v62 = vmul.f32 %v10841_v58, %v508_v6  ;;  %v528_v52 = vmul.f32 %v10841_v58, %v512_v51 }
 0x154   :  { %v430_v35 = vadd.f32 %v422_v2, %v324_v21  ;;  %v614_v60 = vrot.slane %v584_v16, %v9232_v15  ;;  %v10934_v10 = vadd.f32 %v6044_v19, %v6038_v27  ;;  %v618_v46 = vrot.slane %v586_v9, %v9232_v15 }
 0x155   :  { %8918 = vmatprep.subr.bf16.mxu0 %v8917_v50  ;;  %v690_v0 = vcombine.high %v10720_v53, %v10720_v53  ;;  %v692_v11 = vcombine.high %v10728_v57, %v10728_v57  ;;  %v535_v5 = vadd.f32 %v527_v62, %v429_v42  ;;  %v796_v44 = vcombine.high %v10723_v28, %v10723_v28 }
 0x156   :  { %8920 = vmatpush3.bf16.msra.mxu0 %v8917_v50  ;;  %v536_v17 = vadd.f32 %v528_v52, %v430_v35  ;;  %v633_v18 = vmul.f32 %v10863_v29, %v614_v60  ;;  %v634_v26 = vmul.f32 %v10863_v29, %v618_v46  ;;  %v798_v53 = vcombine.high %v10733_v45, %v10733_v45 }
 0x157   :  { %v720_v37 = vrot.slane %v690_v0, %v9232_v15  ;;  %v724_v54 = vrot.slane %v692_v11, %v9232_v15  ;;  %v826_v57 = vrot.slane %v796_v44, %v9232_v15  ;;  %v902_v21 = vcombine.high %v10738_v47, %v10738_v47 }
 0x158   :  { %v641_v33 = vadd.f32 %v633_v18, %v535_v5  ;;  %v904_v22 = vcombine.high %v10749_v61, %v10749_v61  ;;  %v642_v8 = vadd.f32 %v634_v26, %v536_v17  ;;  %v830_v63 = vrot.slane %v798_v53, %v9232_v15 }
 0x159   :  { %v739_v28 = vmul.f32 %v10868_v20, %v720_v37  ;;  %v740_v23 = vmul.f32 %v10868_v20, %v724_v54  ;;  %v845_v38 = vmul.f32 %v10878_v31, %v826_v57  ;;  %v932_v45 = vrot.slane %v902_v21, %v9232_v15 }
 0x15a   :  { %v936_v6 = vrot.slane %v904_v22, %v9232_v15  ;;  %v5240_v2 = vcombine.high %v10764_v39, %v10764_v39  ;;  %v846_v61 = vmul.f32 %v10878_v31, %v830_v63  ;;  %v5242_v16 = vcombine.high %v10772_v1, %v10772_v1 }
 0x15b   :  { %v747_v47 = vadd.f32 %v739_v28, %v641_v33  ;;  %v748_v51 = vadd.f32 %v740_v23, %v642_v8  ;;  %v951_v9 = vmul.f32 %v10905_v40, %v932_v45  ;;  %v5338_v50 = vcombine.high %v10777_v25, %v10777_v25 }
 0x15c   :  { %v952_v27 = vmul.f32 %v10905_v40, %v936_v6  ;;  %v5270_v19 = vrot.slane %v5240_v2, %v9232_v15  ;;  %v5274_v39 = vrot.slane %v5242_v16, %v9232_v15  ;;  %v5340_v62 = vcombine.high %v10788_v48, %v10788_v48 }
 0x15d   :  { %v853_v42 = vadd.f32 %v845_v38, %v747_v47  ;;  %v854_v35 = vadd.f32 %v846_v61, %v748_v51  ;;  %v5368_v1 = vrot.slane %v5338_v50, %v9232_v15  ;;  %v5444_v60 = vcombine.high %v10780_v34, %v10780_v34 }
 0x15e   :  { %v5289_v52 = vmul.f32 %v10784_v32, %v5270_v19  ;;  %v5446_v46 = vcombine.high %v10793_v41, %v10793_v41  ;;  %v5290_v25 = vmul.f32 %v10784_v32, %v5274_v39  ;;  %v5372_v5 = vrot.slane %v5340_v62, %v9232_v15 }
 0x15f   :  { %v959_v0 = vadd.f32 %v951_v9, %v853_v42  ;;  %v960_v11 = vadd.f32 %v952_v27, %v854_v35  ;;  %v5387_v17 = vmul.f32 %v10801_v43, %v5368_v1  ;;  %v5474_v48 = vrot.slane %v5444_v60, %v9232_v15 }
 0x160   :  { %v5478_v18 = vrot.slane %v5446_v46, %v9232_v15  ;;  %v5550_v44 = vcombine.high %v10821_v4, %v10821_v4  ;;  %v5388_v41 = vmul.f32 %v10801_v43, %v5372_v5  ;;  %v5552_v57 = vcombine.high %v10829_v24, %v10829_v24  ;;  %v984_v24 = vld [vmem:[#allocation6 + $0x8] sm:$0xff] }
 0x161   :  { %v967_v26 = vmul.f32 %v959_v0, %v959_v0  ;;  %v968_v34 = vmul.f32 %v960_v11, %v960_v11  ;;  %v8857_v37 = vpack.c.bf16 %v960_v11, %v959_v0  ;;  %v5395_v54 = vadd.f32 %v5387_v17, %v5289_v52  ;;  %v8457_v52 = vld [vmem:[#allocation3 + $0x2] ss:$0 sm:$0xff]  ;;  %v8458_v0 = vld [vmem:[#allocation3 + $0x1a] ss:$0 sm:$0xff] }
 0x162   :  { %v5493_v53 = vmul.f32 %v10806_v3, %v5474_v48  ;;  %v5494_v33 = vmul.f32 %v10806_v3, %v5478_v18  ;;  %v5396_v22 = vadd.f32 %v5388_v41, %v5290_v25  ;;  %v5580_v8 = vrot.slane %v5550_v44, %v9232_v15  ;;  %v8460_v48 = vld [vmem:[#allocation3 + $0x4a] ss:$0 sm:$0xff] }
 0x163   :  { %v974_v21 = vadd.f32 %v10809_v49, %v967_v26  ;;  %8858 = vmatprep.subr.bf16.mxu1 %v8857_v37  ;;  %v5656_v4 = vcombine.high %v10834_v13, %v10834_v13  ;;  %v5584_v23 = vrot.slane %v5552_v57, %v9232_v15  ;;  %v5658_v63 = vcombine.high %v10845_v36, %v10845_v36 }
 0x164   :  { %v5501_v28 = vadd.f32 %v5493_v53, %v5395_v54  ;;  %v5762_v38 = vcombine.high %v10837_v56, %v10837_v56  ;;  %8860 = vmatpush3.bf16.msra.mxu1 %v8857_v37  ;;  %v5502_v49 = vadd.f32 %v5494_v33, %v5396_v22  ;;  %v5599_v6 = vmul.f32 %v10841_v58, %v5580_v8  ;;  %v8461_v54 = vld [vmem:[#allocation3 + $0x62] ss:$0 sm:$0xff]  ;;  %v8462_v53 = vld [vmem:[#allocation3 + $0x7a] ss:$0 sm:$0xff] }
 0x165   :  { %v975_v45 = vadd.f32 %v974_v21, %v968_v34  ;;  %v5686_v2 = vrot.slane %v5656_v4, %v9232_v15  ;;  %v5600_v47 = vmul.f32 %v10841_v58, %v5584_v23  ;;  %v5690_v13 = vrot.slane %v5658_v63, %v9232_v15  ;;  %v11026_v34 = vld [vmem:[#allocation3 + $0x8] sm:$0xff]  ;;  %v11032_v33 = vld [vmem:[#allocation3 + $0x20] sm:$0xff]  ;;  %v11039_v8 = vld [vmem:[#allocation3 + $0x38] sm:$0xff] }
 0x166   :  { %v5764_v51 = vcombine.high %v10850_v30, %v10850_v30  ;;  %v5792_v36 = vrot.slane %v5762_v38, %v9232_v15  ;;  %v5607_v16 = vadd.f32 %v5599_v6, %v5501_v28  ;;  %v5868_v9 = vcombine.high %v10855_v12, %v10855_v12  ;;  %v11044_v28 = vld [vmem:[#allocation3 + $0x50] sm:$0xff] }
 0x167   :  { %v976_v61 = vrot.slane %v975_v45, 4  ;;  %v5705_v56 = vmul.f32 %v10863_v29, %v5686_v2  ;;  %8678 = vmatmul.mubr.msk.f32.vlgmr.msra.gmra.mrb[0].mxu1 %vm1902_vm0, %v984_v24  ;;  %v5608_v27 = vadd.f32 %v5600_v47, %v5502_v49  ;;  %v5706_v19 = vmul.f32 %v10863_v29, %v5690_v13  ;;  %v12947_v63 = vld [vmem:[#allocation14_spill] sm:$0xff]  ;;  %v11053_v13 = vld [vmem:[#allocation3 + $0x68] sm:$0xff] }
 0x168   :  { %v5796_v50 = vrot.slane %v5764_v51, %v9232_v15  ;;  %v5811_v42 = vmul.f32 %v10868_v20, %v5792_v36  ;;  %v5870_v39 = vcombine.high %v10858_v55, %v10858_v55  ;;  %v5898_v62 = vrot.slane %v5868_v9, %v9232_v15  ;;  %v8459_v55 = vld [vmem:[#allocation3 + $0x32] ss:$0 sm:$0xff]  ;;  %v11058_v36 = vld [vmem:[#allocation3 + $0x80] sm:$0xff] }
 0x169   :  { %v977_v35 = vadd.f32 %v976_v61, %v975_v45  ;;  %v5713_v30 = vadd.f32 %v5705_v56, %v5607_v16  ;;  %v5714_v1 = vadd.f32 %v5706_v19, %v5608_v27  ;;  %v5974_v60 = vcombine.high %v10885_v59, %v10885_v59  ;;  %v12949_v45 = vld [vmem:[#allocation16_spill] sm:$0xff] }
 0x16a   :  { %v5812_v12 = vmul.f32 %v10868_v20, %v5796_v50  ;;  %v5976_v46 = vcombine.high %v10895_v7, %v10895_v7  ;;  %v5902_v5 = vrot.slane %v5870_v39, %v9232_v15  ;;  %v5917_v17 = vmul.f32 %v10878_v31, %v5898_v62 }
 0x16b   :  { %v978_v11 = vrot.slane %v977_v35, 2  ;;  %v5819_v25 = vadd.f32 %v5811_v42, %v5713_v30  ;;  %v6004_v44 = vrot.slane %v5974_v60, %v9232_v15  ;;  %v11029_v59 = vmul.f32 %v11026_v34, %v8457_v52 }
 0x16c   :  { %v5820_v18 = vadd.f32 %v5812_v12, %v5714_v1  ;;  %v6008_v26 = vrot.slane %v5976_v46, %v9232_v15  ;;  %v5918_v37 = vmul.f32 %v10878_v31, %v5902_v5  ;;  %v11035_v57 = vmul.f32 %v11032_v33, %v8458_v0 }
 0x16d   :  { %v979_v7 = vadd.f32 %v978_v11, %v977_v35  ;;  %v5925_v41 = vadd.f32 %v5917_v17, %v5819_v25  ;;  %v6023_v21 = vmul.f32 %v10905_v40, %v6004_v44  ;;  %v11042_v4 = vmul.f32 %v11039_v8, %v8459_v55  ;;  %v8463_v11 = vld [vmem:[#allocation3 + $0x92] ss:$0 sm:$0xff] }
 0x16e   :  { %v6024_v22 = vmul.f32 %v10905_v40, %v6008_v26  ;;  %v11047_v23 = vmul.f32 %v11044_v28, %v8460_v48  ;;  %v12948_v38 = vrot.slane %v12947_v63, 1  ;;  %v5034_v49 = vrot.slane %v12949_v45, 2  ;;  %v6057_v26 = vld [vmem:[#allocation6 + $0xa8] sm:$0xff] }
 0x16f   :  { %v980_v6 = vrot.slane %v979_v7, 1  ;;  %v5926_v2 = vadd.f32 %v5918_v37, %v5820_v18  ;;  %v6031_v47 = vadd.f32 %v6023_v21, %v5925_v41  ;;  %v11056_v51 = vmul.f32 %v11053_v13, %v8461_v54  ;;  %v11107_v21 = vld [vmem:[#allocation3 + $0x98] sm:$0xff] }
 0x170   :  { %v1895_v24 = vadd.f32 %v12948_v38, %v12947_v63  ;;  %v11061_v61 = vmul.f32 %v11058_v36, %v8462_v53  ;;  %v2153_v16 = vrot.slane %v11029_v59, %v9230_v14  ;;  %v2251_v27 = vrot.slane %v11035_v57, %v9230_v14 }
 0x171   :  { %12950 = vst [vmem:[#allocation12_spill] sm:$0xff] %v11056_v51  ;;  %v981_v56 = vadd.f32 %v980_v6, %v979_v7  ;;  %v6032_v9 = vadd.f32 %v6024_v22, %v5926_v2  ;;  %v2357_v19 = vrot.slane %v11042_v4, %v9230_v14  ;;  %v6039_v50 = vmul.f32 %v6031_v47, %v6031_v47  ;;  %v985_v7 = vld [vmem:[#allocation6 + $0x10] sm:$0xff]  ;;  %v8464_v6 = vld [vmem:[#allocation3 + $0xaa] ss:$0 sm:$0xff] }
 0x172   :  { %12951 = vst [vmem:[#allocation13_spill] sm:$0xff] %v11061_v61  ;;  %v2161_v42 = vcombine.high %v2153_v16, %v2153_v16  ;;  %v11070_v35 = vrot.slane %v2153_v16, %v9230_v14  ;;  %v2463_v30 = vrot.slane %v11047_v23, %v9230_v14  ;;  %v2259_v1 = vcombine.high %v2251_v27, %v2251_v27 }
 0x173   :  { %v11074_v39 = vadd.f32 %v1895_v24, %v981_v56  ;;  %v6040_v62 = vmul.f32 %v6032_v9, %v6032_v9  ;;  %v8921_v52 = vpack.c.bf16 %v6032_v9, %v6031_v47  ;;  %v6046_v12 = vadd.f32 %v10934_v10, %v6039_v50  ;;  %8680 = vmatprep.mubr.msk.f32.mxu1 %vm1902_vm0, %v985_v7 }
 0x174   :  { %v11078_v60 = vrot.slane %v2161_v42, %v9230_v14  ;;  %v2198_v46 = vrot.slane %v11070_v35, %v9232_v15  ;;  %v11083_v0 = vrot.slane %v2251_v27, %v9230_v14  ;;  %v11086_v25 = vrot.slane %v2259_v1, %v9230_v14  ;;  %v9043_v1 = vld [vmem:[#allocation3 + $0xb0] sm:$0xff] }
 0x175   :  { %12952 = vst [vmem:[#allocation15_spill] sm:$0xff] %v11074_v39  ;;  %8922 = vmatprep.subr.bf16.mxu0 %v8921_v52  ;;  %v2365_v5 = vcombine.high %v2357_v19, %v2357_v19  ;;  %v11089_v17 = vrot.slane %v2357_v19, %v9230_v14  ;;  %v2471_v55 = vcombine.high %v2463_v30, %v2463_v30 }
 0x176   :  { %v6047_v10 = vadd.f32 %v6046_v12, %v6040_v62  ;;  %8924 = vmatpush3.bf16.msra.mxu0 %v8921_v52  ;;  %v2202_v48 = vrot.slane %v11078_v60, %v9232_v15  ;;  %v2235_v18 = vmul.f32 %v10784_v32, %v2198_v46  ;;  %v2296_v44 = vrot.slane %v11083_v0, %v9232_v15 }
 0x177   :  { %v2300_v37 = vrot.slane %v11086_v25, %v9232_v15  ;;  %v11099_v41 = vrot.slane %v2365_v5, %v9230_v14  ;;  %v2402_v54 = vrot.slane %v11089_v17, %v9232_v15  ;;  %v11104_v53 = vrot.slane %v2463_v30, %v9230_v14 }
 0x178   :  { %v11110_v22 = vmul.f32 %v11107_v21, %v8463_v11  ;;  %v2236_v63 = vmul.f32 %v10784_v32, %v2202_v48  ;;  %v2333_v38 = vmul.f32 %v10801_v43, %v2296_v44  ;;  %v11115_v24 = vrot.slane %v2471_v55, %v9230_v14 }
 0x179   :  { %v2334_v2 = vmul.f32 %v10801_v43, %v2300_v37  ;;  %v2406_v47 = vrot.slane %v11099_v41, %v9232_v15  ;;  %v2439_v16 = vmul.f32 %v10806_v3, %v2402_v54  ;;  %v2508_v56 = vrot.slane %v11104_v53, %v9232_v15  ;;  %8766 = vmatmul.mubr.msk.f32.vlgmr.msra.gmra.mrb[0].mxu0 %vm1902_vm0, %v6057_v26 }
 0x17a   :  { %12953 = vst [vmem:[#allocation17_spill] sm:$0xff] %v11110_v22  ;;  %v6048_v9 = vrot.slane %v6047_v10, 4  ;;  %v2341_v27 = vadd.f32 %v2333_v38, %v2235_v18  ;;  %v2512_v19 = vrot.slane %v11115_v24, %v9232_v15  ;;  %v2569_v50 = vrot.slane %v11056_v51, %v9230_v14 }
 0x17b   :  { %v2342_v42 = vadd.f32 %v2334_v2, %v2236_v63  ;;  %v2440_v30 = vmul.f32 %v10806_v3, %v2406_v47  ;;  %v2545_v62 = vmul.f32 %v10841_v58, %v2508_v56  ;;  %v2675_v52 = vrot.slane %v11061_v61, %v9230_v14 }
 0x17c   :  { %v11132_v12 = vmul.f32 %v9043_v1, %v8464_v6  ;;  %v2447_v46 = vadd.f32 %v2439_v16, %v2341_v27  ;;  %v2546_v11 = vmul.f32 %v10841_v58, %v2512_v19  ;;  %v2577_v5 = vcombine.high %v2569_v50, %v2569_v50  ;;  %v8505_v19 = vld [vmem:[#allocation3 + $0x6] ss:$0 sm:$0xff] }
 0x17d   :  { %v2448_v55 = vadd.f32 %v2440_v30, %v2342_v42  ;;  %v11136_v48 = vrot.slane %v2569_v50, %v9230_v14  ;;  %v2683_v18 = vcombine.high %v2675_v52, %v2675_v52  ;;  %v11139_v44 = vrot.slane %v2675_v52, %v9230_v14  ;;  %v8506_v52 = vld [vmem:[#allocation3 + $0x1e] ss:$0 sm:$0xff] }
 0x17e   :  { %12954 = vst [vmem:[#allocation18_spill] sm:$0xff] %v11132_v12  ;;  %v11144_v26 = vadd.f32 %v5034_v49, %v12949_v45  ;;  %v11146_v7 = vadd.f32 %v6048_v9, %v6047_v10  ;;  %v11149_v37 = vrot.slane %v2577_v5, %v9230_v14  ;;  %v2781_v54 = vrot.slane %v11110_v22, %v9230_v14  ;;  %v6059_v22 = vld [vmem:[#allocation6 + $0xb8] sm:$0xff] }
 0x17f   :  { %v2553_v63 = vadd.f32 %v2545_v62, %v2447_v46  ;;  %v2614_v38 = vrot.slane %v11136_v48, %v9232_v15  ;;  %v11156_v6 = vrot.slane %v2683_v18, %v9230_v14  ;;  %v2720_v2 = vrot.slane %v11139_v44, %v9232_v15  ;;  %v8507_v18 = vld [vmem:[#allocation3 + $0x36] ss:$0 sm:$0xff] }
 0x180   :  { %12955 = vst [vmem:[#allocation19_spill] sm:$0xff] %v11144_v26  ;;  %12956 = vst [vmem:[#allocation20_spill] sm:$0xff] %v11146_v7  ;;  %v2554_v45 = vadd.f32 %v2546_v11, %v2448_v55  ;;  %v2618_v49 = vrot.slane %v11149_v37, %v9232_v15  ;;  %v2789_v10 = vcombine.high %v2781_v54, %v2781_v54  ;;  %v6058_v7 = vld [vmem:[#allocation6 + $0xb0] sm:$0xff] }
 0x181   :  { %v11163_v47 = vrot.slane %v2781_v54, %v9230_v14  ;;  %v2651_v16 = vmul.f32 %v10863_v29, %v2614_v38  ;;  %v2724_v56 = vrot.slane %v11156_v6, %v9232_v15  ;;  %v2757_v9 = vmul.f32 %v10868_v20, %v2720_v2  ;;  %v8508_v54 = vld [vmem:[#allocation3 + $0x4e] ss:$0 sm:$0xff]  ;;  %v8511_v26 = vld [vmem:[#allocation3 + $0x96] ss:$0 sm:$0xff]  ;;  %8768 = vmatprep.mubr.msk.f32.mxu0 %vm1902_vm0, %v6058_v7 }
 0x182   :  { %v2887_v27 = vrot.slane %v11132_v12, %v9230_v14  ;;  %v2652_v42 = vmul.f32 %v10863_v29, %v2618_v49  ;;  %v11174_v30 = vrot.slane %v2789_v10, %v9230_v14  ;;  %v8509_v10 = vld [vmem:[#allocation3 + $0x66] ss:$0 sm:$0xff]  ;;  %v11186_v50 = vmul.f32 %v11026_v34, %v8505_v19  ;;  %8769 = vmatmul.mubr.msk.f32.gmra.mrb[2].mxu0 %vm1902_vm0, %v6059_v22 }
 0x183   :  { %v2826_v62 = vrot.slane %v11163_v47, %v9232_v15  ;;  %v2659_v46 = vadd.f32 %v2651_v16, %v2553_v63  ;;  %v2758_v11 = vmul.f32 %v10868_v20, %v2724_v56  ;;  %v11199_v19 = vmul.f32 %v11039_v8, %v8507_v18 }
 0x184   :  { %v2895_v5 = vcombine.high %v2887_v27, %v2887_v27  ;;  %v11180_v55 = vrot.slane %v2887_v27, %v9230_v14  ;;  %v2660_v38 = vadd.f32 %v2652_v42, %v2554_v45  ;;  %v2830_v2 = vrot.slane %v11174_v30, %v9232_v15  ;;  %12957 = vst [vmem:[#allocation21_spill] sm:$0xff] %v11186_v50  ;;  %v8510_v27 = vld [vmem:[#allocation3 + $0x7e] ss:$0 sm:$0xff]  ;;  %v8512_v45 = vld [vmem:[#allocation3 + $0xae] ss:$0 sm:$0xff] }
 0x185   :  { %v2863_v49 = vmul.f32 %v10878_v31, %v2826_v62  ;;  %v2765_v63 = vadd.f32 %v2757_v9, %v2659_v46  ;;  %v11194_v42 = vmul.f32 %v11032_v33, %v8506_v52  ;;  %12959 = vst [vmem:[#allocation23_spill] sm:$0xff] %v11199_v19  ;;  %v11202_v9 = vmul.f32 %v11044_v28, %v8508_v54 }
 0x186   :  { %v11189_v16 = vrot.slane %v2895_v5, %v9230_v14  ;;  %v2932_v56 = vrot.slane %v11180_v55, %v9232_v15  ;;  %v2766_v62 = vadd.f32 %v2758_v11, %v2660_v38  ;;  %v2864_v34 = vmul.f32 %v10878_v31, %v2830_v2 }
 0x187   :  { %12958 = vst [vmem:[#allocation22_spill] sm:$0xff] %v11194_v42  ;;  %12960 = vst [vmem:[#allocation24_spill] sm:$0xff] %v11202_v9  ;;  %v2871_v46 = vadd.f32 %v2863_v49, %v2765_v63  ;;  %v11208_v33 = vmul.f32 %v11053_v13, %v8509_v10  ;;  %v11211_v7 = vmul.f32 %v11058_v36, %v8510_v27 }
 0x188   :  { %v2936_v5 = vrot.slane %v11189_v16, %v9232_v15  ;;  %v2969_v39 = vmul.f32 %v10905_v40, %v2932_v56  ;;  %v2872_v52 = vadd.f32 %v2864_v34, %v2766_v62  ;;  %v11214_v11 = vmul.f32 %v11107_v21, %v8511_v26 }
 0x189   :  { %12961 = vst [vmem:[#allocation14_spill] sm:$0xff] %v11208_v33  ;;  %12962 = vst [vmem:[#allocation16_spill] sm:$0xff] %v11211_v7  ;;  %v11216_v8 = vmul.f32 %v9043_v1, %v8512_v45  ;;  %v6217_v54 = vrot.slane %v11186_v50, %v9230_v14  ;;  %v6315_v38 = vrot.slane %v11194_v42, %v9230_v14 }
 0x18a   :  { %12963 = vst [vmem:[#allocation25_spill] sm:$0xff] %v11214_v11  ;;  %v2970_v28 = vmul.f32 %v10905_v40, %v2936_v5  ;;  %v2977_v18 = vadd.f32 %v2969_v39, %v2871_v46  ;;  %v6421_v13 = vrot.slane %v11199_v19, %v9230_v14  ;;  %v6527_v36 = vrot.slane %v11202_v9, %v9230_v14 }
 0x18b   :  { %12964 = vst [vmem:[#allocation26_spill] sm:$0xff] %v11216_v8  ;;  %v6633_v21 = vrot.slane %v11208_v33, %v9230_v14  ;;  %v6739_v1 = vrot.slane %v11211_v7, %v9230_v14  ;;  %v6225_v2 = vcombine.high %v6217_v54, %v6217_v54  ;;  %v11232_v49 = vrot.slane %v6217_v54, %v9230_v14 }
 0x18c   :  { %v2978_v26 = vadd.f32 %v2970_v28, %v2872_v52  ;;  %v2985_v39 = vmul.f32 %v2977_v18, %v2977_v18  ;;  %v6323_v10 = vcombine.high %v6315_v38, %v6315_v38  ;;  %v11235_v63 = vrot.slane %v6315_v38, %v9230_v14 }
 0x18d   :  { %v6429_v56 = vcombine.high %v6421_v13, %v6421_v13  ;;  %v11238_v27 = vrot.slane %v6421_v13, %v9230_v14  ;;  %v11241_v34 = vrot.slane %v6225_v2, %v9230_v14  ;;  %v6262_v46 = vrot.slane %v11232_v49, %v9232_v15 }
 0x18e   :  { %v2986_v45 = vmul.f32 %v2978_v26, %v2978_v26  ;;  %v8861_v62 = vpack.c.bf16 %v2978_v26, %v2977_v18  ;;  %v11246_v5 = vrot.slane %v6323_v10, %v9230_v14  ;;  %v6360_v52 = vrot.slane %v11235_v63, %v9232_v15 }
 0x18f   :  { %v11251_v28 = vrot.slane %v6429_v56, %v9230_v14  ;;  %v6466_v54 = vrot.slane %v11238_v27, %v9232_v15  ;;  %v6266_v18 = vrot.slane %v11241_v34, %v9232_v15  ;;  %v6299_v13 = vmul.f32 %v10784_v32, %v6262_v46 }
 0x190   :  { %v11255_v38 = vadd.f32 %v2986_v45, %v2985_v39  ;;  %8862 = vmatprep.subr.bf16.mxu1 %v8861_v62  ;;  %v6535_v26 = vcombine.high %v6527_v36, %v6527_v36  ;;  %v6364_v2 = vrot.slane %v11246_v5, %v9232_v15  ;;  %v6397_v10 = vmul.f32 %v10801_v43, %v6360_v52 }
 0x191   :  { %v6470_v56 = vrot.slane %v11251_v28, %v9232_v15  ;;  %v6503_v7 = vmul.f32 %v10806_v3, %v6466_v54  ;;  %8864 = vmatpush3.bf16.msra.mxu1 %v8861_v62  ;;  %v6300_v39 = vmul.f32 %v10784_v32, %v6266_v18  ;;  %v11268_v45 = vrot.slane %v6527_v36, %v9230_v14 }
 0x192   :  { %v11271_v33 = vrot.slane %v6535_v26, %v9230_v14  ;;  %v6641_v46 = vcombine.high %v6633_v21, %v6633_v21  ;;  %v6398_v9 = vmul.f32 %v10801_v43, %v6364_v2  ;;  %v6405_v19 = vadd.f32 %v6397_v10, %v6299_v13 }
 0x193   :  { %v6504_v52 = vmul.f32 %v10806_v3, %v6470_v56  ;;  %v11276_v42 = vrot.slane %v6633_v21, %v9230_v14  ;;  %v6572_v62 = vrot.slane %v11268_v45, %v9232_v15  ;;  %v6747_v18 = vcombine.high %v6739_v1, %v6739_v1 }
 0x194   :  { %v6576_v54 = vrot.slane %v11271_v33, %v9232_v15  ;;  %v11283_v36 = vrot.slane %v6641_v46, %v9230_v14  ;;  %v6406_v26 = vadd.f32 %v6398_v9, %v6300_v39  ;;  %v6511_v50 = vadd.f32 %v6503_v7, %v6405_v19  ;;  %v986_v46 = vld [vmem:[#allocation6 + $0x18] sm:$0xff] }
 0x195   :  { %v6678_v13 = vrot.slane %v11276_v42, %v9232_v15  ;;  %v11288_v2 = vrot.slane %v6739_v1, %v9230_v14  ;;  %v6609_v21 = vmul.f32 %v10841_v58, %v6572_v62  ;;  %v11295_v12 = vrot.slane %v6747_v18, %v9230_v14  ;;  %8681 = vmatmul.mubr.msk.f32.gmra.mrb[2].mxu1 %vm1902_vm0, %v986_v46 }
 0x196   :  { %v6610_v10 = vmul.f32 %v10841_v58, %v6576_v54  ;;  %v6682_v56 = vrot.slane %v11283_v36, %v9232_v15  ;;  %v6512_v9 = vadd.f32 %v6504_v52, %v6406_v26  ;;  %v6845_v1 = vrot.slane %v11214_v11, %v9230_v14  ;;  %v3008_v11 = vld [vmem:[#allocation6 + $0x40] sm:$0xff] }
 0x197   :  { %v6715_v19 = vmul.f32 %v10863_v29, %v6678_v13  ;;  %v6784_v7 = vrot.slane %v11288_v2, %v9232_v15  ;;  %v6617_v39 = vadd.f32 %v6609_v21, %v6511_v50  ;;  %v6788_v54 = vrot.slane %v11295_v12, %v9232_v15  ;;  %8699 = vmatprep.mubr.msk.f32.mxu1 %vm1902_vm0, %v3008_v11 }
 0x198   :  { %v6716_v62 = vmul.f32 %v10863_v29, %v6682_v56  ;;  %v6951_v18 = vrot.slane %v11216_v8, %v9230_v14  ;;  %v6618_v52 = vadd.f32 %v6610_v10, %v6512_v9  ;;  %v6853_v13 = vcombine.high %v6845_v1, %v6845_v1 }
 0x199   :  { %v6821_v26 = vmul.f32 %v10868_v20, %v6784_v7  ;;  %v11311_v61 = vrot.slane %v6845_v1, %v9230_v14  ;;  %v6723_v46 = vadd.f32 %v6715_v19, %v6617_v39  ;;  %v6822_v50 = vmul.f32 %v10868_v20, %v6788_v54 }
 0x19a   :  { %v6959_v21 = vcombine.high %v6951_v18, %v6951_v18  ;;  %v11315_v56 = vrot.slane %v6951_v18, %v9230_v14  ;;  %v6724_v8 = vadd.f32 %v6716_v62, %v6618_v52  ;;  %v11319_v22 = vrot.slane %v6853_v13, %v9230_v14 }
 0x19b   :  { %v6890_v10 = vrot.slane %v11311_v61, %v9232_v15  ;;  %v2191_v9 = vcombine.high %v11070_v35, %v11070_v35  ;;  %v6829_v7 = vadd.f32 %v6821_v26, %v6723_v46  ;;  %v2193_v11 = vcombine.high %v11078_v60, %v11078_v60 }
 0x19c   :  { %v11326_v19 = vrot.slane %v6959_v21, %v9230_v14  ;;  %v6996_v1 = vrot.slane %v11315_v56, %v9232_v15  ;;  %v6830_v39 = vadd.f32 %v6822_v50, %v6724_v8  ;;  %v6894_v62 = vrot.slane %v11319_v22, %v9232_v15 }
 0x19d   :  { %v6927_v54 = vmul.f32 %v10878_v31, %v6890_v10  ;;  %v2206_v18 = vrot.slane %v2191_v9, %v9232_v15  ;;  %v2210_v26 = vrot.slane %v2193_v11, %v9232_v15  ;;  %v2289_v13 = vcombine.high %v11083_v0, %v11083_v0 }
 0x19e   :  { %v7000_v35 = vrot.slane %v11326_v19, %v9232_v15  ;;  %v7033_v52 = vmul.f32 %v10905_v40, %v6996_v1  ;;  %v6928_v60 = vmul.f32 %v10878_v31, %v6894_v62  ;;  %v2291_v50 = vcombine.high %v11086_v25, %v11086_v25 }
 0x19f   :  { %v6935_v8 = vadd.f32 %v6927_v54, %v6829_v7  ;;  %v2237_v46 = vmul.f32 %v10784_v32, %v2206_v18  ;;  %v2238_v10 = vmul.f32 %v10784_v32, %v2210_v26  ;;  %v2304_v9 = vrot.slane %v2289_v13, %v9232_v15 }
 0x1a0   :  { %v7034_v21 = vmul.f32 %v10905_v40, %v7000_v35  ;;  %v2395_v1 = vcombine.high %v11089_v17, %v11089_v17  ;;  %v6936_v11 = vadd.f32 %v6928_v60, %v6830_v39  ;;  %v2308_v0 = vrot.slane %v2291_v50, %v9232_v15 }
 0x1a1   :  { %v7041_v51 = vadd.f32 %v7033_v52, %v6935_v8  ;;  %v2397_v7 = vcombine.high %v11099_v41, %v11099_v41  ;;  %v2335_v62 = vmul.f32 %v10801_v43, %v2304_v9  ;;  %v2501_v54 = vcombine.high %v11104_v53, %v11104_v53 }
 0x1a2   :  { %v2410_v25 = vrot.slane %v2395_v1, %v9232_v15  ;;  %v2503_v32 = vcombine.high %v11115_v24, %v11115_v24  ;;  %v7042_v18 = vadd.f32 %v7034_v21, %v6936_v11  ;;  %v2336_v17 = vmul.f32 %v10801_v43, %v2308_v0 }
 0x1a3   :  { %v7049_v35 = vmul.f32 %v7041_v51, %v7041_v51  ;;  %v2414_v39 = vrot.slane %v2397_v7, %v9232_v15  ;;  %v2343_v52 = vadd.f32 %v2335_v62, %v2237_v46  ;;  %v2516_v41 = vrot.slane %v2501_v54, %v9232_v15 }
 0x1a4   :  { %v2441_v26 = vmul.f32 %v10806_v3, %v2410_v25  ;;  %v2520_v13 = vrot.slane %v2503_v32, %v9232_v15  ;;  %v7050_v60 = vmul.f32 %v7042_v18, %v7042_v18  ;;  %v8925_v8 = vpack.c.bf16 %v7042_v18, %v7041_v51 }
 0x1a5   :  { %v2344_v50 = vadd.f32 %v2336_v17, %v2238_v10  ;;  %v2442_v53 = vmul.f32 %v10806_v3, %v2414_v39  ;;  %v2547_v24 = vmul.f32 %v10841_v58, %v2516_v41  ;;  %v2607_v43 = vcombine.high %v11136_v48, %v11136_v48 }
 0x1a6   :  { %v2449_v9 = vadd.f32 %v2441_v26, %v2343_v52  ;;  %v2548_v21 = vmul.f32 %v10841_v58, %v2520_v13  ;;  %v11370_v46 = vadd.f32 %v7050_v60, %v7049_v35  ;;  %8926 = vmatprep.subr.bf16.mxu0 %v8925_v8  ;;  %v2609_v11 = vcombine.high %v11149_v37, %v11149_v37 }
 0x1a7   :  { %v2450_v1 = vadd.f32 %v2442_v53, %v2344_v50  ;;  %v2713_v51 = vcombine.high %v11139_v44, %v11139_v44  ;;  %8928 = vmatpush3.bf16.msra.mxu0 %v8925_v8  ;;  %v2622_v10 = vrot.slane %v2607_v43, %v9232_v15  ;;  %v2715_v0 = vcombine.high %v11156_v6, %v11156_v6 }
 0x1a8   :  { %v2555_v3 = vadd.f32 %v2547_v24, %v2449_v9  ;;  %v2819_v48 = vcombine.high %v11163_v47, %v11163_v47  ;;  %v2626_v62 = vrot.slane %v2609_v11, %v9232_v15  ;;  %v2821_v37 = vcombine.high %v11174_v30, %v11174_v30 }
 0x1a9   :  { %v2556_v7 = vadd.f32 %v2548_v21, %v2450_v1  ;;  %v2728_v25 = vrot.slane %v2713_v51, %v9232_v15  ;;  %v2653_v44 = vmul.f32 %v10863_v29, %v2622_v10  ;;  %v2732_v54 = vrot.slane %v2715_v0, %v9232_v15  ;;  %v11415_v10 = vld [vmem:[#allocation3 + $0x10] sm:$0xff] }
 0x1aa   :  { %v2834_v32 = vrot.slane %v2819_v48, %v9232_v15  ;;  %v2925_v6 = vcombine.high %v11180_v55, %v11180_v55  ;;  %v2654_v18 = vmul.f32 %v10863_v29, %v2626_v62  ;;  %v2838_v35 = vrot.slane %v2821_v37, %v9232_v15  ;;  %v11423_v62 = vld [vmem:[#allocation3 + $0x28] sm:$0xff] }
 0x1ab   :  { %v2759_v47 = vmul.f32 %v10868_v20, %v2728_v25  ;;  %v2927_v17 = vcombine.high %v11189_v16, %v11189_v16  ;;  %v2661_v39 = vadd.f32 %v2653_v44, %v2555_v3  ;;  %v2760_v30 = vmul.f32 %v10868_v20, %v2732_v54 }
 0x1ac   :  { %v2865_v52 = vmul.f32 %v10878_v31, %v2834_v32  ;;  %v2940_v26 = vrot.slane %v2925_v6, %v9232_v15  ;;  %v2662_v41 = vadd.f32 %v2654_v18, %v2556_v7  ;;  %v2866_v13 = vmul.f32 %v10878_v31, %v2838_v35  ;;  %v11431_v18 = vld [vmem:[#allocation3 + $0x40] sm:$0xff] }
 0x1ad   :  { %v2944_v55 = vrot.slane %v2927_v17, %v9232_v15  ;;  %v6255_v60 = vcombine.high %v11232_v49, %v11232_v49  ;;  %v2767_v8 = vadd.f32 %v2759_v47, %v2661_v39  ;;  %v6257_v16 = vcombine.high %v11241_v34, %v11241_v34  ;;  %v7072_v34 = vld [vmem:[#allocation6 + $0xc0] sm:$0xff] }
 0x1ae   :  { %v2971_v50 = vmul.f32 %v10905_v40, %v2940_v26  ;;  %v6353_v53 = vcombine.high %v11235_v63, %v11235_v63  ;;  %v2768_v9 = vadd.f32 %v2760_v30, %v2662_v41  ;;  %v6355_v43 = vcombine.high %v11246_v5, %v11246_v5  ;;  %8787 = vmatprep.mubr.msk.f32.mxu0 %vm1902_vm0, %v7072_v34 }
 0x1af   :  { %v2972_v24 = vmul.f32 %v10905_v40, %v2944_v55  ;;  %v6270_v21 = vrot.slane %v6255_v60, %v9232_v15  ;;  %v2873_v1 = vadd.f32 %v2865_v52, %v2767_v8  ;;  %v6274_v49 = vrot.slane %v6257_v16, %v9232_v15 }
 0x1b0   :  { %v6368_v11 = vrot.slane %v6353_v53, %v9232_v15  ;;  %v6459_v51 = vcombine.high %v11238_v27, %v11238_v27  ;;  %v2874_v3 = vadd.f32 %v2866_v13, %v2768_v9  ;;  %v6372_v0 = vrot.slane %v6355_v43, %v9232_v15 }
 0x1b1   :  { %v6301_v63 = vmul.f32 %v11415_v10, %v6270_v21  ;;  %v6461_v48 = vcombine.high %v11251_v28, %v11251_v28  ;;  %v2979_v5 = vadd.f32 %v2971_v50, %v2873_v1  ;;  %v6302_v7 = vmul.f32 %v11415_v10, %v6274_v49 }
 0x1b2   :  { %v6399_v27 = vmul.f32 %v11423_v62, %v6368_v11  ;;  %v6474_v25 = vrot.slane %v6459_v51, %v9232_v15  ;;  %v2980_v37 = vadd.f32 %v2972_v24, %v2874_v3  ;;  %v6400_v44 = vmul.f32 %v11423_v62, %v6372_v0 }
 0x1b3   :  { %v6478_v54 = vrot.slane %v6461_v48, %v9232_v15  ;;  %v6565_v32 = vcombine.high %v11268_v45, %v11268_v45  ;;  %v2987_v28 = vmul.f32 %v2979_v5, %v2979_v5  ;;  %v6567_v35 = vcombine.high %v11271_v33, %v11271_v33 }
 0x1b4   :  { %v6407_v6 = vadd.f32 %v6399_v27, %v6301_v63  ;;  %v6505_v47 = vmul.f32 %v11431_v18, %v6474_v25  ;;  %v2988_v17 = vmul.f32 %v2980_v37, %v2980_v37  ;;  %v8865_v39 = vpack.c.bf16 %v2980_v37, %v2979_v5 }
 0x1b5   :  { %v6408_v30 = vadd.f32 %v6400_v44, %v6302_v7  ;;  %v6506_v52 = vmul.f32 %v11431_v18, %v6478_v54  ;;  %v2994_v26 = vadd.f32 %v11255_v38, %v2987_v28  ;;  %v6580_v13 = vrot.slane %v6565_v32, %v9232_v15 }
 0x1b6   :  { %v6513_v41 = vadd.f32 %v6505_v47, %v6407_v6  ;;  %v6584_v45 = vrot.slane %v6567_v35, %v9232_v15  ;;  %8866 = vmatprep.subr.bf16.mxu1 %v8865_v39  ;;  %v6671_v60 = vcombine.high %v11276_v42, %v11276_v42  ;;  %v6673_v33 = vcombine.high %v11283_v36, %v11283_v36 }
 0x1b7   :  { %v6514_v55 = vadd.f32 %v6506_v52, %v6408_v30  ;;  %v6777_v8 = vcombine.high %v11288_v2, %v11288_v2  ;;  %v11446_v50 = vadd.f32 %v2994_v26, %v2988_v17  ;;  %v6611_v38 = vmul.f32 %v10841_v58, %v6580_v13  ;;  %8868 = vmatpush3.bf16.msra.mxu1 %v8865_v39 }
 0x1b8   :  { %v6612_v16 = vmul.f32 %v10841_v58, %v6584_v45  ;;  %v6779_v53 = vcombine.high %v11295_v12, %v11295_v12  ;;  %v6686_v9 = vrot.slane %v6671_v60, %v9232_v15  ;;  %v6690_v42 = vrot.slane %v6673_v33, %v9232_v15 }
 0x1b9   :  { %v6792_v24 = vrot.slane %v6777_v8, %v9232_v15  ;;  %v6883_v36 = vcombine.high %v11311_v61, %v11311_v61  ;;  %v6619_v2 = vadd.f32 %v6611_v38, %v6513_v41  ;;  %v6885_v58 = vcombine.high %v11319_v22, %v11319_v22 }
 0x1ba   :  { %v6620_v21 = vadd.f32 %v6612_v16, %v6514_v55  ;;  %v6796_v43 = vrot.slane %v6779_v53, %v9232_v15  ;;  %v6717_v1 = vmul.f32 %v10863_v29, %v6686_v9  ;;  %v6718_v12 = vmul.f32 %v10863_v29, %v6690_v42 }
 0x1bb   :  { %v6823_v49 = vmul.f32 %v10868_v20, %v6792_v24  ;;  %v6898_v11 = vrot.slane %v6883_v36, %v9232_v15  ;;  %v6902_v34 = vrot.slane %v6885_v58, %v9232_v15  ;;  %v6989_v61 = vcombine.high %v11315_v56, %v11315_v56 }
 0x1bc   :  { %v6824_v51 = vmul.f32 %v10868_v20, %v6796_v43  ;;  %v6991_v3 = vcombine.high %v11326_v19, %v11326_v19  ;;  %v6725_v63 = vadd.f32 %v6717_v1, %v6619_v2  ;;  %v6726_v22 = vadd.f32 %v6718_v12, %v6620_v21  ;;  %v12965_v12 = vld [vmem:[#allocation12_spill] sm:$0xff] }
 0x1bd   :  { %v6929_v0 = vmul.f32 %v10878_v31, %v6898_v11  ;;  %v2146_v29 = vcombine.high %v11029_v59, %v11029_v59  ;;  %v6930_v48 = vmul.f32 %v10878_v31, %v6902_v34  ;;  %v7004_v5 = vrot.slane %v6989_v61, %v9232_v15  ;;  %v12966_v61 = vld [vmem:[#allocation13_spill] sm:$0xff] }
 0x1be   :  { %v7008_v20 = vrot.slane %v6991_v3, %v9232_v15  ;;  %v2244_v7 = vcombine.high %v11035_v57, %v11035_v57  ;;  %v6831_v56 = vadd.f32 %v6823_v49, %v6725_v63  ;;  %v6832_v27 = vadd.f32 %v6824_v51, %v6726_v22 }
 0x1bf   :  { %v2160_v19 = vrot.slane %v2146_v29, %v9230_v14  ;;  %v2350_v25 = vcombine.high %v11042_v4, %v11042_v4  ;;  %v7035_v37 = vmul.f32 %v10905_v40, %v7004_v5  ;;  %v2456_v44 = vcombine.high %v11047_v23, %v11047_v23  ;;  %v12967_v29 = vld [vmem:[#allocation17_spill] sm:$0xff] }
 0x1c0   :  { %v7036_v59 = vmul.f32 %v10905_v40, %v7008_v20  ;;  %v2258_v31 = vrot.slane %v2244_v7, %v9230_v14  ;;  %v6937_v54 = vadd.f32 %v6929_v0, %v6831_v56  ;;  %v6938_v32 = vadd.f32 %v6930_v48, %v6832_v27  ;;  %v11544_v20 = vld [vmem:[#allocation3 + $0x58] sm:$0xff] }
 0x1c1   :  { %v2162_v28 = vcombine.high %v2160_v19, %v2160_v19  ;;  %v11487_v57 = vrot.slane %v2160_v19, %v9230_v14  ;;  %v2364_v4 = vrot.slane %v2350_v25, %v9230_v14  ;;  %v2470_v35 = vrot.slane %v2456_v44, %v9230_v14  ;;  %v12968_v27 = vld [vmem:[#allocation18_spill] sm:$0xff] }
 0x1c2   :  { %v2260_v6 = vcombine.high %v2258_v31, %v2258_v31  ;;  %v11490_v47 = vrot.slane %v2258_v31, %v9230_v14  ;;  %v7043_v40 = vadd.f32 %v7035_v37, %v6937_v54  ;;  %v7044_v17 = vadd.f32 %v7036_v59, %v6938_v32 }
 0x1c3   :  { %v11495_v39 = vrot.slane %v2162_v28, %v9230_v14  ;;  %v2214_v23 = vrot.slane %v11487_v57, %v9232_v15  ;;  %v2366_v26 = vcombine.high %v2364_v4, %v2364_v4  ;;  %v11505_v41 = vrot.slane %v2364_v4, %v9230_v14 }
 0x1c4   :  { %v11500_v30 = vrot.slane %v2260_v6, %v9230_v14  ;;  %v2312_v52 = vrot.slane %v11490_v47, %v9232_v15  ;;  %v7051_v13 = vmul.f32 %v7043_v40, %v7043_v40  ;;  %v7052_v45 = vmul.f32 %v7044_v17, %v7044_v17 }
 0x1c5   :  { %v8929_v55 = vpack.c.bf16 %v7044_v17, %v7043_v40  ;;  %v2218_v60 = vrot.slane %v11495_v39, %v9232_v15  ;;  %v2239_v33 = vmul.f32 %v11415_v10, %v2214_v23  ;;  %v11514_v16 = vrot.slane %v2366_v26, %v9230_v14 }
 0x1c6   :  { %v2316_v8 = vrot.slane %v11500_v30, %v9232_v15  ;;  %v2337_v38 = vmul.f32 %v11423_v62, %v2312_v52  ;;  %v7058_v53 = vadd.f32 %v11370_v46, %v7051_v13  ;;  %v2418_v42 = vrot.slane %v11505_v41, %v9232_v15 }
 0x1c7   :  { %8930 = vmatprep.subr.bf16.mxu0 %v8929_v55  ;;  %v2240_v9 = vmul.f32 %v11415_v10, %v2218_v60  ;;  %v2472_v24 = vcombine.high %v2470_v35, %v2470_v35  ;;  %v2422_v21 = vrot.slane %v11514_v16, %v9232_v15  ;;  %v11524_v43 = vrot.slane %v2470_v35, %v9230_v14 }
 0x1c8   :  { %8932 = vmatpush3.bf16.msra.mxu0 %v8929_v55  ;;  %v2338_v36 = vmul.f32 %v11423_v62, %v2316_v8  ;;  %v2345_v2 = vadd.f32 %v2337_v38, %v2239_v33  ;;  %v11526_v58 = vadd.f32 %v7058_v53, %v7052_v45  ;;  %v2443_v46 = vmul.f32 %v11431_v18, %v2418_v42  ;;  %v11574_v45 = vld [vmem:[#allocation3 + $0x70] sm:$0xff]  ;;  %v11585_v38 = vld [vmem:[#allocation3 + $0x88] sm:$0xff] }
 0x1c9   :  { %v11530_v1 = vrot.slane %v2472_v24, %v9230_v14  ;;  %v2562_v49 = vcombine.high %v12965_v12, %v12965_v12  ;;  %v2444_v51 = vmul.f32 %v11431_v18, %v2422_v21  ;;  %v2524_v34 = vrot.slane %v11524_v43, %v9232_v15  ;;  %v11599_v12 = vld [vmem:[#allocation3 + $0xa0] sm:$0xff] }
 0x1ca   :  { %v2346_v11 = vadd.f32 %v2338_v36, %v2240_v9  ;;  %v2668_v3 = vcombine.high %v12966_v61, %v12966_v61  ;;  %v2451_v63 = vadd.f32 %v2443_v46, %v2345_v2  ;;  %v2774_v48 = vcombine.high %v12967_v29, %v12967_v29 }
 0x1cb   :  { %v2528_v22 = vrot.slane %v11530_v1, %v9232_v15  ;;  %v2576_v0 = vrot.slane %v2562_v49, %v9230_v14  ;;  %v2549_v7 = vmul.f32 %v11544_v20, %v2524_v34  ;;  %v2880_v19 = vcombine.high %v12968_v27, %v12968_v27 }
 0x1cc   :  { %v2452_v5 = vadd.f32 %v2444_v51, %v2346_v11  ;;  %v2682_v56 = vrot.slane %v2668_v3, %v9230_v14  ;;  %v2788_v31 = vrot.slane %v2774_v48, %v9230_v14  ;;  %v12969_v51 = vld [vmem:[#allocation21_spill] sm:$0xff] }
 0x1cd   :  { %v2550_v25 = vmul.f32 %v11544_v20, %v2528_v22  ;;  %v2578_v37 = vcombine.high %v2576_v0, %v2576_v0  ;;  %v11552_v59 = vrot.slane %v2576_v0, %v9230_v14  ;;  %v2557_v44 = vadd.f32 %v2549_v7, %v2451_v63  ;;  %v11607_v22 = vld [vmem:[#allocation3 + $0xb8] sm:$0xff] }
 0x1ce   :  { %v2684_v54 = vcombine.high %v2682_v56, %v2682_v56  ;;  %v11556_v32 = vrot.slane %v2682_v56, %v9230_v14  ;;  %v2894_v28 = vrot.slane %v2880_v19, %v9230_v14  ;;  %v2790_v40 = vcombine.high %v2788_v31, %v2788_v31  ;;  %v12971_v56 = vld [vmem:[#allocation23_spill] sm:$0xff] }
 0x1cf   :  { %v2558_v6 = vadd.f32 %v2550_v25, %v2452_v5  ;;  %v11560_v4 = vrot.slane %v2578_v37, %v9230_v14  ;;  %v2630_v35 = vrot.slane %v11552_v59, %v9232_v15  ;;  %v11570_v52 = vrot.slane %v2788_v31, %v9230_v14  ;;  %v12970_v5 = vld [vmem:[#allocation22_spill] sm:$0xff]  ;;  %v12972_v37 = vld [vmem:[#allocation24_spill] sm:$0xff] }
 0x1d0   :  { %v11565_v17 = vrot.slane %v2684_v54, %v9230_v14  ;;  %v2736_v23 = vrot.slane %v11556_v32, %v9232_v15  ;;  %v2896_v26 = vcombine.high %v2894_v28, %v2894_v28  ;;  %v11578_v60 = vrot.slane %v2790_v40, %v9230_v14 }
 0x1d1   :  { %v2634_v13 = vrot.slane %v11560_v4, %v9232_v15  ;;  %v2655_v55 = vmul.f32 %v11574_v45, %v2630_v35  ;;  %v11581_v33 = vrot.slane %v2894_v28, %v9230_v14  ;;  %v2842_v9 = vrot.slane %v11570_v52, %v9232_v15 }
 0x1d2   :  { %v2740_v8 = vrot.slane %v11565_v17, %v9232_v15  ;;  %v2761_v53 = vmul.f32 %v11585_v38, %v2736_v23  ;;  %v11591_v42 = vrot.slane %v2896_v26, %v9230_v14  ;;  %v2846_v2 = vrot.slane %v11578_v60, %v9232_v15 }
 0x1d3   :  { %v2656_v24 = vmul.f32 %v11574_v45, %v2634_v13  ;;  %v2663_v36 = vadd.f32 %v2655_v55, %v2557_v44  ;;  %v2948_v21 = vrot.slane %v11581_v33, %v9232_v15  ;;  %v2867_v49 = vmul.f32 %v11599_v12, %v2842_v9  ;;  %v12973_v44 = vld [vmem:[#allocation14_spill] sm:$0xff] }
 0x1d4   :  { %v2762_v46 = vmul.f32 %v11585_v38, %v2740_v8  ;;  %v2952_v11 = vrot.slane %v11591_v42, %v9232_v15  ;;  %v6210_v34 = vcombine.high %v12969_v51, %v12969_v51  ;;  %v2868_v63 = vmul.f32 %v11599_v12, %v2846_v2 }
 0x1d5   :  { %v2664_v61 = vadd.f32 %v2656_v24, %v2558_v6  ;;  %v2769_v3 = vadd.f32 %v2761_v53, %v2663_v36  ;;  %v2973_v0 = vmul.f32 %v11607_v22, %v2948_v21  ;;  %v6308_v7 = vcombine.high %v12970_v5, %v12970_v5 }
 0x1d6   :  { %v2974_v29 = vmul.f32 %v11607_v22, %v2952_v11  ;;  %v6224_v48 = vrot.slane %v6210_v34, %v9230_v14  ;;  %v6414_v27 = vcombine.high %v12971_v56, %v12971_v56  ;;  %v6520_v31 = vcombine.high %v12972_v37, %v12972_v37 }
 0x1d7   :  { %v2770_v19 = vadd.f32 %v2762_v46, %v2664_v61  ;;  %v2875_v25 = vadd.f32 %v2867_v49, %v2769_v3  ;;  %v6626_v54 = vcombine.high %v12973_v44, %v12973_v44  ;;  %v6322_v35 = vrot.slane %v6308_v7, %v9230_v14 }
 0x1d8   :  { %v6226_v28 = vcombine.high %v6224_v48, %v6224_v48  ;;  %v11621_v6 = vrot.slane %v6224_v48, %v9230_v14  ;;  %v6428_v40 = vrot.slane %v6414_v27, %v9230_v14  ;;  %v6534_v13 = vrot.slane %v6520_v31, %v9230_v14 }
 0x1d9   :  { %v2876_v23 = vadd.f32 %v2868_v63, %v2770_v19  ;;  %v2981_v26 = vadd.f32 %v2973_v0, %v2875_v25  ;;  %v6640_v55 = vrot.slane %v6626_v54, %v9230_v14  ;;  %v6324_v9 = vcombine.high %v6322_v35, %v6322_v35 }
 0x1da   :  { %v11628_v8 = vrot.slane %v6226_v28, %v9230_v14  ;;  %v6278_v53 = vrot.slane %v11621_v6, %v9232_v15  ;;  %v11633_v24 = vrot.slane %v6322_v35, %v9230_v14  ;;  %v6430_v21 = vcombine.high %v6428_v40, %v6428_v40 }
 0x1db   :  { %v2982_v36 = vadd.f32 %v2974_v29, %v2876_v23  ;;  %v2989_v2 = vmul.f32 %v2981_v26, %v2981_v26  ;;  %v11636_v46 = vrot.slane %v6428_v40, %v9230_v14  ;;  %v11642_v51 = vrot.slane %v6324_v9, %v9230_v14 }
 0x1dc   :  { %v6282_v49 = vrot.slane %v11628_v8, %v9232_v15  ;;  %v6303_v11 = vmul.f32 %v11415_v10, %v6278_v53  ;;  %v6376_v34 = vrot.slane %v11633_v24, %v9232_v15  ;;  %v11648_v0 = vrot.slane %v6430_v21, %v9230_v14  ;;  %v12974_v53 = vld [vmem:[#allocation16_spill] sm:$0xff] }
 0x1dd   :  { %v2990_v61 = vmul.f32 %v2982_v36, %v2982_v36  ;;  %v2996_v3 = vadd.f32 %v11446_v50, %v2989_v2  ;;  %v8869_v63 = vpack.c.bf16 %v2982_v36, %v2981_v26  ;;  %v6380_v48 = vrot.slane %v11642_v51, %v9232_v15 }
 0x1de   :  { %v6304_v29 = vmul.f32 %v11415_v10, %v6282_v49  ;;  %v6401_v5 = vmul.f32 %v11423_v62, %v6376_v34  ;;  %v6482_v7 = vrot.slane %v11636_v46, %v9232_v15  ;;  %v6486_v50 = vrot.slane %v11648_v0, %v9232_v15  ;;  %v12975_v49 = vld [vmem:[#allocation25_spill] sm:$0xff] }
 0x1df   :  { %v11656_v56 = vadd.f32 %v2996_v3, %v2990_v61  ;;  %8870 = vmatprep.subr.bf16.mxu1 %v8869_v63  ;;  %v6536_v27 = vcombine.high %v6534_v13, %v6534_v13  ;;  %v11661_v19 = vrot.slane %v6534_v13, %v9230_v14  ;;  %v6402_v25 = vmul.f32 %v11423_v62, %v6380_v48  ;;  %v12976_v3 = vld [vmem:[#allocation26_spill] sm:$0xff] }
 0x1e0   :  { %v6409_v37 = vadd.f32 %v6401_v5, %v6303_v11  ;;  %v6507_v31 = vmul.f32 %v11431_v18, %v6482_v7  ;;  %v6642_v44 = vcombine.high %v6640_v55, %v6640_v55  ;;  %8872 = vmatpush3.bf16.msra.mxu1 %v8869_v63  ;;  %v6508_v54 = vmul.f32 %v11431_v18, %v6486_v50 }
 0x1e1   :  { %v11667_v28 = vrot.slane %v6536_v27, %v9230_v14  ;;  %v6588_v35 = vrot.slane %v11661_v19, %v9232_v15  ;;  %v11672_v40 = vrot.slane %v6640_v55, %v9230_v14  ;;  %v6410_v23 = vadd.f32 %v6402_v25, %v6304_v29 }
 0x1e2   :  { %v6515_v26 = vadd.f32 %v6507_v31, %v6409_v37  ;;  %v11675_v13 = vrot.slane %v6642_v44, %v9230_v14  ;;  %v6732_v9 = vcombine.high %v12974_v53, %v12974_v53  ;;  %v6838_v55 = vcombine.high %v12975_v49, %v12975_v49 }
 0x1e3   :  { %v6592_v36 = vrot.slane %v11667_v28, %v9232_v15  ;;  %v6613_v2 = vmul.f32 %v11544_v20, %v6588_v35  ;;  %v6694_v21 = vrot.slane %v11672_v40, %v9232_v15  ;;  %v6516_v11 = vadd.f32 %v6508_v54, %v6410_v23 }
 0x1e4   :  { %v6698_v34 = vrot.slane %v11675_v13, %v9232_v15  ;;  %v6746_v61 = vrot.slane %v6732_v9, %v9230_v14  ;;  %v6944_v63 = vcombine.high %v12976_v3, %v12976_v3  ;;  %v6852_v7 = vrot.slane %v6838_v55, %v9230_v14 }
 0x1e5   :  { %v6614_v29 = vmul.f32 %v11544_v20, %v6592_v36  ;;  %v6621_v48 = vadd.f32 %v6613_v2, %v6515_v26  ;;  %v6719_v5 = vmul.f32 %v11574_v45, %v6694_v21  ;;  %v2192_v49 = vcombine.high %v11487_v57, %v11487_v57 }
 0x1e6   :  { %v6720_v50 = vmul.f32 %v11574_v45, %v6698_v34  ;;  %v6748_v27 = vcombine.high %v6746_v61, %v6746_v61  ;;  %v11696_v25 = vrot.slane %v6746_v61, %v9230_v14  ;;  %v6958_v37 = vrot.slane %v6944_v63, %v9230_v14 }
 0x1e7   :  { %v6622_v31 = vadd.f32 %v6614_v29, %v6516_v11  ;;  %v6727_v44 = vadd.f32 %v6719_v5, %v6621_v48  ;;  %v6854_v54 = vcombine.high %v6852_v7, %v6852_v7  ;;  %v11700_v35 = vrot.slane %v6852_v7, %v9230_v14 }
 0x1e8   :  { %v11703_v23 = vrot.slane %v6748_v27, %v9230_v14  ;;  %v6800_v26 = vrot.slane %v11696_v25, %v9232_v15  ;;  %v6960_v53 = vcombine.high %v6958_v37, %v6958_v37  ;;  %v11708_v9 = vrot.slane %v6958_v37, %v9230_v14 }
 0x1e9   :  { %v6728_v36 = vadd.f32 %v6720_v50, %v6622_v31  ;;  %v11711_v2 = vrot.slane %v6854_v54, %v9230_v14  ;;  %v6906_v21 = vrot.slane %v11700_v35, %v9232_v15  ;;  %v2194_v29 = vcombine.high %v11495_v39, %v11495_v39 }
 0x1ea   :  { %v6804_v55 = vrot.slane %v11703_v23, %v9232_v15  ;;  %v6825_v11 = vmul.f32 %v11585_v38, %v6800_v26  ;;  %v11721_v34 = vrot.slane %v6960_v53, %v9230_v14  ;;  %v7012_v61 = vrot.slane %v11708_v9, %v9232_v15 }
 0x1eb   :  { %v6910_v3 = vrot.slane %v11711_v2, %v9232_v15  ;;  %v6931_v63 = vmul.f32 %v11599_v12, %v6906_v21  ;;  %v2222_v57 = vrot.slane %v2192_v49, %v9232_v15  ;;  %v2226_v37 = vrot.slane %v2194_v29, %v9232_v15 }
 0x1ec   :  { %v6826_v48 = vmul.f32 %v11585_v38, %v6804_v55  ;;  %v6833_v5 = vadd.f32 %v6825_v11, %v6727_v44  ;;  %v7016_v7 = vrot.slane %v11721_v34, %v9232_v15  ;;  %v7037_v50 = vmul.f32 %v11607_v22, %v7012_v61 }
 0x1ed   :  { %v6932_v27 = vmul.f32 %v11599_v12, %v6910_v3  ;;  %v2241_v31 = vmul.f32 %v11415_v10, %v2222_v57  ;;  %v2290_v54 = vcombine.high %v11490_v47, %v11490_v47  ;;  %v2292_v44 = vcombine.high %v11500_v30, %v11500_v30 }
 0x1ee   :  { %v6834_v39 = vadd.f32 %v6826_v48, %v6728_v36  ;;  %v6939_v26 = vadd.f32 %v6931_v63, %v6833_v5  ;;  %v7038_v53 = vmul.f32 %v11607_v22, %v7016_v7  ;;  %v2242_v21 = vmul.f32 %v11415_v10, %v2226_v37 }
 0x1ef   :  { %v2320_v49 = vrot.slane %v2290_v54, %v9232_v15  ;;  %v2396_v55 = vcombine.high %v11505_v41, %v11505_v41  ;;  %v2398_v11 = vcombine.high %v11514_v16, %v11514_v16  ;;  %v2324_v47 = vrot.slane %v2292_v44, %v9232_v15 }
 0x1f0   :  { %v6940_v61 = vadd.f32 %v6932_v27, %v6834_v39  ;;  %v7045_v3 = vadd.f32 %v7037_v50, %v6939_v26  ;;  %v2502_v36 = vcombine.high %v11524_v43, %v11524_v43  ;;  %v2504_v57 = vcombine.high %v11530_v1, %v11530_v1 }
 0x1f1   :  { %v2339_v63 = vmul.f32 %v11423_v62, %v2320_v49  ;;  %v2426_v30 = vrot.slane %v2396_v55, %v9232_v15  ;;  %v2430_v29 = vrot.slane %v2398_v11, %v9232_v15  ;;  %v2340_v16 = vmul.f32 %v11423_v62, %v2324_v47 }
 0x1f2   :  { %v7046_v41 = vadd.f32 %v7038_v53, %v6940_v61  ;;  %v7053_v48 = vmul.f32 %v7045_v3, %v7045_v3  ;;  %v2532_v5 = vrot.slane %v2502_v36, %v9232_v15  ;;  %v2536_v27 = vrot.slane %v2504_v57, %v9232_v15 }
 0x1f3   :  { %v2347_v7 = vadd.f32 %v2339_v63, %v2241_v31  ;;  %v2445_v50 = vmul.f32 %v11431_v18, %v2426_v30  ;;  %v2446_v43 = vmul.f32 %v11431_v18, %v2430_v29  ;;  %v2348_v26 = vadd.f32 %v2340_v16, %v2242_v21 }
 0x1f4   :  { %v7054_v37 = vmul.f32 %v7046_v41, %v7046_v41  ;;  %v7060_v54 = vadd.f32 %v11526_v58, %v7053_v48  ;;  %v8933_v39 = vpack.c.bf16 %v7046_v41, %v7045_v3  ;;  %v2551_v1 = vmul.f32 %v11544_v20, %v2532_v5 }
 0x1f5   :  { %v2453_v44 = vadd.f32 %v2445_v50, %v2347_v7  ;;  %v2552_v53 = vmul.f32 %v11544_v20, %v2536_v27  ;;  %v2608_v49 = vcombine.high %v11552_v59, %v11552_v59  ;;  %v2454_v55 = vadd.f32 %v2446_v43, %v2348_v26 }
 0x1f6   :  { %v11767_v31 = vadd.f32 %v7060_v54, %v7054_v37  ;;  %8934 = vmatprep.subr.bf16.mxu0 %v8933_v39  ;;  %v2610_v11 = vcombine.high %v11560_v4, %v11560_v4  ;;  %v2714_v58 = vcombine.high %v11556_v32, %v11556_v32  ;;  %v2716_v3 = vcombine.high %v11565_v17, %v11565_v17 }
 0x1f7   :  { %8936 = vmatpush3.bf16.msra.mxu0 %v8933_v39  ;;  %v2559_v21 = vadd.f32 %v2551_v1, %v2453_v44  ;;  %v2638_v61 = vrot.slane %v2608_v49, %v9232_v15  ;;  %v2820_v59 = vcombine.high %v11570_v52, %v11570_v52  ;;  %v2560_v47 = vadd.f32 %v2552_v53, %v2454_v55 }
 0x1f8   :  { %v2642_v36 = vrot.slane %v2610_v11, %v9232_v15  ;;  %v2744_v63 = vrot.slane %v2714_v58, %v9232_v15  ;;  %v2822_v4 = vcombine.high %v11578_v60, %v11578_v60  ;;  %v2748_v30 = vrot.slane %v2716_v3, %v9232_v15 }
 0x1f9   :  { %v2657_v32 = vmul.f32 %v11574_v45, %v2638_v61  ;;  %v2850_v29 = vrot.slane %v2820_v59, %v9232_v15  ;;  %v2926_v17 = vcombine.high %v11581_v33, %v11581_v33  ;;  %v2928_v48 = vcombine.high %v11591_v42, %v11591_v42 }
 0x1fa   :  { %v2658_v57 = vmul.f32 %v11574_v45, %v2642_v36  ;;  %v2763_v52 = vmul.f32 %v11585_v38, %v2744_v63  ;;  %v2854_v41 = vrot.slane %v2822_v4, %v9232_v15  ;;  %v2764_v60 = vmul.f32 %v11585_v38, %v2748_v30 }
 0x1fb   :  { %v2665_v16 = vadd.f32 %v2657_v32, %v2559_v21  ;;  %v2869_v5 = vmul.f32 %v11599_v12, %v2850_v29  ;;  %v2956_v7 = vrot.slane %v2926_v17, %v9232_v15  ;;  %v2960_v33 = vrot.slane %v2928_v48, %v9232_v15 }
 0x1fc   :  { %v2666_v50 = vadd.f32 %v2658_v57, %v2560_v47  ;;  %v2870_v43 = vmul.f32 %v11599_v12, %v2854_v41  ;;  %v6256_v27 = vcombine.high %v11621_v6, %v11621_v6  ;;  %v6258_v42 = vcombine.high %v11628_v8, %v11628_v8 }
 0x1fd   :  { %v2771_v37 = vadd.f32 %v2763_v52, %v2665_v16  ;;  %v2975_v54 = vmul.f32 %v11607_v22, %v2956_v7  ;;  %v6354_v39 = vcombine.high %v11633_v24, %v11633_v24  ;;  %v2976_v44 = vmul.f32 %v11607_v22, %v2960_v33 }
 0x1fe   :  { %v2772_v26 = vadd.f32 %v2764_v60, %v2666_v50  ;;  %v6286_v1 = vrot.slane %v6256_v27, %v9232_v15  ;;  %v6356_v53 = vcombine.high %v11642_v51, %v11642_v51  ;;  %v6290_v6 = vrot.slane %v6258_v42, %v9232_v15  ;;  %v3009_v27 = vld [vmem:[#allocation6 + $0x48] sm:$0xff] }
 0x1ff   :  { %v2877_v49 = vadd.f32 %v2869_v5, %v2771_v37  ;;  %v6384_v55 = vrot.slane %v6354_v39, %v9232_v15  ;;  %v6460_v11 = vcombine.high %v11636_v46, %v11636_v46  ;;  %v6462_v21 = vcombine.high %v11648_v0, %v11648_v0 }
 0x200   :  { %v2878_v8 = vadd.f32 %v2870_v43, %v2772_v26  ;;  %v6305_v58 = vmul.f32 %v11415_v10, %v6286_v1  ;;  %v6388_v24 = vrot.slane %v6356_v53, %v9232_v15  ;;  %v6306_v3 = vmul.f32 %v11415_v10, %v6290_v6 }
 0x201   :  { %v2983_v61 = vadd.f32 %v2975_v54, %v2877_v49  ;;  %v6403_v51 = vmul.f32 %v11423_v62, %v6384_v55  ;;  %v6490_v59 = vrot.slane %v6460_v11, %v9232_v15  ;;  %v6494_v46 = vrot.slane %v6462_v21, %v9232_v15  ;;  %v8469_v49 = vld [vmem:[#allocation3 + $0x3] ss:$0 sm:$0xff] }
 0x202   :  { %v2984_v47 = vadd.f32 %v2976_v44, %v2878_v8  ;;  %v6404_v36 = vmul.f32 %v11423_v62, %v6388_v24  ;;  %v6566_v63 = vcombine.high %v11661_v19, %v11661_v19  ;;  %v6568_v0 = vcombine.high %v11667_v28, %v11667_v28 }
 0x203   :  { %v2991_v4 = vmul.f32 %v2983_v61, %v2983_v61  ;;  %v6411_v32 = vadd.f32 %v6403_v51, %v6305_v58  ;;  %v6509_v30 = vmul.f32 %v11431_v18, %v6490_v59  ;;  %v6510_v52 = vmul.f32 %v11431_v18, %v6494_v46 }
 0x204   :  { %v2992_v29 = vmul.f32 %v2984_v47, %v2984_v47  ;;  %v8873_v17 = vpack.c.bf16 %v2984_v47, %v2983_v61  ;;  %v6412_v57 = vadd.f32 %v6404_v36, %v6306_v3  ;;  %v6596_v16 = vrot.slane %v6566_v63, %v9232_v15  ;;  %v8470_v61 = vld [vmem:[#allocation3 + $0x1b] ss:$0 sm:$0xff]  ;;  %v8472_v47 = vld [vmem:[#allocation3 + $0x4b] ss:$0 sm:$0xff] }
 0x205   :  { %v2998_v41 = vadd.f32 %v11656_v56, %v2991_v4  ;;  %v6517_v48 = vadd.f32 %v6509_v30, %v6411_v32  ;;  %v6600_v60 = vrot.slane %v6568_v0, %v9232_v15  ;;  %v6672_v5 = vcombine.high %v11672_v40, %v11672_v40  ;;  %v11861_v36 = vld [vmem:[#allocation3 + $0x8] sm:$0xff]  ;;  %v8474_v30 = vld [vmem:[#allocation3 + $0x7b] ss:$0 sm:$0xff]  ;;  %v8475_v0 = vld [vmem:[#allocation3 + $0x93] ss:$0 sm:$0xff] }
 0x206   :  { %8874 = vmatprep.subr.bf16.mxu1 %v8873_v17  ;;  %v6518_v19 = vadd.f32 %v6510_v52, %v6412_v57  ;;  %v6674_v28 = vcombine.high %v11675_v13, %v11675_v13  ;;  %v6778_v7 = vcombine.high %v11696_v25, %v11696_v25  ;;  %v6615_v43 = vmul.f32 %v11544_v20, %v6596_v16  ;;  %v8476_v57 = vld [vmem:[#allocation3 + $0xab] ss:$0 sm:$0xff]  ;;  %v11869_v52 = vld [vmem:[#allocation3 + $0x20] sm:$0xff] }
 0x207   :  { %v2999_v50 = vadd.f32 %v2998_v41, %v2992_v29  ;;  %v6616_v56 = vmul.f32 %v11544_v20, %v6600_v60  ;;  %v6780_v33 = vcombine.high %v11703_v23, %v11703_v23  ;;  %8876 = vmatpush3.bf16.msra.mxu1 %v8873_v17  ;;  %v6702_v37 = vrot.slane %v6672_v5, %v9232_v15 }
 0x208   :  { %v6706_v40 = vrot.slane %v6674_v28, %v9232_v15  ;;  %v6808_v54 = vrot.slane %v6778_v7, %v9232_v15  ;;  %v6884_v13 = vcombine.high %v11700_v35, %v11700_v35  ;;  %v6623_v42 = vadd.f32 %v6615_v43, %v6517_v48  ;;  %v11874_v48 = vld [vmem:[#allocation3 + $0x38] sm:$0xff]  ;;  %v11880_v28 = vld [vmem:[#allocation3 + $0x50] sm:$0xff]  ;;  %v11885_v43 = vld [vmem:[#allocation3 + $0x68] sm:$0xff] }
 0x209   :  { %v3000_v25 = vrot.slane %v2999_v50, 4  ;;  %v6624_v39 = vadd.f32 %v6616_v56, %v6518_v19  ;;  %v6812_v26 = vrot.slane %v6780_v33, %v9232_v15  ;;  %v6721_v44 = vmul.f32 %v11574_v45, %v6702_v37  ;;  %v11890_v33 = vld [vmem:[#allocation3 + $0x80] sm:$0xff]  ;;  %v11895_v37 = vld [vmem:[#allocation3 + $0x98] sm:$0xff] }
 0x20a   :  { %v6722_v23 = vmul.f32 %v11574_v45, %v6706_v40  ;;  %v6827_v1 = vmul.f32 %v11585_v38, %v6808_v54  ;;  %v6886_v53 = vcombine.high %v11711_v2, %v11711_v2  ;;  %8700 = vmatmul.mubr.msk.f32.vlgmr.msra.gmra.mrb[0].mxu1 %vm1902_vm0, %v3009_v27  ;;  %v6914_v55 = vrot.slane %v6884_v13, %v9232_v15  ;;  %v8471_v2 = vld [vmem:[#allocation3 + $0x33] ss:$0 sm:$0xff] }
 0x20b   :  { %v3001_v6 = vadd.f32 %v3000_v25, %v2999_v50  ;;  %v6828_v35 = vmul.f32 %v11585_v38, %v6812_v26  ;;  %v6990_v11 = vcombine.high %v11708_v9, %v11708_v9  ;;  %v6729_v8 = vadd.f32 %v6721_v44, %v6623_v42  ;;  %v11900_v25 = vld [vmem:[#allocation3 + $0xb0] sm:$0xff] }
 0x20c   :  { %v6730_v58 = vadd.f32 %v6722_v23, %v6624_v39  ;;  %v6918_v24 = vrot.slane %v6886_v53, %v9232_v15  ;;  %v6992_v21 = vcombine.high %v11721_v34, %v11721_v34  ;;  %v6933_v51 = vmul.f32 %v11599_v12, %v6914_v55  ;;  %v8473_v34 = vld [vmem:[#allocation3 + $0x63] ss:$0 sm:$0xff]  ;;  %v12979_v55 = vld [vmem:[#allocation15_spill] sm:$0xff] }
 0x20d   :  { %v3002_v3 = vrot.slane %v3001_v6, 2  ;;  %v7020_v59 = vrot.slane %v6990_v11, %v9232_v15  ;;  %v11864_v46 = vmul.f32 %v11861_v36, %v8469_v49  ;;  %v6835_v9 = vadd.f32 %v6827_v1, %v6729_v8 }
 0x20e   :  { %v6836_v63 = vadd.f32 %v6828_v35, %v6730_v58  ;;  %v6934_v4 = vmul.f32 %v11599_v12, %v6918_v24  ;;  %v7024_v32 = vrot.slane %v6992_v21, %v9232_v15  ;;  %v11872_v41 = vmul.f32 %v11869_v52, %v8470_v61 }
 0x20f   :  { %v3003_v29 = vadd.f32 %v3002_v3, %v3001_v6  ;;  %v7039_v17 = vmul.f32 %v11607_v22, %v7020_v59  ;;  %v11877_v16 = vmul.f32 %v11874_v48, %v8471_v2  ;;  %v6941_v60 = vadd.f32 %v6933_v51, %v6835_v9 }
 0x210   :  { %v6942_v19 = vadd.f32 %v6934_v4, %v6836_v63  ;;  %v7040_v5 = vmul.f32 %v11607_v22, %v7024_v32  ;;  %v11883_v7 = vmul.f32 %v11880_v28, %v8472_v47  ;;  %v11888_v56 = vmul.f32 %v11885_v43, %v8473_v34 }
 0x211   :  { %v3004_v50 = vrot.slane %v3003_v29, 1  ;;  %v11893_v27 = vmul.f32 %v11890_v33, %v8474_v30  ;;  %v11898_v40 = vmul.f32 %v11895_v37, %v8475_v0  ;;  %v7047_v54 = vadd.f32 %v7039_v17, %v6941_v60  ;;  %v7074_v60 = vld [vmem:[#allocation6 + $0xd0] sm:$0xff] }
 0x212   :  { %v7048_v13 = vadd.f32 %v7040_v5, %v6942_v19  ;;  %v11903_v42 = vmul.f32 %v11900_v25, %v8476_v57  ;;  %v3169_v39 = vrot.slane %v11864_v46, %v9230_v14  ;;  %v3267_v44 = vrot.slane %v11872_v41, %v9230_v14  ;;  %v3010_v57 = vld [vmem:[#allocation6 + $0x50] sm:$0xff]  ;;  %v3011_v19 = vld [vmem:[#allocation6 + $0x58] sm:$0xff] }
 0x213   :  { %12977 = vst [vmem:[#allocation12_spill] sm:$0xff] %v11898_v40  ;;  %v3005_v26 = vadd.f32 %v3004_v50, %v3003_v29  ;;  %v3373_v23 = vrot.slane %v11877_v16, %v9230_v14  ;;  %v3479_v1 = vrot.slane %v11883_v7, %v9230_v14  ;;  %v7055_v53 = vmul.f32 %v7047_v54, %v7047_v54 }
 0x214   :  { %12978 = vst [vmem:[#allocation13_spill] sm:$0xff] %v11903_v42  ;;  %v7056_v49 = vmul.f32 %v7048_v13, %v7048_v13  ;;  %v8937_v6 = vpack.c.bf16 %v7048_v13, %v7047_v54  ;;  %v3177_v35 = vcombine.high %v3169_v39, %v3169_v39  ;;  %v11917_v8 = vrot.slane %v3169_v39, %v9230_v14 }
 0x215   :  { %v11914_v11 = vadd.f32 %v3005_v26, %v12979_v55  ;;  %v3275_v58 = vcombine.high %v3267_v44, %v3267_v44  ;;  %v11920_v24 = vrot.slane %v3267_v44, %v9230_v14  ;;  %v7062_v21 = vadd.f32 %v11767_v31, %v7055_v53  ;;  %v7073_v31 = vld [vmem:[#allocation6 + $0xc8] sm:$0xff]  ;;  %8702 = vmatprep.mubr.msk.f32.mxu1 %vm1902_vm0, %v3010_v57 }
 0x216   :  { %8938 = vmatprep.subr.bf16.mxu0 %v8937_v6  ;;  %v11924_v61 = vrot.slane %v3177_v35, %v9230_v14  ;;  %v3381_v2 = vcombine.high %v3373_v23, %v3373_v23  ;;  %v11927_v3 = vrot.slane %v3373_v23, %v9230_v14  ;;  %v3214_v51 = vrot.slane %v11917_v8, %v9232_v15 }
 0x217   :  { %12980 = vst [vmem:[#allocation17_spill] sm:$0xff] %v11914_v11  ;;  %8940 = vmatpush3.bf16.msra.mxu0 %v8937_v6  ;;  %v11932_v59 = vrot.slane %v3275_v58, %v9230_v14  ;;  %v3312_v47 = vrot.slane %v11920_v24, %v9232_v15  ;;  %v3487_v9 = vcombine.high %v3479_v1, %v3479_v1 }
 0x218   :  { %v7063_v63 = vadd.f32 %v7062_v21, %v7056_v49  ;;  %v3218_v4 = vrot.slane %v11924_v61, %v9232_v15  ;;  %v11939_v32 = vrot.slane %v3381_v2, %v9230_v14  ;;  %v3418_v34 = vrot.slane %v11927_v3, %v9232_v15  ;;  %8703 = vmatmul.mubr.msk.f32.gmra.mrb[2].mxu1 %vm1902_vm0, %v3011_v19 }
 0x219   :  { %v3251_v30 = vmul.f32 %v11415_v10, %v3214_v51  ;;  %v3316_v0 = vrot.slane %v11932_v59, %v9232_v15  ;;  %v3349_v29 = vmul.f32 %v11423_v62, %v3312_v47  ;;  %v11948_v17 = vrot.slane %v3479_v1, %v9230_v14 }
 0x21a   :  { %v7064_v5 = vrot.slane %v7063_v63, 4  ;;  %v3252_v50 = vmul.f32 %v11415_v10, %v3218_v4  ;;  %v3422_v54 = vrot.slane %v11939_v32, %v9232_v15  ;;  %v3455_v13 = vmul.f32 %v11431_v18, %v3418_v34  ;;  %8788 = vmatmul.mubr.msk.f32.vlgmr.msra.gmra.mrb[0].mxu0 %vm1902_vm0, %v7073_v31 }
 0x21b   :  { %v3350_v39 = vmul.f32 %v11423_v62, %v3316_v0  ;;  %v3357_v26 = vadd.f32 %v3349_v29, %v3251_v30  ;;  %v11958_v44 = vrot.slane %v3487_v9, %v9230_v14  ;;  %v3524_v23 = vrot.slane %v11948_v17, %v9232_v15  ;;  %8790 = vmatprep.mubr.msk.f32.mxu0 %vm1902_vm0, %v7074_v60  ;;  %v12982_v29 = vld [vmem:[#allocation20_spill] sm:$0xff] }
 0x21c   :  { %v7065_v10 = vadd.f32 %v7064_v5, %v7063_v63  ;;  %v3456_v1 = vmul.f32 %v11431_v18, %v3422_v54  ;;  %v3585_v53 = vrot.slane %v11888_v56, %v9230_v14  ;;  %v3691_v49 = vrot.slane %v11893_v27, %v9230_v14 }
 0x21d   :  { %v3358_v62 = vadd.f32 %v3350_v39, %v3252_v50  ;;  %v3463_v6 = vadd.f32 %v3455_v13, %v3357_v26  ;;  %v3528_v35 = vrot.slane %v11958_v44, %v9232_v15  ;;  %v3561_v55 = vmul.f32 %v11544_v20, %v3524_v23 }
 0x21e   :  { %v3593_v2 = vcombine.high %v3585_v53, %v3585_v53  ;;  %v11974_v18 = vrot.slane %v3585_v53, %v9230_v14  ;;  %v3699_v51 = vcombine.high %v3691_v49, %v3691_v49  ;;  %v7066_v47 = vrot.slane %v7065_v10, 2 }
 0x21f   :  { %v3464_v9 = vadd.f32 %v3456_v1, %v3358_v62  ;;  %v3562_v31 = vmul.f32 %v11544_v20, %v3528_v35  ;;  %v11978_v63 = vrot.slane %v3691_v49, %v9230_v14  ;;  %v3569_v4 = vadd.f32 %v3561_v55, %v3463_v6  ;;  %v8517_v62 = vld [vmem:[#allocation3 + $0x7] ss:$0 sm:$0xff]  ;;  %v8518_v6 = vld [vmem:[#allocation3 + $0x1f] ss:$0 sm:$0xff] }
 0x220   :  { %v11981_v34 = vrot.slane %v3593_v2, %v9230_v14  ;;  %v3630_v30 = vrot.slane %v11974_v18, %v9232_v15  ;;  %v11986_v0 = vrot.slane %v3699_v51, %v9230_v14  ;;  %v12983_v57 = vrot.slane %v12982_v29, 2 }
 0x221   :  { %v3736_v19 = vrot.slane %v11978_v63, %v9232_v15  ;;  %v3797_v5 = vrot.slane %v11898_v40, %v9230_v14  ;;  %v3903_v50 = vrot.slane %v11903_v42, %v9230_v14  ;;  %v3570_v54 = vadd.f32 %v3562_v31, %v3464_v9  ;;  %v8088_v42 = vld [vmem:[#allocation6 + $0xe0] sm:$0xff] }
 0x222   :  { %v11991_v60 = vadd.f32 %v12983_v57, %v12982_v29  ;;  %v3634_v13 = vrot.slane %v11981_v34, %v9232_v15  ;;  %v3667_v39 = vmul.f32 %v11574_v45, %v3630_v30  ;;  %v3740_v26 = vrot.slane %v11986_v0, %v9232_v15  ;;  %v8519_v57 = vld [vmem:[#allocation3 + $0x37] ss:$0 sm:$0xff] }
 0x223   :  { %v3773_v23 = vmul.f32 %v11585_v38, %v3736_v19  ;;  %v3805_v1 = vcombine.high %v3797_v5, %v3797_v5  ;;  %v12006_v53 = vrot.slane %v3797_v5, %v9230_v14  ;;  %v3911_v49 = vcombine.high %v3903_v50, %v3903_v50 }
 0x224   :  { %12984 = vst [vmem:[#allocation18_spill] sm:$0xff] %v11991_v60  ;;  %v12008_v35 = vadd.f32 %v7066_v47, %v7065_v10  ;;  %v3668_v55 = vmul.f32 %v11574_v45, %v3634_v13  ;;  %v3675_v2 = vadd.f32 %v3667_v39, %v3569_v4  ;;  %v3774_v51 = vmul.f32 %v11585_v38, %v3740_v26  ;;  %v8520_v10 = vld [vmem:[#allocation3 + $0x4f] ss:$0 sm:$0xff]  ;;  %v8521_v47 = vld [vmem:[#allocation3 + $0x67] ss:$0 sm:$0xff]  ;;  %v7075_v39 = vld [vmem:[#allocation6 + $0xd8] sm:$0xff] }
 0x225   :  { %v12013_v9 = vrot.slane %v3805_v1, %v9230_v14  ;;  %v3842_v31 = vrot.slane %v12006_v53, %v9232_v15  ;;  %v12018_v30 = vrot.slane %v3903_v50, %v9230_v14  ;;  %v12021_v29 = vrot.slane %v3911_v49, %v9230_v14  ;;  %8791 = vmatmul.mubr.msk.f32.gmra.mrb[2].mxu0 %vm1902_vm0, %v7075_v39 }
 0x226   :  { %12985 = vst [vmem:[#allocation21_spill] sm:$0xff] %v12008_v35  ;;  %v3676_v19 = vadd.f32 %v3668_v55, %v3570_v54  ;;  %v3781_v5 = vadd.f32 %v3773_v23, %v3675_v2  ;;  %v12024_v4 = vmul.f32 %v11861_v36, %v8517_v62  ;;  %v12027_v13 = vmul.f32 %v11869_v52, %v8518_v6  ;;  %v8522_v54 = vld [vmem:[#allocation3 + $0x7f] ss:$0 sm:$0xff]  ;;  %v8523_v23 = vld [vmem:[#allocation3 + $0x97] ss:$0 sm:$0xff] }
 0x227   :  { %v3846_v26 = vrot.slane %v12013_v9, %v9232_v15  ;;  %v3879_v50 = vmul.f32 %v11599_v12, %v3842_v31  ;;  %v3948_v1 = vrot.slane %v12018_v30, %v9232_v15  ;;  %v3952_v49 = vrot.slane %v12021_v29, %v9232_v15  ;;  %v8524_v55 = vld [vmem:[#allocation3 + $0xaf] ss:$0 sm:$0xff]  ;;  %8809 = vmatprep.mubr.msk.f32.mxu0 %vm1902_vm0, %v8088_v42 }
 0x228   :  { %12986 = vst [vmem:[#allocation22_spill] sm:$0xff] %v12024_v4  ;;  %12987 = vst [vmem:[#allocation23_spill] sm:$0xff] %v12027_v13  ;;  %v3782_v36 = vadd.f32 %v3774_v51, %v3676_v19  ;;  %v12038_v52 = vmul.f32 %v11874_v48, %v8519_v57  ;;  %v12041_v62 = vmul.f32 %v11880_v28, %v8520_v10 }
 0x229   :  { %v12044_v6 = vmul.f32 %v11885_v43, %v8521_v47  ;;  %v3880_v2 = vmul.f32 %v11599_v12, %v3846_v26  ;;  %v3887_v31 = vadd.f32 %v3879_v50, %v3781_v5  ;;  %v3985_v21 = vmul.f32 %v11607_v22, %v3948_v1 }
 0x22a   :  { %12988 = vst [vmem:[#allocation24_spill] sm:$0xff] %v12038_v52  ;;  %12989 = vst [vmem:[#allocation14_spill] sm:$0xff] %v12041_v62  ;;  %v3986_v11 = vmul.f32 %v11607_v22, %v3952_v49  ;;  %v12050_v35 = vmul.f32 %v11890_v33, %v8522_v54  ;;  %v12053_v51 = vmul.f32 %v11895_v37, %v8523_v23 }
 0x22b   :  { %12990 = vst [vmem:[#allocation16_spill] sm:$0xff] %v12044_v6  ;;  %v12056_v48 = vmul.f32 %v11900_v25, %v8524_v55  ;;  %v7233_v28 = vrot.slane %v12024_v4, %v9230_v14  ;;  %v3888_v43 = vadd.f32 %v3880_v2, %v3782_v36  ;;  %v3993_v57 = vadd.f32 %v3985_v21, %v3887_v31  ;;  %v12089_v31 = vld [vmem:[#allocation3 + $0x10] sm:$0xff] }
 0x22c   :  { %12991 = vst [vmem:[#allocation25_spill] sm:$0xff] %v12050_v35  ;;  %v7331_v10 = vrot.slane %v12027_v13, %v9230_v14  ;;  %v7437_v47 = vrot.slane %v12038_v52, %v9230_v14  ;;  %v7543_v37 = vrot.slane %v12041_v62, %v9230_v14  ;;  %v7649_v25 = vrot.slane %v12044_v6, %v9230_v14 }
 0x22d   :  { %v7241_v19 = vcombine.high %v7233_v28, %v7233_v28  ;;  %v12065_v33 = vrot.slane %v7233_v28, %v9230_v14  ;;  %v3994_v5 = vadd.f32 %v3986_v11, %v3888_v43  ;;  %v4001_v39 = vmul.f32 %v3993_v57, %v3993_v57 }
 0x22e   :  { %v7339_v26 = vcombine.high %v7331_v10, %v7331_v10  ;;  %v12072_v21 = vrot.slane %v7331_v10, %v9230_v14  ;;  %v7445_v49 = vcombine.high %v7437_v47, %v7437_v47  ;;  %v12080_v54 = vrot.slane %v7437_v47, %v9230_v14 }
 0x22f   :  { %v12075_v50 = vrot.slane %v7241_v19, %v9230_v14  ;;  %v7278_v1 = vrot.slane %v12065_v33, %v9232_v15  ;;  %v4002_v23 = vmul.f32 %v3994_v5, %v3994_v5  ;;  %v8877_v55 = vpack.c.bf16 %v3994_v5, %v3993_v57  ;;  %v12101_v19 = vld [vmem:[#allocation3 + $0x28] sm:$0xff] }
 0x230   :  { %v12083_v36 = vrot.slane %v7339_v26, %v9230_v14  ;;  %v7376_v11 = vrot.slane %v12072_v21, %v9232_v15  ;;  %v12093_v43 = vrot.slane %v7445_v49, %v9230_v14  ;;  %v7482_v10 = vrot.slane %v12080_v54, %v9232_v15  ;;  %v12107_v49 = vld [vmem:[#allocation3 + $0x40] sm:$0xff] }
 0x231   :  { %v7282_v2 = vrot.slane %v12075_v50, %v9232_v15  ;;  %v7315_v28 = vmul.f32 %v12089_v31, %v7278_v1  ;;  %v12097_v57 = vadd.f32 %v4002_v23, %v4001_v39  ;;  %8878 = vmatprep.subr.bf16.mxu1 %v8877_v55  ;;  %v7551_v26 = vcombine.high %v7543_v37, %v7543_v37 }
 0x232   :  { %v7380_v47 = vrot.slane %v12083_v36, %v9232_v15  ;;  %v7413_v5 = vmul.f32 %v12101_v19, %v7376_v11  ;;  %v7486_v1 = vrot.slane %v12093_v43, %v9232_v15  ;;  %v7519_v60 = vmul.f32 %v12107_v49, %v7482_v10  ;;  %8880 = vmatpush3.bf16.msra.mxu1 %v8877_v55 }
 0x233   :  { %v7316_v58 = vmul.f32 %v12089_v31, %v7282_v2  ;;  %v12111_v39 = vrot.slane %v7543_v37, %v9230_v14  ;;  %v12115_v62 = vrot.slane %v7551_v26, %v9230_v14  ;;  %v7657_v11 = vcombine.high %v7649_v25, %v7649_v25 }
 0x234   :  { %v7414_v23 = vmul.f32 %v12101_v19, %v7380_v47  ;;  %v7421_v6 = vadd.f32 %v7413_v5, %v7315_v28  ;;  %v7520_v2 = vmul.f32 %v12107_v49, %v7486_v1  ;;  %v12121_v13 = vrot.slane %v7649_v25, %v9230_v14 }
 0x235   :  { %v7588_v52 = vrot.slane %v12111_v39, %v9232_v15  ;;  %v7755_v37 = vrot.slane %v12050_v35, %v9230_v14  ;;  %v7592_v28 = vrot.slane %v12115_v62, %v9232_v15  ;;  %v12128_v47 = vrot.slane %v7657_v11, %v9230_v14 }
 0x236   :  { %v7422_v10 = vadd.f32 %v7414_v23, %v7316_v58  ;;  %v7527_v55 = vadd.f32 %v7519_v60, %v7421_v6  ;;  %v7694_v26 = vrot.slane %v12121_v13, %v9232_v15  ;;  %v7861_v60 = vrot.slane %v12053_v51, %v9230_v14 }
 0x237   :  { %v7625_v5 = vmul.f32 %v11544_v20, %v7588_v52  ;;  %v7763_v1 = vcombine.high %v7755_v37, %v7755_v37  ;;  %v12134_v25 = vrot.slane %v7755_v37, %v9230_v14  ;;  %v7626_v35 = vmul.f32 %v11544_v20, %v7592_v28  ;;  %v4024_v28 = vld [vmem:[#allocation6 + $0x60] sm:$0xff] }
 0x238   :  { %v7528_v4 = vadd.f32 %v7520_v2, %v7422_v10  ;;  %v7698_v58 = vrot.slane %v12128_v47, %v9232_v15  ;;  %v7731_v23 = vmul.f32 %v11574_v45, %v7694_v26  ;;  %v7869_v10 = vcombine.high %v7861_v60, %v7861_v60  ;;  %8721 = vmatprep.mubr.msk.f32.mxu1 %vm1902_vm0, %v4024_v28 }
 0x239   :  { %v7633_v6 = vadd.f32 %v7625_v5, %v7527_v55  ;;  %v12143_v52 = vrot.slane %v7763_v1, %v9230_v14  ;;  %v7800_v11 = vrot.slane %v12134_v25, %v9232_v15  ;;  %v12149_v20 = vrot.slane %v7861_v60, %v9230_v14 }
 0x23a   :  { %v7634_v37 = vadd.f32 %v7626_v35, %v7528_v4  ;;  %v7732_v2 = vmul.f32 %v11574_v45, %v7698_v58  ;;  %v7967_v26 = vrot.slane %v12056_v48, %v9230_v14  ;;  %v12158_v45 = vrot.slane %v7869_v10, %v9230_v14 }
 0x23b   :  { %v7739_v40 = vadd.f32 %v7731_v23, %v7633_v6  ;;  %v7804_v55 = vrot.slane %v12143_v52, %v9232_v15  ;;  %v7837_v5 = vmul.f32 %v11585_v38, %v7800_v11  ;;  %v7906_v4 = vrot.slane %v12149_v20, %v9232_v15 }
 0x23c   :  { %v7740_v35 = vadd.f32 %v7732_v2, %v7634_v37  ;;  %v3207_v1 = vcombine.high %v11917_v8, %v11917_v8  ;;  %v7975_v6 = vcombine.high %v7967_v26, %v7967_v26  ;;  %v12167_v23 = vrot.slane %v7967_v26, %v9230_v14 }
 0x23d   :  { %v7838_v58 = vmul.f32 %v11585_v38, %v7804_v55  ;;  %v7845_v60 = vadd.f32 %v7837_v5, %v7739_v40  ;;  %v7910_v11 = vrot.slane %v12158_v45, %v9232_v15  ;;  %v7943_v37 = vmul.f32 %v11599_v12, %v7906_v4 }
 0x23e   :  { %v3209_v2 = vcombine.high %v11924_v61, %v11924_v61  ;;  %v3222_v10 = vrot.slane %v3207_v1, %v9232_v15  ;;  %v12176_v42 = vrot.slane %v7975_v6, %v9230_v14  ;;  %v8012_v38 = vrot.slane %v12167_v23, %v9232_v15 }
 0x23f   :  { %v7846_v8 = vadd.f32 %v7838_v58, %v7740_v35  ;;  %v3305_v40 = vcombine.high %v11920_v24, %v11920_v24  ;;  %v7944_v28 = vmul.f32 %v11599_v12, %v7910_v11  ;;  %v7951_v55 = vadd.f32 %v7943_v37, %v7845_v60 }
 0x240   :  { %v3226_v5 = vrot.slane %v3209_v2, %v9232_v15  ;;  %v3253_v26 = vmul.f32 %v12089_v31, %v3222_v10  ;;  %v8016_v61 = vrot.slane %v12176_v42, %v9232_v15  ;;  %v8049_v35 = vmul.f32 %v11607_v22, %v8012_v38 }
 0x241   :  { %v3307_v4 = vcombine.high %v11932_v59, %v11932_v59  ;;  %v3320_v1 = vrot.slane %v3305_v40, %v9232_v15  ;;  %v7952_v58 = vadd.f32 %v7944_v28, %v7846_v8  ;;  %v3411_v12 = vcombine.high %v11927_v3, %v11927_v3 }
 0x242   :  { %v3254_v24 = vmul.f32 %v12089_v31, %v3226_v5  ;;  %v3413_v60 = vcombine.high %v11939_v32, %v11939_v32  ;;  %v8050_v6 = vmul.f32 %v11607_v22, %v8016_v61  ;;  %v8057_v11 = vadd.f32 %v8049_v35, %v7951_v55 }
 0x243   :  { %v3324_v37 = vrot.slane %v3307_v4, %v9232_v15  ;;  %v3351_v2 = vmul.f32 %v12101_v19, %v3320_v1  ;;  %v3426_v59 = vrot.slane %v3411_v12, %v9232_v15  ;;  %v3517_v8 = vcombine.high %v11948_v17, %v11948_v17 }
 0x244   :  { %v3430_v10 = vrot.slane %v3413_v60, %v9232_v15  ;;  %v3519_v3 = vcombine.high %v11958_v44, %v11958_v44  ;;  %v8058_v38 = vadd.f32 %v8050_v6, %v7952_v58  ;;  %v8065_v40 = vmul.f32 %v8057_v11, %v8057_v11  ;;  %v12212_v58 = vld [vmem:[#allocation3 + $0x58] sm:$0xff] }
 0x245   :  { %v3352_v32 = vmul.f32 %v12101_v19, %v3324_v37  ;;  %v3359_v22 = vadd.f32 %v3351_v2, %v3253_v26  ;;  %v3457_v28 = vmul.f32 %v12107_v49, %v3426_v59  ;;  %v3532_v5 = vrot.slane %v3517_v8, %v9232_v15  ;;  %v12228_v8 = vld [vmem:[#allocation3 + $0x70] sm:$0xff] }
 0x246   :  { %v3458_v55 = vmul.f32 %v12107_v49, %v3430_v10  ;;  %v3536_v61 = vrot.slane %v3519_v3, %v9232_v15  ;;  %v8066_v35 = vmul.f32 %v8058_v38, %v8058_v38  ;;  %v8941_v4 = vpack.c.bf16 %v8058_v38, %v8057_v11 }
 0x247   :  { %v3360_v1 = vadd.f32 %v3352_v32, %v3254_v24  ;;  %v3623_v17 = vcombine.high %v11974_v18, %v11974_v18  ;;  %v3465_v44 = vadd.f32 %v3457_v28, %v3359_v22  ;;  %v3563_v12 = vmul.f32 %v12212_v58, %v3532_v5  ;;  %v12239_v28 = vld [vmem:[#allocation3 + $0x88] sm:$0xff] }
 0x248   :  { %v3564_v26 = vmul.f32 %v12212_v58, %v3536_v61  ;;  %v3625_v60 = vcombine.high %v11981_v34, %v11981_v34  ;;  %v12218_v6 = vadd.f32 %v8066_v35, %v8065_v40  ;;  %8942 = vmatprep.subr.bf16.mxu0 %v8941_v4  ;;  %v3729_v24 = vcombine.high %v11978_v63, %v11978_v63 }
 0x249   :  { %v3466_v37 = vadd.f32 %v3458_v55, %v3360_v1  ;;  %v3638_v11 = vrot.slane %v3623_v17, %v9232_v15  ;;  %8944 = vmatpush3.bf16.msra.mxu0 %v8941_v4  ;;  %v3571_v18 = vadd.f32 %v3563_v12, %v3465_v44  ;;  %v3731_v59 = vcombine.high %v11986_v0, %v11986_v0  ;;  %v12246_v4 = vld [vmem:[#allocation3 + $0xa0] sm:$0xff] }
 0x24a   :  { %v3642_v2 = vrot.slane %v3625_v60, %v9232_v15  ;;  %v3835_v10 = vcombine.high %v12006_v53, %v12006_v53  ;;  %v3744_v38 = vrot.slane %v3729_v24, %v9232_v15  ;;  %v3837_v63 = vcombine.high %v12013_v9, %v12013_v9 }
 0x24b   :  { %v3572_v34 = vadd.f32 %v3564_v26, %v3466_v37  ;;  %v3669_v3 = vmul.f32 %v12228_v8, %v3638_v11  ;;  %v3748_v32 = vrot.slane %v3731_v59, %v9232_v15  ;;  %v3941_v0 = vcombine.high %v12018_v30, %v12018_v30  ;;  %v12254_v37 = vld [vmem:[#allocation3 + $0xb8] sm:$0xff] }
 0x24c   :  { %v3670_v40 = vmul.f32 %v12228_v8, %v3642_v2  ;;  %v3850_v22 = vrot.slane %v3835_v10, %v9232_v15  ;;  %v3775_v55 = vmul.f32 %v12239_v28, %v3744_v38  ;;  %v3854_v5 = vrot.slane %v3837_v63, %v9232_v15 }
 0x24d   :  { %v3677_v53 = vadd.f32 %v3669_v3, %v3571_v18  ;;  %v3943_v61 = vcombine.high %v12021_v29, %v12021_v29  ;;  %v3776_v35 = vmul.f32 %v12239_v28, %v3748_v32  ;;  %v3956_v17 = vrot.slane %v3941_v0, %v9232_v15 }
 0x24e   :  { %v3678_v9 = vadd.f32 %v3670_v40, %v3572_v34  ;;  %v3881_v1 = vmul.f32 %v12246_v4, %v3850_v22  ;;  %v3882_v44 = vmul.f32 %v12246_v4, %v3854_v5  ;;  %v7271_v26 = vcombine.high %v12065_v33, %v12065_v33 }
 0x24f   :  { %v3783_v30 = vadd.f32 %v3775_v55, %v3677_v53  ;;  %v3960_v12 = vrot.slane %v3943_v61, %v9232_v15  ;;  %v3987_v29 = vmul.f32 %v12254_v37, %v3956_v17  ;;  %v7273_v11 = vcombine.high %v12075_v50, %v12075_v50 }
 0x250   :  { %v3784_v60 = vadd.f32 %v3776_v35, %v3678_v9  ;;  %v7369_v24 = vcombine.high %v12072_v21, %v12072_v21  ;;  %v7286_v59 = vrot.slane %v7271_v26, %v9232_v15  ;;  %v7371_v10 = vcombine.high %v12083_v36, %v12083_v36 }
 0x251   :  { %v3889_v18 = vadd.f32 %v3881_v1, %v3783_v30  ;;  %v3988_v2 = vmul.f32 %v12254_v37, %v3960_v12  ;;  %v7290_v34 = vrot.slane %v7273_v11, %v9232_v15  ;;  %v7475_v38 = vcombine.high %v12080_v54, %v12080_v54 }
 0x252   :  { %v3890_v33 = vadd.f32 %v3882_v44, %v3784_v60  ;;  %v7384_v3 = vrot.slane %v7369_v24, %v9232_v15  ;;  %v7317_v63 = vmul.f32 %v12089_v31, %v7286_v59  ;;  %v7388_v21 = vrot.slane %v7371_v10, %v9232_v15 }
 0x253   :  { %v3995_v50 = vadd.f32 %v3987_v29, %v3889_v18  ;;  %v7477_v40 = vcombine.high %v12093_v43, %v12093_v43  ;;  %v7318_v22 = vmul.f32 %v12089_v31, %v7290_v34  ;;  %v7490_v0 = vrot.slane %v7475_v38, %v9232_v15 }
 0x254   :  { %v3996_v32 = vadd.f32 %v3988_v2, %v3890_v33  ;;  %v7415_v36 = vmul.f32 %v12101_v19, %v7384_v3  ;;  %v7416_v55 = vmul.f32 %v12101_v19, %v7388_v21  ;;  %v7581_v5 = vcombine.high %v12111_v39, %v12111_v39 }
 0x255   :  { %v4003_v53 = vmul.f32 %v3995_v50, %v3995_v50  ;;  %v7494_v54 = vrot.slane %v7477_v40, %v9232_v15  ;;  %v7521_v43 = vmul.f32 %v12107_v49, %v7490_v0  ;;  %v7583_v44 = vcombine.high %v12115_v62, %v12115_v62 }
 0x256   :  { %v4004_v61 = vmul.f32 %v3996_v32, %v3996_v32  ;;  %v8881_v9 = vpack.c.bf16 %v3996_v32, %v3995_v50  ;;  %v7423_v35 = vadd.f32 %v7415_v36, %v7317_v63  ;;  %v7424_v17 = vadd.f32 %v7416_v55, %v7318_v22 }
 0x257   :  { %v4010_v1 = vadd.f32 %v12097_v57, %v4003_v53  ;;  %v7522_v30 = vmul.f32 %v12107_v49, %v7494_v54  ;;  %v7596_v26 = vrot.slane %v7581_v5, %v9232_v15  ;;  %v7687_v39 = vcombine.high %v12121_v13, %v12121_v13 }
 0x258   :  { %8882 = vmatprep.subr.bf16.mxu1 %v8881_v9  ;;  %v7529_v12 = vadd.f32 %v7521_v43, %v7423_v35  ;;  %v7689_v60 = vcombine.high %v12128_v47, %v12128_v47  ;;  %v7600_v57 = vrot.slane %v7583_v44, %v9232_v15  ;;  %v7793_v24 = vcombine.high %v12134_v25, %v12134_v25 }
 0x259   :  { %v12290_v29 = vadd.f32 %v4010_v1, %v4004_v61  ;;  %v7530_v11 = vadd.f32 %v7522_v30, %v7424_v17  ;;  %8884 = vmatpush3.bf16.msra.mxu1 %v8881_v9  ;;  %v7627_v62 = vmul.f32 %v12212_v58, %v7596_v26  ;;  %v7702_v18 = vrot.slane %v7687_v39, %v9232_v15 }
 0x25a   :  { %v7706_v2 = vrot.slane %v7689_v60, %v9232_v15  ;;  %v7795_v13 = vcombine.high %v12143_v52, %v12143_v52  ;;  %v7628_v47 = vmul.f32 %v12212_v58, %v7600_v57  ;;  %v7808_v59 = vrot.slane %v7793_v24, %v9232_v15 }
 0x25b   :  { %v7899_v10 = vcombine.high %v12149_v20, %v12149_v20  ;;  %v7901_v25 = vcombine.high %v12158_v45, %v12158_v45  ;;  %v7635_v33 = vadd.f32 %v7627_v62, %v7529_v12  ;;  %v7733_v34 = vmul.f32 %v12228_v8, %v7702_v18 }
 0x25c   :  { %v7734_v3 = vmul.f32 %v12228_v8, %v7706_v2  ;;  %v7812_v38 = vrot.slane %v7795_v13, %v9232_v15  ;;  %v7636_v50 = vadd.f32 %v7628_v47, %v7530_v11  ;;  %v7839_v52 = vmul.f32 %v12239_v28, %v7808_v59 }
 0x25d   :  { %v7914_v63 = vrot.slane %v7899_v10, %v9232_v15  ;;  %v7918_v21 = vrot.slane %v7901_v25, %v9232_v15  ;;  %v7741_v40 = vadd.f32 %v7733_v34, %v7635_v33  ;;  %v8005_v45 = vcombine.high %v12167_v23, %v12167_v23 }
 0x25e   :  { %v7840_v20 = vmul.f32 %v12239_v28, %v7812_v38  ;;  %v8007_v32 = vcombine.high %v12176_v42, %v12176_v42  ;;  %v7742_v22 = vadd.f32 %v7734_v3, %v7636_v50  ;;  %v3162_v53 = vcombine.high %v11864_v46, %v11864_v46 }
 0x25f   :  { %v7945_v36 = vmul.f32 %v12246_v4, %v7914_v63  ;;  %v7946_v0 = vmul.f32 %v12246_v4, %v7918_v21  ;;  %v7847_v55 = vadd.f32 %v7839_v52, %v7741_v40  ;;  %v8020_v54 = vrot.slane %v8005_v45, %v9232_v15 }
 0x260   :  { %v8024_v5 = vrot.slane %v8007_v32, %v9232_v15  ;;  %v3260_v61 = vcombine.high %v11872_v41, %v11872_v41  ;;  %v7848_v23 = vadd.f32 %v7840_v20, %v7742_v22  ;;  %v3176_v9 = vrot.slane %v3162_v53, %v9230_v14 }
 0x261   :  { %v3366_v42 = vcombine.high %v11877_v16, %v11877_v16  ;;  %v3472_v35 = vcombine.high %v11883_v7, %v11883_v7  ;;  %v7953_v43 = vadd.f32 %v7945_v36, %v7847_v55  ;;  %v8051_v46 = vmul.f32 %v12254_v37, %v8020_v54 }
 0x262   :  { %v8052_v1 = vmul.f32 %v12254_v37, %v8024_v5  ;;  %v3274_v17 = vrot.slane %v3260_v61, %v9230_v14  ;;  %v7954_v30 = vadd.f32 %v7946_v0, %v7848_v23  ;;  %v3178_v44 = vcombine.high %v3176_v9, %v3176_v9  ;;  %v12992_v5 = vld [vmem:[#allocation12_spill] sm:$0xff] }
 0x263   :  { %v12334_v41 = vrot.slane %v3176_v9, %v9230_v14  ;;  %v3380_v12 = vrot.slane %v3366_v42, %v9230_v14  ;;  %v8059_v26 = vadd.f32 %v8051_v46, %v7953_v43  ;;  %v3486_v7 = vrot.slane %v3472_v35, %v9230_v14 }
 0x264   :  { %v3276_v39 = vcombine.high %v3274_v17, %v3274_v17  ;;  %v12338_v16 = vrot.slane %v3274_v17, %v9230_v14  ;;  %v8060_v60 = vadd.f32 %v8052_v1, %v7954_v30  ;;  %v12342_v11 = vrot.slane %v3178_v44, %v9230_v14  ;;  %v12993_v1 = vld [vmem:[#allocation13_spill] sm:$0xff] }
 0x265   :  { %v3230_v57 = vrot.slane %v12334_v41, %v9232_v15  ;;  %v3382_v24 = vcombine.high %v3380_v12, %v3380_v12  ;;  %v8067_v62 = vmul.f32 %v8059_v26, %v8059_v26  ;;  %v12352_v13 = vrot.slane %v3380_v12, %v9230_v14 }
 0x266   :  { %v12347_v18 = vrot.slane %v3276_v39, %v9230_v14  ;;  %v3328_v2 = vrot.slane %v12338_v16, %v9232_v15  ;;  %v8068_v47 = vmul.f32 %v8060_v60, %v8060_v60  ;;  %v8945_v59 = vpack.c.bf16 %v8060_v60, %v8059_v26 }
 0x267   :  { %v3234_v10 = vrot.slane %v12342_v11, %v9232_v15  ;;  %v3255_v25 = vmul.f32 %v12089_v31, %v3230_v57  ;;  %v8074_v33 = vadd.f32 %v12218_v6, %v8067_v62  ;;  %v12362_v38 = vrot.slane %v3382_v24, %v9230_v14 }
 0x268   :  { %v3332_v34 = vrot.slane %v12347_v18, %v9232_v15  ;;  %v3353_v3 = vmul.f32 %v12101_v19, %v3328_v2  ;;  %8946 = vmatprep.subr.bf16.mxu0 %v8945_v59  ;;  %v3434_v52 = vrot.slane %v12352_v13, %v9232_v15  ;;  %v3488_v63 = vcombine.high %v3486_v7, %v3486_v7 }
 0x269   :  { %v3256_v50 = vmul.f32 %v12089_v31, %v3234_v10  ;;  %v12368_v21 = vrot.slane %v3486_v7, %v9230_v14  ;;  %v12370_v40 = vadd.f32 %v8074_v33, %v8068_v47  ;;  %8948 = vmatpush3.bf16.msra.mxu0 %v8945_v59  ;;  %v3438_v45 = vrot.slane %v12362_v38, %v9232_v15 }
 0x26a   :  { %v3354_v6 = vmul.f32 %v12101_v19, %v3332_v34  ;;  %v3361_v20 = vadd.f32 %v3353_v3, %v3255_v25  ;;  %v3459_v32 = vmul.f32 %v12107_v49, %v3434_v52  ;;  %v12377_v22 = vrot.slane %v3488_v63, %v9230_v14 }
 0x26b   :  { %v3540_v36 = vrot.slane %v12368_v21, %v9232_v15  ;;  %v3578_v0 = vcombine.high %v11888_v56, %v11888_v56  ;;  %v3460_v55 = vmul.f32 %v12107_v49, %v3438_v45  ;;  %v3684_v54 = vcombine.high %v11893_v27, %v11893_v27 }
 0x26c   :  { %v3362_v53 = vadd.f32 %v3354_v6, %v3256_v50  ;;  %v3790_v61 = vcombine.high %v12992_v5, %v12992_v5  ;;  %v3467_v23 = vadd.f32 %v3459_v32, %v3361_v20  ;;  %v3544_v9 = vrot.slane %v12377_v22, %v9232_v15 }
 0x26d   :  { %v3565_v42 = vmul.f32 %v12212_v58, %v3540_v36  ;;  %v3592_v35 = vrot.slane %v3578_v0, %v9230_v14  ;;  %v3698_v56 = vrot.slane %v3684_v54, %v9230_v14  ;;  %v3896_v17 = vcombine.high %v12993_v1, %v12993_v1  ;;  %v12994_v54 = vld [vmem:[#allocation22_spill] sm:$0xff]  ;;  %v12996_v1 = vld [vmem:[#allocation24_spill] sm:$0xff] }
 0x26e   :  { %v3468_v43 = vadd.f32 %v3460_v55, %v3362_v53  ;;  %v3804_v46 = vrot.slane %v3790_v61, %v9230_v14  ;;  %v3566_v27 = vmul.f32 %v12212_v58, %v3544_v9  ;;  %v7226_v5 = vcombine.high %v12994_v54, %v12994_v54  ;;  %v12995_v61 = vld [vmem:[#allocation23_spill] sm:$0xff] }
 0x26f   :  { %v3573_v30 = vadd.f32 %v3565_v42, %v3467_v23  ;;  %v3594_v44 = vcombine.high %v3592_v35, %v3592_v35  ;;  %v12398_v12 = vrot.slane %v3592_v35, %v9230_v14  ;;  %v3700_v26 = vcombine.high %v3698_v56, %v3698_v56 }
 0x270   :  { %v12401_v39 = vrot.slane %v3698_v56, %v9230_v14  ;;  %v3806_v7 = vcombine.high %v3804_v46, %v3804_v46  ;;  %v12404_v60 = vrot.slane %v3804_v46, %v9230_v14  ;;  %v3574_v57 = vadd.f32 %v3566_v27, %v3468_v43  ;;  %v12997_v27 = vld [vmem:[#allocation14_spill] sm:$0xff] }
 0x271   :  { %v12407_v24 = vrot.slane %v3594_v44, %v9230_v14  ;;  %v3646_v62 = vrot.slane %v12398_v12, %v9232_v15  ;;  %v3910_v2 = vrot.slane %v3896_v17, %v9230_v14  ;;  %v12413_v47 = vrot.slane %v3700_v26, %v9230_v14 }
 0x272   :  { %v3752_v59 = vrot.slane %v12401_v39, %v9232_v15  ;;  %v12418_v10 = vrot.slane %v3806_v7, %v9230_v14  ;;  %v3858_v25 = vrot.slane %v12404_v60, %v9232_v15  ;;  %v7324_v23 = vcombine.high %v12995_v61, %v12995_v61 }
 0x273   :  { %v3650_v33 = vrot.slane %v12407_v24, %v9232_v15  ;;  %v3671_v34 = vmul.f32 %v12228_v8, %v3646_v62  ;;  %v3912_v3 = vcombine.high %v3910_v2, %v3910_v2  ;;  %v12426_v50 = vrot.slane %v3910_v2, %v9230_v14 }
 0x274   :  { %v3756_v52 = vrot.slane %v12413_v47, %v9232_v15  ;;  %v3777_v63 = vmul.f32 %v12239_v28, %v3752_v59  ;;  %v3862_v6 = vrot.slane %v12418_v10, %v9232_v15  ;;  %v3883_v20 = vmul.f32 %v12246_v4, %v3858_v25 }
 0x275   :  { %v3672_v45 = vmul.f32 %v12228_v8, %v3650_v33  ;;  %v3679_v32 = vadd.f32 %v3671_v34, %v3573_v30  ;;  %v12436_v36 = vrot.slane %v3912_v3, %v9230_v14  ;;  %v3964_v0 = vrot.slane %v12426_v50, %v9232_v15 }
 0x276   :  { %v3778_v53 = vmul.f32 %v12239_v28, %v3756_v52  ;;  %v3884_v55 = vmul.f32 %v12246_v4, %v3862_v6  ;;  %v7240_v56 = vrot.slane %v7226_v5, %v9230_v14  ;;  %v7338_v46 = vrot.slane %v7324_v23, %v9230_v14 }
 0x277   :  { %v3680_v9 = vadd.f32 %v3672_v45, %v3574_v57  ;;  %v3785_v42 = vadd.f32 %v3777_v63, %v3679_v32  ;;  %v3968_v35 = vrot.slane %v12436_v36, %v9232_v15  ;;  %v3989_v43 = vmul.f32 %v12254_v37, %v3964_v0  ;;  %v12998_v57 = vld [vmem:[#allocation16_spill] sm:$0xff] }
 0x278   :  { %v7430_v17 = vcombine.high %v12996_v1, %v12996_v1  ;;  %v7536_v30 = vcombine.high %v12997_v27, %v12997_v27  ;;  %v7642_v62 = vcombine.high %v12998_v57, %v12998_v57  ;;  %v7242_v2 = vcombine.high %v7240_v56, %v7240_v56 }
 0x279   :  { %v3786_v44 = vadd.f32 %v3778_v53, %v3680_v9  ;;  %v3891_v26 = vadd.f32 %v3883_v20, %v3785_v42  ;;  %v3990_v7 = vmul.f32 %v12254_v37, %v3968_v35  ;;  %v12459_v59 = vrot.slane %v7240_v56, %v9230_v14 }
 0x27a   :  { %v7340_v25 = vcombine.high %v7338_v46, %v7338_v46  ;;  %v12462_v33 = vrot.slane %v7338_v46, %v9230_v14  ;;  %v7444_v52 = vrot.slane %v7430_v17, %v9230_v14  ;;  %v7550_v63 = vrot.slane %v7536_v30, %v9230_v14 }
 0x27b   :  { %v3892_v34 = vadd.f32 %v3884_v55, %v3786_v44  ;;  %v3997_v3 = vadd.f32 %v3989_v43, %v3891_v26  ;;  %v12467_v6 = vrot.slane %v7242_v2, %v9230_v14  ;;  %v7294_v20 = vrot.slane %v12459_v59, %v9232_v15 }
 0x27c   :  { %v12472_v45 = vrot.slane %v7340_v25, %v9230_v14  ;;  %v7392_v32 = vrot.slane %v12462_v33, %v9232_v15  ;;  %v7446_v55 = vcombine.high %v7444_v52, %v7444_v52  ;;  %v12477_v54 = vrot.slane %v7444_v52, %v9230_v14  ;;  %v12999_v25 = vld [vmem:[#allocation25_spill] sm:$0xff] }
 0x27d   :  { %v3998_v0 = vadd.f32 %v3990_v7, %v3892_v34  ;;  %v4005_v53 = vmul.f32 %v3997_v3, %v3997_v3  ;;  %v7298_v5 = vrot.slane %v12467_v6, %v9232_v15  ;;  %v7319_v61 = vmul.f32 %v12089_v31, %v7294_v20 }
 0x27e   :  { %v7396_v23 = vrot.slane %v12472_v45, %v9232_v15  ;;  %v7417_v9 = vmul.f32 %v12101_v19, %v7392_v32  ;;  %v12487_v56 = vrot.slane %v7446_v55, %v9230_v14  ;;  %v7498_v27 = vrot.slane %v12477_v54, %v9232_v15 }
 0x27f   :  { %v4006_v42 = vmul.f32 %v3998_v0, %v3998_v0  ;;  %v4012_v35 = vadd.f32 %v12290_v29, %v4005_v53  ;;  %v8885_v43 = vpack.c.bf16 %v3998_v0, %v3997_v3  ;;  %v7320_v46 = vmul.f32 %v12089_v31, %v7298_v5 }
 0x280   :  { %v7418_v1 = vmul.f32 %v12101_v19, %v7396_v23  ;;  %v7425_v17 = vadd.f32 %v7417_v9, %v7319_v61  ;;  %v7502_v44 = vrot.slane %v12487_v56, %v9232_v15  ;;  %v7552_v26 = vcombine.high %v7550_v63, %v7550_v63 }
 0x281   :  { %v12493_v30 = vadd.f32 %v4012_v35, %v4006_v42  ;;  %8886 = vmatprep.subr.bf16.mxu1 %v8885_v43  ;;  %v12498_v29 = vrot.slane %v7550_v63, %v9230_v14  ;;  %v7523_v57 = vmul.f32 %v12107_v49, %v7498_v27  ;;  %v7656_v2 = vrot.slane %v7642_v62, %v9230_v14 }
 0x282   :  { %v7426_v7 = vadd.f32 %v7418_v1, %v7320_v46  ;;  %v7748_v34 = vcombine.high %v12999_v25, %v12999_v25  ;;  %8888 = vmatpush3.bf16.msra.mxu1 %v8885_v43  ;;  %v7524_v3 = vmul.f32 %v12107_v49, %v7502_v44  ;;  %v12506_v52 = vrot.slane %v7552_v26, %v9230_v14 }
 0x283   :  { %v7604_v20 = vrot.slane %v12498_v29, %v9232_v15  ;;  %v7854_v63 = vcombine.high %v12053_v51, %v12053_v51  ;;  %v7531_v32 = vadd.f32 %v7523_v57, %v7425_v17  ;;  %v7658_v0 = vcombine.high %v7656_v2, %v7656_v2 }
 0x284   :  { %v12513_v53 = vrot.slane %v7656_v2, %v9230_v14  ;;  %v7762_v62 = vrot.slane %v7748_v34, %v9230_v14  ;;  %v7532_v55 = vadd.f32 %v7524_v3, %v7426_v7  ;;  %v7608_v5 = vrot.slane %v12506_v52, %v9232_v15 }
 0x285   :  { %v7629_v61 = vmul.f32 %v12212_v58, %v7604_v20  ;;  %v7868_v23 = vrot.slane %v7854_v63, %v9230_v14  ;;  %v12521_v9 = vrot.slane %v7658_v0, %v9230_v14  ;;  %v7960_v34 = vcombine.high %v12056_v48, %v12056_v48 }
 0x286   :  { %v7710_v51 = vrot.slane %v12513_v53, %v9232_v15  ;;  %v7764_v42 = vcombine.high %v7762_v62, %v7762_v62  ;;  %v12526_v35 = vrot.slane %v7762_v62, %v9230_v14  ;;  %v7630_v43 = vmul.f32 %v12212_v58, %v7608_v5 }
 0x287   :  { %v7637_v46 = vadd.f32 %v7629_v61, %v7531_v32  ;;  %v7870_v1 = vcombine.high %v7868_v23, %v7868_v23  ;;  %v12530_v17 = vrot.slane %v7868_v23, %v9230_v14  ;;  %v7714_v27 = vrot.slane %v12521_v9, %v9232_v15 }
 0x288   :  { %v7735_v44 = vmul.f32 %v12228_v8, %v7710_v51  ;;  %v12536_v26 = vrot.slane %v7764_v42, %v9230_v14  ;;  %v7816_v7 = vrot.slane %v12526_v35, %v9232_v15  ;;  %v7638_v57 = vadd.f32 %v7630_v43, %v7532_v55 }
 0x289   :  { %v12541_v2 = vrot.slane %v7870_v1, %v9230_v14  ;;  %v7922_v25 = vrot.slane %v12530_v17, %v9232_v15  ;;  %v7736_v3 = vmul.f32 %v12228_v8, %v7714_v27  ;;  %v7974_v55 = vrot.slane %v7960_v34, %v9230_v14 }
 0x28a   :  { %v7743_v20 = vadd.f32 %v7735_v44, %v7637_v46  ;;  %v7820_v63 = vrot.slane %v12536_v26, %v9232_v15  ;;  %v7841_v32 = vmul.f32 %v12239_v28, %v7816_v7  ;;  %v3208_v5 = vcombine.high %v12334_v41, %v12334_v41 }
 0x28b   :  { %v7926_v0 = vrot.slane %v12541_v2, %v9232_v15  ;;  %v7947_v62 = vmul.f32 %v12246_v4, %v7922_v25  ;;  %v7744_v61 = vadd.f32 %v7736_v3, %v7638_v57  ;;  %v3210_v51 = vcombine.high %v12342_v11, %v12342_v11 }
 0x28c   :  { %v7842_v48 = vmul.f32 %v12239_v28, %v7820_v63  ;;  %v7849_v23 = vadd.f32 %v7841_v32, %v7743_v20  ;;  %v7976_v43 = vcombine.high %v7974_v55, %v7974_v55  ;;  %v12562_v46 = vrot.slane %v7974_v55, %v9230_v14 }
 0x28d   :  { %v7948_v42 = vmul.f32 %v12246_v4, %v7926_v0  ;;  %v3238_v1 = vrot.slane %v3208_v5, %v9232_v15  ;;  %v3242_v7 = vrot.slane %v3210_v51, %v9232_v15  ;;  %v3306_v41 = vcombine.high %v12338_v16, %v12338_v16 }
 0x28e   :  { %v7850_v27 = vadd.f32 %v7842_v48, %v7744_v61  ;;  %v7955_v44 = vadd.f32 %v7947_v62, %v7849_v23  ;;  %v12569_v57 = vrot.slane %v7976_v43, %v9230_v14  ;;  %v8028_v11 = vrot.slane %v12562_v46, %v9232_v15 }
 0x28f   :  { %v3257_v25 = vmul.f32 %v12089_v31, %v3238_v1  ;;  %v3308_v34 = vcombine.high %v12347_v18, %v12347_v18  ;;  %v3258_v20 = vmul.f32 %v12089_v31, %v3242_v7  ;;  %v3336_v63 = vrot.slane %v3306_v41, %v9232_v15 }
 0x290   :  { %v7956_v3 = vadd.f32 %v7948_v42, %v7850_v27  ;;  %v3412_v32 = vcombine.high %v12352_v13, %v12352_v13  ;;  %v8032_v14 = vrot.slane %v12569_v57, %v9232_v15  ;;  %v8053_v16 = vmul.f32 %v12254_v37, %v8028_v11 }
 0x291   :  { %v3340_v0 = vrot.slane %v3308_v34, %v9232_v15  ;;  %v3414_v62 = vcombine.high %v12362_v38, %v12362_v38  ;;  %v3355_v18 = vmul.f32 %v12101_v19, %v3336_v63  ;;  %v3518_v5 = vcombine.high %v12368_v21, %v12368_v21 }
 0x292   :  { %v3442_v55 = vrot.slane %v3412_v32, %v9232_v15  ;;  %v3520_v13 = vcombine.high %v12377_v22, %v12377_v22  ;;  %v8054_v61 = vmul.f32 %v12254_v37, %v8032_v14  ;;  %v8061_v48 = vadd.f32 %v8053_v16, %v7955_v44 }
 0x293   :  { %v3356_v23 = vmul.f32 %v12101_v19, %v3340_v0  ;;  %v3446_v51 = vrot.slane %v3414_v62, %v9232_v15  ;;  %v3363_v42 = vadd.f32 %v3355_v18, %v3257_v25  ;;  %v3548_v43 = vrot.slane %v3518_v5, %v9232_v15 }
 0x294   :  { %v3461_v38 = vmul.f32 %v12107_v49, %v3442_v55  ;;  %v3552_v1 = vrot.slane %v3520_v13, %v9232_v15  ;;  %v8062_v27 = vadd.f32 %v8054_v61, %v7956_v3  ;;  %v8069_v7 = vmul.f32 %v8061_v48, %v8061_v48 }
 0x295   :  { %v3364_v21 = vadd.f32 %v3356_v23, %v3258_v20  ;;  %v3462_v41 = vmul.f32 %v12107_v49, %v3446_v51  ;;  %v3567_v11 = vmul.f32 %v12212_v58, %v3548_v43  ;;  %v3624_v34 = vcombine.high %v12398_v12, %v12398_v12 }
 0x296   :  { %v3469_v22 = vadd.f32 %v3461_v38, %v3363_v42  ;;  %v3568_v44 = vmul.f32 %v12212_v58, %v3552_v1  ;;  %v8070_v25 = vmul.f32 %v8062_v27, %v8062_v27  ;;  %v8076_v63 = vadd.f32 %v12370_v40, %v8069_v7 }
 0x297   :  { %v8949_v32 = vpack.c.bf16 %v8062_v27, %v8061_v48  ;;  %v3470_v14 = vadd.f32 %v3462_v41, %v3364_v21  ;;  %v3626_v3 = vcombine.high %v12407_v24, %v12407_v24  ;;  %v3654_v20 = vrot.slane %v3624_v34, %v9232_v15 }
 0x298   :  { %v3575_v16 = vadd.f32 %v3567_v11, %v3469_v22  ;;  %v3730_v0 = vcombine.high %v12401_v39, %v12401_v39  ;;  %v12609_v62 = vadd.f32 %v8076_v63, %v8070_v25  ;;  %v3732_v12 = vcombine.high %v12413_v47, %v12413_v47 }
 0x299   :  { %8950 = vmatprep.subr.bf16.mxu0 %v8949_v32  ;;  %v3576_v18 = vadd.f32 %v3568_v44, %v3470_v14  ;;  %v3836_v40 = vcombine.high %v12404_v60, %v12404_v60  ;;  %v3658_v55 = vrot.slane %v3626_v3, %v9232_v15  ;;  %v3673_v24 = vmul.f32 %v12228_v8, %v3654_v20 }
 0x29a   :  { %8952 = vmatpush3.bf16.msra.mxu0 %v8949_v32  ;;  %v3760_v5 = vrot.slane %v3730_v0, %v9232_v15  ;;  %v3838_v39 = vcombine.high %v12418_v10, %v12418_v10  ;;  %v3764_v13 = vrot.slane %v3732_v12, %v9232_v15  ;;  %v3942_v47 = vcombine.high %v12426_v50, %v12426_v50 }
 0x29b   :  { %v3866_v61 = vrot.slane %v3836_v40, %v9232_v15  ;;  %v3944_v60 = vcombine.high %v12436_v36, %v12436_v36  ;;  %v3674_v48 = vmul.f32 %v12228_v8, %v3658_v55  ;;  %v3681_v23 = vadd.f32 %v3673_v24, %v3575_v16 }
 0x29c   :  { %v3779_v51 = vmul.f32 %v12239_v28, %v3760_v5  ;;  %v3870_v42 = vrot.slane %v3838_v39, %v9232_v15  ;;  %v3780_v38 = vmul.f32 %v12239_v28, %v3764_v13  ;;  %v3972_v43 = vrot.slane %v3942_v47, %v9232_v15 }
 0x29d   :  { %v3885_v10 = vmul.f32 %v12246_v4, %v3866_v61  ;;  %v3976_v1 = vrot.slane %v3944_v60, %v9232_v15  ;;  %v3682_v27 = vadd.f32 %v3674_v48, %v3576_v18  ;;  %v7272_v36 = vcombine.high %v12459_v59, %v12459_v59 }
 0x29e   :  { %v3787_v50 = vadd.f32 %v3779_v51, %v3681_v23  ;;  %v3886_v7 = vmul.f32 %v12246_v4, %v3870_v42  ;;  %v3991_v21 = vmul.f32 %v12254_v37, %v3972_v43  ;;  %v7274_v22 = vcombine.high %v12467_v6, %v12467_v6 }
 0x29f   :  { %v3992_v41 = vmul.f32 %v12254_v37, %v3976_v1  ;;  %v7370_v11 = vcombine.high %v12462_v33, %v12462_v33  ;;  %v3788_v44 = vadd.f32 %v3780_v38, %v3682_v27  ;;  %v7302_v25 = vrot.slane %v7272_v36, %v9232_v15 }
 0x2a0   :  { %v3893_v34 = vadd.f32 %v3885_v10, %v3787_v50  ;;  %v7372_v63 = vcombine.high %v12472_v45, %v12472_v45  ;;  %v7306_v32 = vrot.slane %v7274_v22, %v9232_v15  ;;  %v7476_v14 = vcombine.high %v12477_v54, %v12477_v54 }
 0x2a1   :  { %v7400_v59 = vrot.slane %v7370_v11, %v9232_v15  ;;  %v7478_v6 = vcombine.high %v12487_v56, %v12487_v56  ;;  %v3894_v16 = vadd.f32 %v3886_v7, %v3788_v44  ;;  %v7321_v33 = vmul.f32 %v12089_v31, %v7302_v25 }
 0x2a2   :  { %v3999_v3 = vadd.f32 %v3991_v21, %v3893_v34  ;;  %v7404_v20 = vrot.slane %v7372_v63, %v9232_v15  ;;  %v7322_v0 = vmul.f32 %v12089_v31, %v7306_v32  ;;  %v7506_v18 = vrot.slane %v7476_v14, %v9232_v15  ;;  %v4027_v63 = vld [vmem:[#allocation6 + $0x78] sm:$0xff] }
 0x2a3   :  { %v7419_v45 = vmul.f32 %v12101_v19, %v7400_v59  ;;  %v7510_v12 = vrot.slane %v7478_v6, %v9232_v15  ;;  %v4000_v40 = vadd.f32 %v3992_v41, %v3894_v16  ;;  %v7582_v56 = vcombine.high %v12498_v29, %v12498_v29  ;;  %v8193_v16 = vld [vmem:[%s12782_s2] sm:$0xff] }
 0x2a4   :  { %v4007_v55 = vmul.f32 %v3999_v3, %v3999_v3  ;;  %v7420_v54 = vmul.f32 %v12101_v19, %v7404_v20  ;;  %v7525_v5 = vmul.f32 %v12107_v49, %v7506_v18  ;;  %v7584_v31 = vcombine.high %v12506_v52, %v12506_v52 }
 0x2a5   :  { %v7427_v24 = vadd.f32 %v7419_v45, %v7321_v33  ;;  %v7526_v39 = vmul.f32 %v12107_v49, %v7510_v12  ;;  %v4008_v13 = vmul.f32 %v4000_v40, %v4000_v40  ;;  %v8889_v47 = vpack.c.bf16 %v4000_v40, %v3999_v3 }
 0x2a6   :  { %v4014_v61 = vadd.f32 %v12493_v30, %v4007_v55  ;;  %v7428_v60 = vadd.f32 %v7420_v54, %v7322_v0  ;;  %v7612_v23 = vrot.slane %v7582_v56, %v9232_v15  ;;  %v7616_v19 = vrot.slane %v7584_v31, %v9232_v15 }
 0x2a7   :  { %v7533_v48 = vadd.f32 %v7525_v5, %v7427_v24  ;;  %v7688_v29 = vcombine.high %v12513_v53, %v12513_v53  ;;  %8890 = vmatprep.subr.bf16.mxu1 %v8889_v47  ;;  %v7690_v49 = vcombine.high %v12521_v9, %v12521_v9  ;;  %v7794_v52 = vcombine.high %v12526_v35, %v12526_v35  ;;  %v4025_v53 = vld [vmem:[#allocation6 + $0x68] sm:$0xff]  ;;  %v4026_v35 = vld [vmem:[#allocation6 + $0x70] sm:$0xff] }
 0x2a8   :  { %v4015_v51 = vadd.f32 %v4014_v61, %v4008_v13  ;;  %v7534_v42 = vadd.f32 %v7526_v39, %v7428_v60  ;;  %v7631_v30 = vmul.f32 %v12212_v58, %v7612_v23  ;;  %v7632_v38 = vmul.f32 %v12212_v58, %v7616_v19  ;;  %8892 = vmatpush3.bf16.msra.mxu1 %v8889_v47  ;;  %v8196_v5 = vld [vmem:[%s12782_s2 + $0x18] sm:$0xff]  ;;  %v13003_v61 = vld [vmem:[#allocation21_spill] sm:$0xff] }
 0x2a9   :  { %v7718_v10 = vrot.slane %v7688_v29, %v9232_v15  ;;  %v7796_v43 = vcombine.high %v12536_v26, %v12536_v26  ;;  %v7722_v27 = vrot.slane %v7690_v49, %v9232_v15  ;;  %v7824_v50 = vrot.slane %v7794_v52, %v9232_v15  ;;  %v13001_v39 = vld [vmem:[#allocation19_spill] sm:$0xff]  ;;  %v13004_v19 = vld [vmem:[#allocation17_spill] sm:$0xff] }
 0x2aa   :  { %v4016_v1 = vrot.slane %v4015_v51, 4  ;;  %v7900_v9 = vcombine.high %v12530_v17, %v12530_v17  ;;  %v7639_v7 = vadd.f32 %v7631_v30, %v7533_v48  ;;  %v7640_v36 = vadd.f32 %v7632_v38, %v7534_v42  ;;  %v8229_v52 = vld [vmem:[%s12784_s4] sm:$0xff]  ;;  %v8230_v30 = vld [vmem:[%s12784_s4 + $0x8] sm:$0xff] }
 0x2ab   :  { %v7737_v58 = vmul.f32 %v12228_v8, %v7718_v10  ;;  %v7828_v21 = vrot.slane %v7796_v43, %v9232_v15  ;;  %v7738_v26 = vmul.f32 %v12228_v8, %v7722_v27  ;;  %v7843_v22 = vmul.f32 %v12239_v28, %v7824_v50  ;;  %8722 = vmatmul.mubr.msk.f32.vlgmr.msra.gmra.mrb[0].mxu1 %vm1902_vm0, %v4025_v53  ;;  %v8089_v53 = vld [vmem:[#allocation6 + $0xe8] sm:$0xff]  ;;  %v8090_v27 = vld [vmem:[#allocation6 + $0xf0] sm:$0xff] }
 0x2ac   :  { %v4017_v41 = vadd.f32 %v4016_v1, %v4015_v51  ;;  %v7902_v11 = vcombine.high %v12541_v2, %v12541_v2  ;;  %v7930_v34 = vrot.slane %v7900_v9, %v9232_v15  ;;  %v8006_v25 = vcombine.high %v12562_v46, %v12562_v46  ;;  %8724 = vmatprep.mubr.msk.f32.mxu1 %vm1902_vm0, %v4026_v35  ;;  %v8195_v46 = vld [vmem:[%s12782_s2 + $0x10] sm:$0xff]  ;;  %v8232_v9 = vld [vmem:[%s12784_s4 + $0x18] sm:$0xff] }
 0x2ad   :  { %v7745_v44 = vadd.f32 %v7737_v58, %v7639_v7  ;;  %v7844_v17 = vmul.f32 %v12239_v28, %v7828_v21  ;;  %v7746_v8 = vadd.f32 %v7738_v26, %v7640_v36  ;;  %v8008_v2 = vcombine.high %v12569_v57, %v12569_v57  ;;  %v13000_v57 = vld [vmem:[#allocation18_spill] sm:$0xff]  ;;  %v8533_v21 = vld [vmem:[%s12785_s5] ss:$0 sm:$0xff] }
 0x2ae   :  { %v4018_v32 = vrot.slane %v4017_v41, 2  ;;  %v7934_v59 = vrot.slane %v7902_v11, %v9232_v15  ;;  %v7949_v6 = vmul.f32 %v12246_v4, %v7930_v34  ;;  %v8036_v28 = vrot.slane %v8006_v25, %v9232_v15  ;;  %v8231_v50 = vld [vmem:[%s12784_s4 + $0x10] sm:$0xff]  ;;  %v8091_v36 = vld [vmem:[#allocation6 + $0xf8] sm:$0xff] }
 0x2af   :  { %v7851_v14 = vadd.f32 %v7843_v22, %v7745_v44  ;;  %v7852_v33 = vadd.f32 %v7844_v17, %v7746_v8  ;;  %v8040_v0 = vrot.slane %v8008_v2, %v9232_v15  ;;  %8725 = vmatmul.mubr.msk.f32.gmra.mrb[2].mxu1 %vm1902_vm0, %v4027_v63  ;;  %v6052_v45 = vrot.slane %v13000_v57, 1  ;;  %v8388_v44 = vld [vmem:[#allocation2] sm:$0x1]  ;;  %v8227_v34 = vld [vmem:[%s12783_s3 + $0x10] sm:$0xff] }
 0x2b0   :  { %v4019_v3 = vadd.f32 %v4018_v32, %v4017_v41  ;;  %v7950_v20 = vmul.f32 %v12246_v4, %v7934_v59  ;;  %v8055_v12 = vmul.f32 %v12254_v37, %v8036_v28  ;;  %v9145_v40 = vmov 0   ;;  %v8194_v4 = vld [vmem:[%s12782_s2 + $0x8] sm:$0xff]  ;;  %v8225_v17 = vld [vmem:[%s12783_s3] sm:$0xff]  ;;  %8826 = vmatprep.mubr.msk.f32.mxu1 %vm8253_vm1, %v8227_v34 }
 0x2b1   :  { %v7957_v18 = vadd.f32 %v7949_v6, %v7851_v14  ;;  %9004 = vset.pattern.permute.xlu0 %v9145_v40  ;;  %9005 = vset.pattern.permute.xlu1 %v9145_v40  ;;  %v8056_v56 = vmul.f32 %v12254_v37, %v8040_v0  ;;  %v13002_v31 = vrot.slane %v13001_v39, 1  ;;  %v7068_v47 = vrot.slane %v13003_v61, 1 }
 0x2b2   :  { %v4020_v55 = vrot.slane %v4019_v3, 1  ;;  %v7958_v54 = vadd.f32 %v7950_v20, %v7852_v33  ;;  %8199 = vperm.xlu0 %9004, %v8193_v16   ;;  %8209 = vperm.xlu1 %9005, %v8195_v46   ;;  %v6053_v37 = vadd.f32 %v6052_v45, %v13000_v57 }
 0x2b3   :  { %v8063_v24 = vadd.f32 %v8055_v12, %v7957_v18  ;;  %v5037_v13 = vadd.f32 %v13002_v31, %v13001_v39  ;;  %v7069_v38 = vadd.f32 %v7068_v47, %v13003_v61  ;;  %v8226_v39 = vld [vmem:[%s12783_s3 + $0x8] sm:$0xff]  ;;  %v8228_v31 = vld [vmem:[%s12783_s3 + $0x18] sm:$0xff]  ;;  %s9146_s3 = smov [#allocation8]  }
 0x2b4   :  { %v4021_v60 = vadd.f32 %v4020_v55, %v4019_v3  ;;  %v8064_v48 = vadd.f32 %v8056_v56, %v7958_v54  ;;  %s8423_s25 = sshll.u32 %s9146_s3, 4  ;;  %s8424_s25 = int_to_ptr.vmem [resolvable:$true] %s8423_s25 }
 0x2b5   :  { %v8071_v23 = vmul.f32 %v8063_v24, %v8063_v24  ;;  %s9112_s0 = scalar_lea.vmem %s8424_s25, 32  ;;  %p9117_p3 = scmp.lt.s32.totalorder %s8424_s25, %s8424_s25 }
 0x2b6   :  { %v4022_v29 = vadd.f32 %v4021_v60, %v13004_v19  ;;  %v8072_v51 = vmul.f32 %v8064_v48, %v8064_v48  ;;  %v8953_v42 = vpack.c.bf16 %v8064_v48, %v8063_v24  ;;  %8204 = vperm.xlu0 %9004, %v8194_v4   ;;  %8214 = vperm.xlu1 %9005, %v8196_v5   ;;  %p9113_p2 = scmp.ne.s32.totalorder %s8424_s25, %s9112_s0  ;;  %p9118_p4 = scmp.lt.s32.totalorder %s9112_s0, %s9112_s0 }
 0x2b7   :  { %v8078_v49 = vadd.f32 %v12609_v62, %v8071_v23 }
 0x2b8   :  { %v5038_v10 = vadd.f32 %v5037_v13, %v4022_v29  ;;  %8954 = vmatprep.subr.bf16.mxu0 %v8953_v42  ;;  %p9119_p5 = por %p9118_p4, %p9117_p3 }
 0x2b9   :  { %v8079_v43 = vadd.f32 %v8078_v49, %v8072_v51  ;;  %8956 = vmatpush3.bf16.msra.mxu0 %v8953_v42 }
 0x2ba   :  { %v6054_v1 = vadd.f32 %v6053_v37, %v5038_v10  ;;  %8235 = vperm.xlu0 %9004, %v8229_v52   ;;  %8240 = vperm.xlu1 %9005, %v8230_v30   ;;  %p9120_p6 = pnand %p9119_p5, %p9113_p2 }
 0x2bb   :  { %v8080_v62 = vrot.slane %v8079_v43, 4 }
 0x2bc   :  { %v7070_v35 = vadd.f32 %v7069_v38, %v6054_v1  ;;  %8810 = vmatmul.mubr.msk.f32.vlgmr.msra.gmra.mrb[0].mxu0 %vm1902_vm0, %v8089_v53 }
 0x2bd   :  { %v8081_v7 = vadd.f32 %v8080_v62, %v8079_v43  ;;  %8812 = vmatprep.mubr.msk.f32.mxu0 %vm1902_vm0, %v8090_v27 }
 0x2be   :  { %8245 = vperm.xlu0 %9004, %v8231_v50   ;;  %8250 = vperm.xlu1 %9005, %v8232_v9  }
 0x2bf   :  { %v8082_v58 = vrot.slane %v8081_v7, 2 }
 0x2c0   :  { %8813 = vmatmul.mubr.msk.f32.gmra.mrb[2].mxu0 %vm1902_vm0, %v8091_v36 }
 0x2c1   :  { %v8083_v41 = vadd.f32 %v8082_v58, %v8081_v7  ;;  %8823 = vmatprep.mubr.msk.f32.mxu0 %vm8253_vm1, %v8225_v17 }
 0x2c2   :  { %8361 = vbcast.lane.b32.xlu0 %v8533_v21, 256  ;;  %8365 = vbcast.lane.b32.xlu1 %v8533_v21, 264 }
 0x2c3   :  { %v8084_v26 = vrot.slane %v8083_v41, 1 }
 0x2c5   :  { %v8085_v22 = vadd.f32 %v8084_v26, %v8083_v41 }
 0x2c6   :  { %8369 = vbcast.lane.b32.xlu0 %v8533_v21, 272  ;;  %8373 = vbcast.lane.b32.xlu1 %v8533_v21, 280 }
 0x2c7   :  { %v12743_v11 = vadd.f32 %v8085_v22, %v7070_v35 }
 0x2c9   :  { %vm8409_vm2 = vcmp.eq.f32.partialorder %v12743_v11, inf  ;;  %vm8411_vm3 = vcmp.eq.f32.partialorder %v12743_v11, 0.0 }
 0x2ca   :  { %8391 = vperm.xlu0 %9004, %v8388_v44  }
 0x331   :  { %v8200_v59 = vpop.permute.xlu0 %8199  ;;  %v8210_v2 = vpop.permute.xlu1 %8209 }
 0x335   :  { %v8205_v16 = vpop.permute.xlu0 %8204  ;;  %v8215_v18 = vpop.permute.xlu1 %8214 }
 0x339   :  { %v8236_v13 = vpop.permute.xlu0 %8235  ;;  %v8241_v61 = vpop.permute.xlu1 %8240 }
 0x33d   :  { %v8246_v47 = vpop.permute.xlu0 %8245  ;;  %v8251_v60 = vpop.permute.xlu1 %8250 }
 0x341   :  { %v8362_v48 = vpop.permute.xlu0 %8361  ;;  %v8366_v37 = vpop.permute.xlu1 %8365 }
 0x345   :  { %v8370_v62 = vpop.permute.xlu0 %8369  ;;  %v8374_v50 = vpop.permute.xlu1 %8373 }
 0x349   :  { %v8392_v44 = vpop.permute.xlu0 %8391 }
 0x34a   :  { %v8397_v34 = vrot.slane %v8392_v44, %v9232_v15 }
 0x37e   :  { %v8723_v25 = vpop.f32.mrb[0].mxu1 }
 0x37f   :  { %v4106_v63 = vpop.f32.mrb[1].mxu1 }
 0x382   :  { %v8726_v32 = vpop.f32.mrb[2].mxu1 }
 0x383   :  { %v4116_v8 = vpop.f32.mrb[3].mxu1 }
 0x38f   :  { %v8811_v14 = vpop.f32.mrb[0].mxu0 }
 0x390   :  { %v8969_v6 = vadd.f32 %v8811_v14, %v8723_v25  ;;  %v8170_v28 = vpop.f32.mrb[1].mxu0 }
 0x391   :  { %v8970_v46 = vadd.f32 %v8170_v28, %v4106_v63 }
 0x392   :  { %v8218_v3 = vadd.f32 %v8969_v6, %v8205_v16  ;;  %v8412_v6 = vand.u32 2147483648, %v12743_v11 }
 0x393   :  { %v8217_v33 = vadd.f32 %v8970_v46, %v8200_v59  ;;  %v8814_v20 = vpop.f32.mrb[2].mxu0 }
 0x394   :  { %v8222_v0 = vmax.f32 %v8218_v3, 0.0  ;;  %v8971_v57 = vadd.f32 %v8814_v20, %v8726_v32  ;;  %v8180_v45 = vpop.f32.mrb[3].mxu0 }
 0x395   :  { %v8221_v12 = vmax.f32 %v8217_v33, 0.0  ;;  %v8972_v40 = vadd.f32 %v8180_v45, %v4116_v8 }
 0x396   :  { %v8220_v55 = vadd.f32 %v8971_v57, %v8215_v18 }
 0x397   :  { %v8957_v54 = vpack.c.bf16 %v8222_v0, %v8221_v12  ;;  %v8219_v56 = vadd.f32 %v8972_v40, %v8210_v2 }
 0x398   :  { %v8224_v24 = vmax.f32 %v8220_v55, 0.0 }
 0x399   :  { %v8223_v4 = vmax.f32 %v8219_v56, 0.0  ;;  %8958 = vmatprep.subr.bf16.mxu0 %v8957_v54  ;;  %8965 = vmatprep.subr.bf16.mxu1 %v8957_v54 }
 0x39a   :  { %8960 = vmatpush3.bf16.msra.mxu0 %v8957_v54  ;;  %8967 = vmatpush3.bf16.msra.mxu1 %v8957_v54 }
 0x39b   :  { %v8961_v5 = vpack.c.bf16 %v8224_v24, %v8223_v4 }
 0x39d   :  { %8962 = vmatprep.subr.bf16.mxu0 %v8961_v5  ;;  %8966 = vmatprep.subr.bf16.mxu1 %v8961_v5 }
 0x39e   :  { %8964 = vmatpush3.bf16.msra.mxu0 %v8961_v5  ;;  %8968 = vmatpush3.bf16.msra.mxu1 %v8961_v5 }
 0x3a1   :  { %8824 = vmatmul.mubr.msk.f32.vlgmr.msra.gmra.mrb[4].mxu0 %vm8253_vm1, %v8226_v39  ;;  %8827 = vmatmul.mubr.msk.f32.vlgmr.msra.gmra.mrb[4].mxu1 %vm8253_vm1, %v8228_v31 }
 0x474   :  { %v8825_v23 = vpop.f32.mrb[4].mxu0  ;;  %v8828_v19 = vpop.f32.mrb[4].mxu1 }
 0x475   :  { %v8338_v29 = vadd.f32 %v8825_v23, %v8241_v61  ;;  %v8332_v51 = vpop.f32.mrb[5].mxu0  ;;  %v8342_v42 = vpop.f32.mrb[5].mxu1  ;;  %v8348_v49 = vadd.f32 %v8828_v19, %v8251_v60 }
 0x476   :  { %v8333_v52 = vadd.f32 %v8332_v51, %v8236_v13  ;;  %v8343_v30 = vadd.f32 %v8342_v42, %v8246_v47 }
 0x477   :  { %v8352_v38 = vmax.f32 %v8338_v29, 0.0  ;;  %v8354_v1 = vmax.f32 %v8348_v49, 0.0 }
 0x478   :  { %v8351_v10 = vmax.f32 %v8333_v52, 0.0  ;;  %v8353_v43 = vmax.f32 %v8343_v30, 0.0 }
 0x479   :  { %v8376_v53 = vmul.f32 %v8366_v37, %v8352_v38  ;;  %v8378_v7 = vmul.f32 %v8374_v50, %v8354_v1 }
 0x47a   :  { %v8375_v27 = vmul.f32 %v8362_v48, %v8351_v10  ;;  %v8377_v35 = vmul.f32 %v8370_v62, %v8353_v43 }
 0x47c   :  { %v8379_v9 = vadd.f32 %v8376_v53, %v8375_v27 }
 0x47e   :  { %v8380_v36 = vadd.f32 %v8379_v9, %v8377_v35 }
 0x480   :  { %v8381_v58 = vadd.f32 %v8380_v36, %v8378_v7 }
 0x482   :  { %v8382_v21 = vrot.slane %v8381_v58, 4 }
 0x484   :  { %v8383_v41 = vadd.f32 %v8382_v21, %v8381_v58 }
 0x486   :  { %v8384_v26 = vrot.slane %v8383_v41, 2 }
 0x488   :  { %v8385_v22 = vadd.f32 %v8384_v26, %v8383_v41 }
 0x48a   :  { %v8386_v17 = vrot.slane %v8385_v22, 1 }
 0x48c   :  { %v8387_v25 = vadd.f32 %v8386_v17, %v8385_v22 }
 0x48e   :  { %v8398_v63 = vadd.f32 %v8397_v34, %v8387_v25 }
 0x490   :  { %v8534_v32 = vmul.f32 -1.442695, %v8398_v63 }
 0x492   :  { %9006 = vpow2.f32 %v8534_v32 }
 0x493   :  { %9008 = vrsqrt.f32 %v12743_v11 }
 0x49c   :  { %v9007_v8 = vpop.eup %9006 }
 0x49d   :  { %v8402_v59 = vadd.f32 1.0, %v9007_v8  ;;  %v9009_v2 = vpop.eup %9008 }
 0x49e   :  { %v8408_v14 = vmul.f32 %v9009_v2, %v12743_v11 }
 0x49f   :  { %9010 = vrcp.f32 %v8402_v59 }
 0x4a0   :  { %v8410_v28 = vsel %vm8409_vm2, %v12743_v11, %v8408_v14 }
 0x4a1   :  { %v8413_v46 = vsel %vm8411_vm3, %v8412_v6, %v8410_v28 }
 0x4a9   :  { %v9011_v15 = vpop.eup %9010 }
 0x4aa   :  { %v8405_v16 = vmul.f32 6.0, %v9011_v15 }
 0x4ac   :  { %v8406_v3 = vadd.f32 -3.0, %v8405_v16 }
 0x4ae   :  { %v8415_v33 = vsel %vm8414_vm4, %v8406_v3, %v8413_v46 }
 0x4af   :  { %8416 = vst [vmem:[#allocation8] sm:$0x3] %v8415_v33 }
 0x4b0   :  { %9123 = shalt.err (!%p9120_p6)
}
 0x4b1   :  { %s9124_s27 = scalar_lea.hbm %s12787_s7, 32 }
 0x4b2   :  { %p9125_p7 = scmp.ne.s32.totalorder %s12787_s7, %s9124_s27  ;;  %p9128_p8 = scmp.lt.u32.totalorder %s9124_s27, %s12787_s7 }
 0x4b4   :  { %p9130_p9 = pnand %p9128_p8, %p9125_p7 }
 0x4b6   :  { %9133 = shalt.err (!%p9130_p9)
}
 0x4b7   :  { %8426 = dma.vmem_to_hbm [thread:$0]  %s8424_s25, 32, %s12787_s7, [#allocation5]  }
 0x4b8   :  { %9138 = dma.done.wait [#allocation5], 32  }
 0x4b9   :  { %9139 = vsyncadd [#allocation5], 4294967264 }
 0x4ba   :  { %8430 = vsyncpa [#allocation4], 1 }
 0x4bb   :  { %8431 = vsyncpa [#allocation7], 1 }
 0x4bc   :  { %8432 = vsyncpa [#allocation5], 1 }

</bundles_post_ra>
